<compile_context>
chip_gen: v7x
topology: tpu7x:2x2x1
jax: 0.10.0
libtpu: 0.0.40
codegen_flags: <defaults>
</compile_context>

<pallas_src>
import functools

import jax
import jax.numpy as jnp
from jax.experimental import pallas as pl
from jax.experimental.pallas import tpu as pltpu

EPS = 1e-5    # torch.nn.BatchNorm2d default
LANE = 128    # TPU lane width


def _round_up(x, m):
    return (x + m - 1) // m * m


# ------------------------------ kernel helpers ------------------------------

def _taps_matmul(xp, w_ref, h, w):
    """3x3 conv as 9 shifted MXU matmuls.

    xp:    (h+2, w+2, Ci) bf16 value (zero spatial border, Ci lane-padded)
    w_ref: (9, Ci, Co) bf16 ref, tap index = ky*3 + kx
    returns (h*w, Co) f32 accumulator.
    Requires w % 8 == 0 so the (h, w, Ci) -> (h*w, Ci) collapse is layout-free.
    """
    ci = xp.shape[-1]
    acc = None
    for dy in range(3):
        for dx in range(3):
            tap = dy * 3 + dx
            xs = xp[dy:dy + h, dx:dx + w, :].reshape(h * w, ci)
            part = jnp.dot(xs, w_ref[tap], preferred_element_type=jnp.float32)
            acc = part if acc is None else acc + part
    return acc


def _accumulate_stats(acc, sum_ref, sq_ref):
    """Per-split resident (1,1,C) sum / sum-of-squares accumulation.

    The stats blocks are indexed by the *parallel* split axis and revisited
    only along the *arbitrary* image axis -> megacore-safe on v7x.
    The y*y multiply and axis-0 reductions ride in otherwise-idle VPU/XLU
    slots next to the MXU work (review: keep in-kernel, do not split out).
    """
    @pl.when(pl.program_id(1) == 0)
    def _init():
        sum_ref[...] = jnp.zeros_like(sum_ref)
        sq_ref[...] = jnp.zeros_like(sq_ref)

    sum_ref[...] += jnp.sum(acc, axis=0, keepdims=True)[None]
    sq_ref[...] += jnp.sum(acc * acc, axis=0, keepdims=True)[None]


# -------------------------------- kernels -----------------------------------

def _conv1_stats_kernel(h, w, x_ref, w_ref, y_ref, sum_ref, sq_ref):
    """conv1 on one image + per-channel sum/sumsq accumulation."""
    xp = x_ref[0]                                   # (h+2, w+2, Ci) bf16
    acc = _taps_matmul(xp, w_ref, h, w)             # (h*w, Co) f32
    y_ref[0] = acc.reshape(h, w, -1).astype(y_ref.dtype)
    _accumulate_stats(acc, sum_ref, sq_ref)


def _bn_relu_conv2_stats_kernel(h, w, y1_ref, w_ref, scale_ref, shift_ref,
                                y2_ref, sum_ref, sq_ref, pad_ref):
    """Fused: bn1-apply + relu -> spatial zero-pad (VMEM) -> conv2 + stats."""
    y1 = y1_ref[0].astype(jnp.float32)              # (h, w, C)
    scale = scale_ref[...].reshape(1, 1, -1)
    shift = shift_ref[...].reshape(1, 1, -1)
    h1 = jnp.maximum(y1 * scale + shift, 0.0).astype(pad_ref.dtype)

    pad_ref[...] = jnp.zeros_like(pad_ref)          # zero border (cheap, VMEM)
    pad_ref[1:h + 1, 1:w + 1, :] = h1               # interior

    acc = _taps_matmul(pad_ref[...], w_ref, h, w)   # (h*w, C) f32
    y2_ref[0] = acc.reshape(h, w, -1).astype(y2_ref.dtype)
    _accumulate_stats(acc, sum_ref, sq_ref)


def _bn_add_relu_kernel(h, w, y_ref, xpad_ref, scale_ref, shift_ref, o_ref):
    """out = relu(y*scale + shift + identity); identity = interior of padded x."""
    y = y_ref[...].astype(jnp.float32)              # (bi, h, w, C)
    scale = scale_ref[...].reshape(1, 1, 1, -1)
    shift = shift_ref[...].reshape(1, 1, 1, -1)
    res = xpad_ref[...][:, 1:h + 1, 1:w + 1, :].astype(jnp.float32)
    o_ref[...] = jnp.maximum(y * scale + shift + res, 0.0).astype(o_ref.dtype)


# ---------------------------- pallas_call wrappers ---------------------------

_VMEM_LIMIT = 48 * 1024 * 1024   # explicit cap: fits v7x 64MiB physical,
                                 # well above v5e/v6e scoped defaults.


def _conv1_stats(x_pad, w_taps, *, h, w, n_splits):
    n = x_pad.shape[0]
    nb = n // n_splits
    ci = x_pad.shape[-1]
    co = w_taps.shape[-1]
    kernel = functools.partial(_conv1_stats_kernel, h, w)
    return pl.pallas_call(
        kernel,
        out_shape=(jax.ShapeDtypeStruct((n, h, w, co), jnp.bfloat16),
                   jax.ShapeDtypeStruct((n_splits, 1, co), jnp.float32),
                   jax.ShapeDtypeStruct((n_splits, 1, co), jnp.float32)),
        grid=(n_splits, nb),
        in_specs=[
            pl.BlockSpec((1, h + 2, w + 2, ci), lambda s, i: (s * nb + i, 0, 0, 0)),
            # TODO(synk): pipeline_mode=pl.Buffered(1) on this constant-index
            # weight spec (or a once-loaded scratch copy) would free one weight
            # buffer on v7x's 64MiB VMEM.
            pl.BlockSpec((9, ci, co), lambda s, i: (0, 0, 0)),
        ],
        out_specs=(
            pl.BlockSpec((1, h, w, co), lambda s, i: (s * nb + i, 0, 0, 0)),
            pl.BlockSpec((1, 1, co), lambda s, i: (s, 0, 0)),   # per-split partial
            pl.BlockSpec((1, 1, co), lambda s, i: (s, 0, 0)),
        ),
        compiler_params=pltpu.CompilerParams(
            dimension_semantics=("parallel", "arbitrary"),
            vmem_limit_bytes=_VMEM_LIMIT),
    )(x_pad, w_taps)


def _bn_relu_conv2_stats(y1, w_taps, scale, shift, *, h, w, n_splits):
    n, _, _, c = y1.shape
    nb = n // n_splits
    kernel = functools.partial(_bn_relu_conv2_stats_kernel, h, w)
    return pl.pallas_call(
        kernel,
        out_shape=(jax.ShapeDtypeStruct((n, h, w, c), jnp.bfloat16),
                   jax.ShapeDtypeStruct((n_splits, 1, c), jnp.float32),
                   jax.ShapeDtypeStruct((n_splits, 1, c), jnp.float32)),
        grid=(n_splits, nb),
        in_specs=[
            pl.BlockSpec((1, h, w, c), lambda s, i: (s * nb + i, 0, 0, 0)),
            pl.BlockSpec((9, c, c), lambda s, i: (0, 0, 0)),
            pl.BlockSpec((1, c), lambda s, i: (0, 0)),
            pl.BlockSpec((1, c), lambda s, i: (0, 0)),
        ],
        out_specs=(
            pl.BlockSpec((1, h, w, c), lambda s, i: (s * nb + i, 0, 0, 0)),
            pl.BlockSpec((1, 1, c), lambda s, i: (s, 0, 0)),
            pl.BlockSpec((1, 1, c), lambda s, i: (s, 0, 0)),
        ),
        scratch_shapes=[pltpu.VMEM((h + 2, w + 2, c), jnp.bfloat16)],
        compiler_params=pltpu.CompilerParams(
            dimension_semantics=("parallel", "arbitrary"),
            vmem_limit_bytes=_VMEM_LIMIT),
    )(y1, w_taps, scale, shift)


def _bn_add_relu(y2, x_pad, scale, shift, *, h, w):
    n, _, _, c = y2.shape
    # Batch several images per grid step: big lane-dense elementwise tiles,
    # decoupled from the conv tiling (review item on per-step overhead).
    bytes_per_img = (h * w * c * 2) + ((h + 2) * (w + 2) * c * 2) + (h * w * c * 4)
    bi = 1
    for d in range(1, n + 1):
        if n % d == 0 and d * bytes_per_img <= (4 << 20):
            bi = d
    kernel = functools.partial(_bn_add_relu_kernel, h, w)
    return pl.pallas_call(
        kernel,
        out_shape=jax.ShapeDtypeStruct((n, h, w, c), jnp.float32),
        grid=(n // bi,),
        in_specs=[
            pl.BlockSpec((bi, h, w, c), lambda i: (i, 0, 0, 0)),
            pl.BlockSpec((bi, h + 2, w + 2, c), lambda i: (i, 0, 0, 0)),
            pl.BlockSpec((1, c), lambda i: (0, 0)),
            pl.BlockSpec((1, c), lambda i: (0, 0)),
        ],
        out_specs=pl.BlockSpec((bi, h, w, c), lambda i: (i, 0, 0, 0)),
        compiler_params=pltpu.CompilerParams(
            dimension_semantics=("parallel",),
            vmem_limit_bytes=_VMEM_LIMIT),
    )(y2, x_pad, scale, shift)


# --------------------------------- JAX glue ----------------------------------

def _weights_to_taps(w_oihw, c_pad):
    """torch (Co,Ci,3,3) -> (9, Ci_pad, Co_pad) bf16, tap index = ky*3+kx."""
    co, ci, kh, kw = w_oihw.shape
    wt = jnp.transpose(w_oihw, (2, 3, 1, 0)).reshape(kh * kw, ci, co)
    wt = jnp.pad(wt, ((0, 0), (0, c_pad - ci), (0, c_pad - co)))
    return wt.astype(jnp.bfloat16)


def _pad_c(v, c_pad):
    v = v.reshape(1, -1).astype(jnp.float32)
    return jnp.pad(v, ((0, 0), (0, c_pad - v.shape[1])))


def _bn_scale_shift(sum_sp, sq_sp, gamma_pad, beta_pad, count):
    """Combine per-split partials, fold BN into per-channel scale/shift (f32)."""
    s = jnp.sum(sum_sp, axis=0)                    # (1, C_pad)
    q = jnp.sum(sq_sp, axis=0)
    mean = s / count
    var = jnp.maximum(q / count - mean * mean, 0.0)
    scale = gamma_pad * jax.lax.rsqrt(var + EPS)   # padded lanes: gamma=0 -> 0
    shift = beta_pad - mean * scale
    return scale, shift


def basic_block_bn_forward(x_nchw, params):
    """BasicBlockBN forward (stride=1, identity_downsample=None, training BN)."""
    n, c, h, w = x_nchw.shape
    cout = params["w1"].shape[0]
    assert cout == c, "identity residual path requires input_dim == output_dim"
    # TODO(synk): stride!=1 / identity_downsample variants not implemented.
    assert w % 8 == 0, "in-kernel conv requires W % 8 == 0 (CIFAR: 32/16/8)"

    c_pad = _round_up(cout, LANE)   # lane-dense channels (stores are unmasked)
    m = n * h * w
    # 2-way batch split -> "parallel" leading axis megacore-shards on v7x;
    # harmless (just two partial stat rows) on 1-TC v5e/v6e.
    n_splits = 2 if (n % 2 == 0 and n >= 2) else 1

    # One fused XLA pass: NCHW->NHWC, cast to bf16 *before* padding, spatial
    # halo + channel lane padding.  This is the only activation prep in HBM.
    x_nhwc = jnp.transpose(x_nchw, (0, 2, 3, 1)).astype(jnp.bfloat16)
    x_pad = jnp.pad(x_nhwc, ((0, 0), (1, 1), (1, 1), (0, c_pad - c)))

    w1 = _weights_to_taps(params["w1"], c_pad)
    w2 = _weights_to_taps(params["w2"], c_pad)
    g1 = _pad_c(params["gamma1"], c_pad)
    b1 = _pad_c(params["beta1"], c_pad)
    g2 = _pad_c(params["gamma2"], c_pad)
    b2 = _pad_c(params["beta2"], c_pad)

    # stage 1: conv1 (+ batch stats)
    y1, s1, q1 = _conv1_stats(x_pad, w1, h=h, w=w, n_splits=n_splits)
    scale1, shift1 = _bn_scale_shift(s1, q1, g1, b1, m)

    # stage 2: bn1-apply + relu fused into conv2 (+ batch stats)
    y2, s2, q2 = _bn_relu_conv2_stats(y1, w2, scale1, shift1,
                                      h=h, w=w, n_splits=n_splits)
    scale2, shift2 = _bn_scale_shift(s2, q2, g2, b2, m)

    # stage 3: bn2-apply + identity residual (read from padded bf16 x) + relu
    out = _bn_add_relu(y2, x_pad, scale2, shift2, h=h, w=w)

    # Module returns NCHW f32; this transpose is one HBM pass and could be
    # dropped if the downstream consumer accepted NHWC.
    return jnp.transpose(out[..., :cout], (0, 3, 1, 2))


# ---------------------------- reference (plain JAX) ---------------------------

def _ref_conv(x_nchw, w_oihw):
    return jax.lax.conv_general_dilated(
        x_nchw, w_oihw, window_strides=(1, 1), padding=((1, 1), (1, 1)),
        dimension_numbers=("NCHW", "OIHW", "NCHW"))


def _ref_bn(y_nchw, gamma, beta):
    mean = jnp.mean(y_nchw, axis=(0, 2, 3), keepdims=True)
    var = jnp.mean((y_nchw - mean) ** 2, axis=(0, 2, 3), keepdims=True)
    xhat = (y_nchw - mean) * jax.lax.rsqrt(var + EPS)
    return gamma.reshape(1, -1, 1, 1) * xhat + beta.reshape(1, -1, 1, 1)


def basic_block_bn_reference(x_nchw, params):
    h = _ref_conv(x_nchw, params["w1"])
    h = jnp.maximum(_ref_bn(h, params["gamma1"], params["beta1"]), 0.0)
    h = _ref_conv(h, params["w2"])
    h = _ref_bn(h, params["gamma2"], params["beta2"])
    return jnp.maximum(h + x_nchw, 0.0)


# --------------------------------- init / main --------------------------------

def xavier_uniform(key, shape, gain):
    cout, cin, kh, kw = shape
    fan_in, fan_out = cin * kh * kw, cout * kh * kw
    bound = gain * jnp.sqrt(6.0 / (fan_in + fan_out))
    return jax.random.uniform(key, shape, jnp.float32, -bound, bound)


if __name__ == "__main__":
    # Small shapes consistent with the module: batch=2, channels=4, 16x16.
    N, C, H, W = 2, 4, 16, 16
    key = jax.random.PRNGKey(0)
    kx, k1, k2 = jax.random.split(key, 3)

    x = jax.random.normal(kx, (N, C, H, W), jnp.float32)
    params = {
        "w1": xavier_uniform(k1, (C, C, 3, 3), gain=5.0),   # conv1 weight
        "w2": xavier_uniform(k2, (C, C, 3, 3), gain=5.0),   # conv2 weight
        "gamma1": jnp.ones((1, C), jnp.float32),
        "beta1": jnp.zeros((1, C), jnp.float32),
        "gamma2": jnp.ones((1, C), jnp.float32),
        "beta2": jnp.zeros((1, C), jnp.float32),
    }

    fwd = jax.jit(basic_block_bn_forward)
    out = jax.block_until_ready(fwd(x, params))
    ref = jax.block_until_ready(basic_block_bn_reference(x, params))

    assert out.shape == (N, C, H, W)
    # bf16 MXU operands across both convs + bf16 residual -> bf16 tolerance
    # against the pure-f32 reference.
    assert jnp.allclose(out, ref, atol=5e-2, rtol=5e-2), "mismatch vs reference"

    print("KERNEL_OK")
</pallas_src>

<mosaic_0001>
module attributes {stable_mosaic.version = 11 : i64} {
  func.func @_conv1_stats_kernel(%arg0: i32, %arg1: i32, %arg2: memref<1x18x18x128xbf16, #tpu.memory_space<vmem>>, %arg3: memref<9x128x128xbf16, #tpu.memory_space<vmem>>, %arg4: memref<1x16x16x128xbf16, #tpu.memory_space<vmem>>, %arg5: memref<1x1x128xf32, #tpu.memory_space<vmem>>, %arg6: memref<1x1x128xf32, #tpu.memory_space<vmem>>) attributes {dimension_semantics = [#tpu.dimension_semantics<parallel>, #tpu.dimension_semantics<arbitrary>], iteration_bounds = array<i64: 2, 1>, scalar_prefetch = 0 : i64, scratch_operands = 0 : i64, tpu.core_type = #tpu.core_type<tc>, window_params = [{transform_indices = @transform_0, window_bounds = array<i64: 1, 18, 18, 128>}, {pipeline_mode = #tpu.pipeline_mode<synchronous>, transform_indices = @transform_1, window_bounds = array<i64: 9, 128, 128>}, {transform_indices = @transform_2, window_bounds = array<i64: 1, 16, 16, 128>}, {transform_indices = @transform_3, window_bounds = array<i64: 1, 1, 128>}, {transform_indices = @transform_4, window_bounds = array<i64: 1, 1, 128>}]} {
    %c0 = arith.constant 0 : index
    %c0_0 = arith.constant 0 : index
    %c0_1 = arith.constant 0 : index
    %c0_2 = arith.constant 0 : index
    %0 = vector.load %arg2[%c0, %c0_0, %c0_1, %c0_2] : memref<1x18x18x128xbf16, #tpu.memory_space<vmem>>, vector<1x18x18x128xbf16>
    %1 = vector.shape_cast %0 : vector<1x18x18x128xbf16> to vector<18x18x128xbf16>
    %2 = vector.extract_strided_slice %1 {offsets = [0, 0, 0], sizes = [16, 16, 128], strides = [1, 1, 1]} : vector<18x18x128xbf16> to vector<16x16x128xbf16>
    %3 = vector.shape_cast %2 : vector<16x16x128xbf16> to vector<256x128xbf16>
    %c0_3 = arith.constant 0 : index
    %c0_4 = arith.constant 0 : index
    %c0_5 = arith.constant 0 : index
    %4 = vector.load %arg3[%c0_3, %c0_4, %c0_5] : memref<9x128x128xbf16, #tpu.memory_space<vmem>>, vector<1x128x128xbf16>
    %5 = vector.shape_cast %4 : vector<1x128x128xbf16> to vector<128x128xbf16>
    %cst = arith.constant dense<0.000000e+00> : vector<256x128xf32>
    %6 = tpu.matmul %3, %5, %cst {dimension_numbers = #tpu.dot_dimension_numbers<[1], [0], [0], [1], [0, 0, 1, 1], [], []>} : vector<256x128xbf16>, vector<128x128xbf16>, vector<256x128xf32> -> vector<256x128xf32>
    %7 = vector.extract_strided_slice %1 {offsets = [0, 1, 0], sizes = [16, 16, 128], strides = [1, 1, 1]} : vector<18x18x128xbf16> to vector<16x16x128xbf16>
    %8 = vector.shape_cast %7 : vector<16x16x128xbf16> to vector<256x128xbf16>
    %c1 = arith.constant 1 : index
    %c0_6 = arith.constant 0 : index
    %c0_7 = arith.constant 0 : index
    %9 = vector.load %arg3[%c1, %c0_6, %c0_7] : memref<9x128x128xbf16, #tpu.memory_space<vmem>>, vector<1x128x128xbf16>
    %10 = vector.shape_cast %9 : vector<1x128x128xbf16> to vector<128x128xbf16>
    %cst_8 = arith.constant dense<0.000000e+00> : vector<256x128xf32>
    %11 = tpu.matmul %8, %10, %cst_8 {dimension_numbers = #tpu.dot_dimension_numbers<[1], [0], [0], [1], [0, 0, 1, 1], [], []>} : vector<256x128xbf16>, vector<128x128xbf16>, vector<256x128xf32> -> vector<256x128xf32>
    %12 = arith.addf %6, %11 : vector<256x128xf32>
    %13 = vector.extract_strided_slice %1 {offsets = [0, 2, 0], sizes = [16, 16, 128], strides = [1, 1, 1]} : vector<18x18x128xbf16> to vector<16x16x128xbf16>
    %14 = vector.shape_cast %13 : vector<16x16x128xbf16> to vector<256x128xbf16>
    %c2 = arith.constant 2 : index
    %c0_9 = arith.constant 0 : index
    %c0_10 = arith.constant 0 : index
    %15 = vector.load %arg3[%c2, %c0_9, %c0_10] : memref<9x128x128xbf16, #tpu.memory_space<vmem>>, vector<1x128x128xbf16>
    %16 = vector.shape_cast %15 : vector<1x128x128xbf16> to vector<128x128xbf16>
    %cst_11 = arith.constant dense<0.000000e+00> : vector<256x128xf32>
    %17 = tpu.matmul %14, %16, %cst_11 {dimension_numbers = #tpu.dot_dimension_numbers<[1], [0], [0], [1], [0, 0, 1, 1], [], []>} : vector<256x128xbf16>, vector<128x128xbf16>, vector<256x128xf32> -> vector<256x128xf32>
    %18 = arith.addf %12, %17 : vector<256x128xf32>
    %19 = vector.extract_strided_slice %1 {offsets = [1, 0, 0], sizes = [16, 16, 128], strides = [1, 1, 1]} : vector<18x18x128xbf16> to vector<16x16x128xbf16>
    %20 = vector.shape_cast %19 : vector<16x16x128xbf16> to vector<256x128xbf16>
    %c3 = arith.constant 3 : index
    %c0_12 = arith.constant 0 : index
    %c0_13 = arith.constant 0 : index
    %21 = vector.load %arg3[%c3, %c0_12, %c0_13] : memref<9x128x128xbf16, #tpu.memory_space<vmem>>, vector<1x128x128xbf16>
    %22 = vector.shape_cast %21 : vector<1x128x128xbf16> to vector<128x128xbf16>
    %cst_14 = arith.constant dense<0.000000e+00> : vector<256x128xf32>
    %23 = tpu.matmul %20, %22, %cst_14 {dimension_numbers = #tpu.dot_dimension_numbers<[1], [0], [0], [1], [0, 0, 1, 1], [], []>} : vector<256x128xbf16>, vector<128x128xbf16>, vector<256x128xf32> -> vector<256x128xf32>
    %24 = arith.addf %18, %23 : vector<256x128xf32>
    %25 = vector.extract_strided_slice %1 {offsets = [1, 1, 0], sizes = [16, 16, 128], strides = [1, 1, 1]} : vector<18x18x128xbf16> to vector<16x16x128xbf16>
    %26 = vector.shape_cast %25 : vector<16x16x128xbf16> to vector<256x128xbf16>
    %c4 = arith.constant 4 : index
    %c0_15 = arith.constant 0 : index
    %c0_16 = arith.constant 0 : index
    %27 = vector.load %arg3[%c4, %c0_15, %c0_16] : memref<9x128x128xbf16, #tpu.memory_space<vmem>>, vector<1x128x128xbf16>
    %28 = vector.shape_cast %27 : vector<1x128x128xbf16> to vector<128x128xbf16>
    %cst_17 = arith.constant dense<0.000000e+00> : vector<256x128xf32>
    %29 = tpu.matmul %26, %28, %cst_17 {dimension_numbers = #tpu.dot_dimension_numbers<[1], [0], [0], [1], [0, 0, 1, 1], [], []>} : vector<256x128xbf16>, vector<128x128xbf16>, vector<256x128xf32> -> vector<256x128xf32>
    %30 = arith.addf %24, %29 : vector<256x128xf32>
    %31 = vector.extract_strided_slice %1 {offsets = [1, 2, 0], sizes = [16, 16, 128], strides = [1, 1, 1]} : vector<18x18x128xbf16> to vector<16x16x128xbf16>
    %32 = vector.shape_cast %31 : vector<16x16x128xbf16> to vector<256x128xbf16>
    %c5 = arith.constant 5 : index
    %c0_18 = arith.constant 0 : index
    %c0_19 = arith.constant 0 : index
    %33 = vector.load %arg3[%c5, %c0_18, %c0_19] : memref<9x128x128xbf16, #tpu.memory_space<vmem>>, vector<1x128x128xbf16>
    %34 = vector.shape_cast %33 : vector<1x128x128xbf16> to vector<128x128xbf16>
    %cst_20 = arith.constant dense<0.000000e+00> : vector<256x128xf32>
    %35 = tpu.matmul %32, %34, %cst_20 {dimension_numbers = #tpu.dot_dimension_numbers<[1], [0], [0], [1], [0, 0, 1, 1], [], []>} : vector<256x128xbf16>, vector<128x128xbf16>, vector<256x128xf32> -> vector<256x128xf32>
    %36 = arith.addf %30, %35 : vector<256x128xf32>
    %37 = vector.extract_strided_slice %1 {offsets = [2, 0, 0], sizes = [16, 16, 128], strides = [1, 1, 1]} : vector<18x18x128xbf16> to vector<16x16x128xbf16>
    %38 = vector.shape_cast %37 : vector<16x16x128xbf16> to vector<256x128xbf16>
    %c6 = arith.constant 6 : index
    %c0_21 = arith.constant 0 : index
    %c0_22 = arith.constant 0 : index
    %39 = vector.load %arg3[%c6, %c0_21, %c0_22] : memref<9x128x128xbf16, #tpu.memory_space<vmem>>, vector<1x128x128xbf16>
    %40 = vector.shape_cast %39 : vector<1x128x128xbf16> to vector<128x128xbf16>
    %cst_23 = arith.constant dense<0.000000e+00> : vector<256x128xf32>
    %41 = tpu.matmul %38, %40, %cst_23 {dimension_numbers = #tpu.dot_dimension_numbers<[1], [0], [0], [1], [0, 0, 1, 1], [], []>} : vector<256x128xbf16>, vector<128x128xbf16>, vector<256x128xf32> -> vector<256x128xf32>
    %42 = arith.addf %36, %41 : vector<256x128xf32>
    %43 = vector.extract_strided_slice %1 {offsets = [2, 1, 0], sizes = [16, 16, 128], strides = [1, 1, 1]} : vector<18x18x128xbf16> to vector<16x16x128xbf16>
    %44 = vector.shape_cast %43 : vector<16x16x128xbf16> to vector<256x128xbf16>
    %c7 = arith.constant 7 : index
    %c0_24 = arith.constant 0 : index
    %c0_25 = arith.constant 0 : index
    %45 = vector.load %arg3[%c7, %c0_24, %c0_25] : memref<9x128x128xbf16, #tpu.memory_space<vmem>>, vector<1x128x128xbf16>
    %46 = vector.shape_cast %45 : vector<1x128x128xbf16> to vector<128x128xbf16>
    %cst_26 = arith.constant dense<0.000000e+00> : vector<256x128xf32>
    %47 = tpu.matmul %44, %46, %cst_26 {dimension_numbers = #tpu.dot_dimension_numbers<[1], [0], [0], [1], [0, 0, 1, 1], [], []>} : vector<256x128xbf16>, vector<128x128xbf16>, vector<256x128xf32> -> vector<256x128xf32>
    %48 = arith.addf %42, %47 : vector<256x128xf32>
    %49 = vector.extract_strided_slice %1 {offsets = [2, 2, 0], sizes = [16, 16, 128], strides = [1, 1, 1]} : vector<18x18x128xbf16> to vector<16x16x128xbf16>
    %50 = vector.shape_cast %49 : vector<16x16x128xbf16> to vector<256x128xbf16>
    %c8 = arith.constant 8 : index
    %c0_27 = arith.constant 0 : index
    %c0_28 = arith.constant 0 : index
    %51 = vector.load %arg3[%c8, %c0_27, %c0_28] : memref<9x128x128xbf16, #tpu.memory_space<vmem>>, vector<1x128x128xbf16>
    %52 = vector.shape_cast %51 : vector<1x128x128xbf16> to vector<128x128xbf16>
    %cst_29 = arith.constant dense<0.000000e+00> : vector<256x128xf32>
    %53 = tpu.matmul %50, %52, %cst_29 {dimension_numbers = #tpu.dot_dimension_numbers<[1], [0], [0], [1], [0, 0, 1, 1], [], []>} : vector<256x128xbf16>, vector<128x128xbf16>, vector<256x128xf32> -> vector<256x128xf32>
    %54 = arith.addf %48, %53 : vector<256x128xf32>
    %55 = vector.shape_cast %54 : vector<256x128xf32> to vector<16x16x128xf32>
    %56 = arith.truncf %55 : vector<16x16x128xf32> to vector<16x16x128xbf16>
    %c0_30 = arith.constant 0 : index
    %c0_31 = arith.constant 0 : index
    %c0_32 = arith.constant 0 : index
    %c0_33 = arith.constant 0 : index
    %57 = vector.load %arg4[%c0_30, %c0_31, %c0_32, %c0_33] : memref<1x16x16x128xbf16, #tpu.memory_space<vmem>>, vector<1x16x16x128xbf16>
    %58 = vector.shape_cast %57 : vector<1x16x16x128xbf16> to vector<16x16x128xbf16>
    %59 = vector.shape_cast %56 : vector<16x16x128xbf16> to vector<1x16x16x128xbf16>
    tpu.vector_store %arg4[%c0_30, %c0_31, %c0_32, %c0_33], %59 {strides = array<i32>} : memref<1x16x16x128xbf16, #tpu.memory_space<vmem>>, vector<1x16x16x128xbf16>,
    %c0_i32 = arith.constant 0 : i32
    %60 = arith.cmpi eq, %arg1, %c0_i32 : i32
    %61 = arith.extui %60 : i1 to i32
    %c0_i32_34 = arith.constant 0 : i32
    %62 = arith.cmpi ne, %61, %c0_i32_34 : i32
    scf.if %62 {
      %cst_49 = arith.constant 0.000000e+00 : f32
      %76 = vector.broadcast %cst_49 : f32 to vector<1x1x128xf32>
      %c0_50 = arith.constant 0 : index
      %c0_51 = arith.constant 0 : index
      %c0_52 = arith.constant 0 : index
      %77 = vector.load %arg5[%c0_50, %c0_51, %c0_52] : memref<1x1x128xf32, #tpu.memory_space<vmem>>, vector<1x1x128xf32>
      tpu.vector_store %arg5[%c0_50, %c0_51, %c0_52], %76 {strides = array<i32>} : memref<1x1x128xf32, #tpu.memory_space<vmem>>, vector<1x1x128xf32>,
      %cst_53 = arith.constant 0.000000e+00 : f32
      %78 = vector.broadcast %cst_53 : f32 to vector<1x1x128xf32>
      %c0_54 = arith.constant 0 : index
      %c0_55 = arith.constant 0 : index
      %c0_56 = arith.constant 0 : index
      %79 = vector.load %arg6[%c0_54, %c0_55, %c0_56] : memref<1x1x128xf32, #tpu.memory_space<vmem>>, vector<1x1x128xf32>
      tpu.vector_store %arg6[%c0_54, %c0_55, %c0_56], %78 {strides = array<i32>} : memref<1x1x128xf32, #tpu.memory_space<vmem>>, vector<1x1x128xf32>,
    } else {
    }
    %c0_35 = arith.constant 0 : index
    %c0_36 = arith.constant 0 : index
    %c0_37 = arith.constant 0 : index
    %63 = vector.load %arg5[%c0_35, %c0_36, %c0_37] : memref<1x1x128xf32, #tpu.memory_space<vmem>>, vector<1x1x128xf32>
    %cst_38 = arith.constant dense<0.000000e+00> : vector<128xf32>
    %64 = vector.multi_reduction <add>, %54, %cst_38 [0] : vector<256x128xf32> to vector<128xf32>
    %65 = vector.shape_cast %64 : vector<128xf32> to vector<1x128xf32>
    %66 = vector.shape_cast %65 : vector<1x128xf32> to vector<1x1x128xf32>
    %67 = arith.addf %63, %66 : vector<1x1x128xf32>
    %c0_39 = arith.constant 0 : index
    %c0_40 = arith.constant 0 : index
    %c0_41 = arith.constant 0 : index
    %68 = vector.load %arg5[%c0_39, %c0_40, %c0_41] : memref<1x1x128xf32, #tpu.memory_space<vmem>>, vector<1x1x128xf32>
    tpu.vector_store %arg5[%c0_39, %c0_40, %c0_41], %67 {strides = array<i32>} : memref<1x1x128xf32, #tpu.memory_space<vmem>>, vector<1x1x128xf32>,
    %c0_42 = arith.constant 0 : index
    %c0_43 = arith.constant 0 : index
    %c0_44 = arith.constant 0 : index
    %69 = vector.load %arg6[%c0_42, %c0_43, %c0_44] : memref<1x1x128xf32, #tpu.memory_space<vmem>>, vector<1x1x128xf32>
    %70 = arith.mulf %54, %54 : vector<256x128xf32>
    %cst_45 = arith.constant dense<0.000000e+00> : vector<128xf32>
    %71 = vector.multi_reduction <add>, %70, %cst_45 [0] : vector<256x128xf32> to vector<128xf32>
    %72 = vector.shape_cast %71 : vector<128xf32> to vector<1x128xf32>
    %73 = vector.shape_cast %72 : vector<1x128xf32> to vector<1x1x128xf32>
    %74 = arith.addf %69, %73 : vector<1x1x128xf32>
    %c0_46 = arith.constant 0 : index
    %c0_47 = arith.constant 0 : index
    %c0_48 = arith.constant 0 : index
    %75 = vector.load %arg6[%c0_46, %c0_47, %c0_48] : memref<1x1x128xf32, #tpu.memory_space<vmem>>, vector<1x1x128xf32>
    tpu.vector_store %arg6[%c0_46, %c0_47, %c0_48], %74 {strides = array<i32>} : memref<1x1x128xf32, #tpu.memory_space<vmem>>, vector<1x1x128xf32>,
    return
  }
  func.func @transform_0(%arg0: i32, %arg1: i32) -> (i32, i32, i32, i32) {
    %c1_i32 = arith.constant 1 : i32
    %0 = arith.muli %arg0, %c1_i32 : i32
    %1 = arith.addi %0, %arg1 : i32
    %c0_i32 = arith.constant 0 : i32
    %c0_i32_0 = arith.constant 0 : i32
    %c0_i32_1 = arith.constant 0 : i32
    %c0_i32_2 = arith.constant 0 : i32
    return %1, %c0_i32, %c0_i32_0, %c0_i32_1 : i32, i32, i32, i32
  }
  func.func @transform_1(%arg0: i32, %arg1: i32) -> (i32, i32, i32) {
    %c0_i32 = arith.constant 0 : i32
    %c0_i32_0 = arith.constant 0 : i32
    %c0_i32_1 = arith.constant 0 : i32
    %c0_i32_2 = arith.constant 0 : i32
    return %c0_i32, %c0_i32_0, %c0_i32_1 : i32, i32, i32
  }
  func.func @transform_2(%arg0: i32, %arg1: i32) -> (i32, i32, i32, i32) {
    %c1_i32 = arith.constant 1 : i32
    %0 = arith.muli %arg0, %c1_i32 : i32
    %1 = arith.addi %0, %arg1 : i32
    %c0_i32 = arith.constant 0 : i32
    %c0_i32_0 = arith.constant 0 : i32
    %c0_i32_1 = arith.constant 0 : i32
    %c0_i32_2 = arith.constant 0 : i32
    return %1, %c0_i32, %c0_i32_0, %c0_i32_1 : i32, i32, i32, i32
  }
  func.func @transform_3(%arg0: i32, %arg1: i32) -> (i32, i32, i32) {
    %c0_i32 = arith.constant 0 : i32
    %c0_i32_0 = arith.constant 0 : i32
    %c0_i32_1 = arith.constant 0 : i32
    return %arg0, %c0_i32, %c0_i32_0 : i32, i32, i32
  }
  func.func @transform_4(%arg0: i32, %arg1: i32) -> (i32, i32, i32) {
    %c0_i32 = arith.constant 0 : i32
    %c0_i32_0 = arith.constant 0 : i32
    %c0_i32_1 = arith.constant 0 : i32
    return %arg0, %c0_i32, %c0_i32_0 : i32, i32, i32
  }
}

module attributes {stable_mosaic.version = 11 : i64} {
  func.func @_bn_relu_conv2_stats_kernel(%arg0: i32, %arg1: i32, %arg2: memref<1x16x16x128xbf16, #tpu.memory_space<vmem>>, %arg3: memref<9x128x128xbf16, #tpu.memory_space<vmem>>, %arg4: memref<1x128xf32, #tpu.memory_space<vmem>>, %arg5: memref<1x128xf32, #tpu.memory_space<vmem>>, %arg6: memref<1x16x16x128xbf16, #tpu.memory_space<vmem>>, %arg7: memref<1x1x128xf32, #tpu.memory_space<vmem>>, %arg8: memref<1x1x128xf32, #tpu.memory_space<vmem>>, %arg9: memref<18x18x128xbf16, #tpu.memory_space<vmem>>) attributes {dimension_semantics = [#tpu.dimension_semantics<parallel>, #tpu.dimension_semantics<arbitrary>], iteration_bounds = array<i64: 2, 1>, scalar_prefetch = 0 : i64, scratch_operands = 1 : i64, tpu.core_type = #tpu.core_type<tc>, window_params = [{transform_indices = @transform_0, window_bounds = array<i64: 1, 16, 16, 128>}, {pipeline_mode = #tpu.pipeline_mode<synchronous>, transform_indices = @transform_1, window_bounds = array<i64: 9, 128, 128>}, {pipeline_mode = #tpu.pipeline_mode<synchronous>, transform_indices = @transform_2, window_bounds = array<i64: 1, 128>}, {pipeline_mode = #tpu.pipeline_mode<synchronous>, transform_indices = @transform_3, window_bounds = array<i64: 1, 128>}, {transform_indices = @transform_4, window_bounds = array<i64: 1, 16, 16, 128>}, {transform_indices = @transform_5, window_bounds = array<i64: 1, 1, 128>}, {transform_indices = @transform_6, window_bounds = array<i64: 1, 1, 128>}]} {
    %c0 = arith.constant 0 : index
    %c0_0 = arith.constant 0 : index
    %c0_1 = arith.constant 0 : index
    %c0_2 = arith.constant 0 : index
    %0 = vector.load %arg2[%c0, %c0_0, %c0_1, %c0_2] : memref<1x16x16x128xbf16, #tpu.memory_space<vmem>>, vector<1x16x16x128xbf16>
    %1 = vector.shape_cast %0 : vector<1x16x16x128xbf16> to vector<16x16x128xbf16>
    %2 = arith.extf %1 : vector<16x16x128xbf16> to vector<16x16x128xf32>
    %c0_3 = arith.constant 0 : index
    %c0_4 = arith.constant 0 : index
    %3 = vector.load %arg4[%c0_3, %c0_4] : memref<1x128xf32, #tpu.memory_space<vmem>>, vector<1x128xf32>
    %4 = vector.shape_cast %3 : vector<1x128xf32> to vector<1x1x128xf32>
    %c0_5 = arith.constant 0 : index
    %c0_6 = arith.constant 0 : index
    %5 = vector.load %arg5[%c0_5, %c0_6] : memref<1x128xf32, #tpu.memory_space<vmem>>, vector<1x128xf32>
    %6 = vector.shape_cast %5 : vector<1x128xf32> to vector<1x1x128xf32>
    %7 = vector.broadcast %4 : vector<1x1x128xf32> to vector<16x16x128xf32>
    %8 = arith.mulf %2, %7 : vector<16x16x128xf32>
    %9 = vector.broadcast %6 : vector<1x1x128xf32> to vector<16x16x128xf32>
    %10 = arith.addf %8, %9 : vector<16x16x128xf32>
    %cst = arith.constant 0.000000e+00 : f32
    %11 = vector.broadcast %cst : f32 to vector<16x16x128xf32>
    %12 = arith.maximumf %10, %11 : vector<16x16x128xf32>
    %13 = arith.truncf %12 : vector<16x16x128xf32> to vector<16x16x128xbf16>
    %cst_7 = arith.constant 0.000000e+00 : bf16
    %14 = vector.broadcast %cst_7 : bf16 to vector<18x18x128xbf16>
    %c0_8 = arith.constant 0 : index
    %c0_9 = arith.constant 0 : index
    %c0_10 = arith.constant 0 : index
    %15 = vector.load %arg9[%c0_8, %c0_9, %c0_10] : memref<18x18x128xbf16, #tpu.memory_space<vmem>>, vector<18x18x128xbf16>
    tpu.vector_store %arg9[%c0_8, %c0_9, %c0_10], %14 {strides = array<i32>} : memref<18x18x128xbf16, #tpu.memory_space<vmem>>, vector<18x18x128xbf16>,
    %c1 = arith.constant 1 : index
    %c1_11 = arith.constant 1 : index
    %c0_12 = arith.constant 0 : index
    %16 = vector.load %arg9[%c1, %c1_11, %c0_12] : memref<18x18x128xbf16, #tpu.memory_space<vmem>>, vector<16x16x128xbf16>
    tpu.vector_store %arg9[%c1, %c1_11, %c0_12], %13 {strides = array<i32>} : memref<18x18x128xbf16, #tpu.memory_space<vmem>>, vector<16x16x128xbf16>,
    %c0_13 = arith.constant 0 : index
    %c0_14 = arith.constant 0 : index
    %c0_15 = arith.constant 0 : index
    %17 = vector.load %arg9[%c0_13, %c0_14, %c0_15] : memref<18x18x128xbf16, #tpu.memory_space<vmem>>, vector<18x18x128xbf16>
    %18 = vector.extract_strided_slice %17 {offsets = [0, 0, 0], sizes = [16, 16, 128], strides = [1, 1, 1]} : vector<18x18x128xbf16> to vector<16x16x128xbf16>
    %19 = vector.shape_cast %18 : vector<16x16x128xbf16> to vector<256x128xbf16>
    %c0_16 = arith.constant 0 : index
    %c0_17 = arith.constant 0 : index
    %c0_18 = arith.constant 0 : index
    %20 = vector.load %arg3[%c0_16, %c0_17, %c0_18] : memref<9x128x128xbf16, #tpu.memory_space<vmem>>, vector<1x128x128xbf16>
    %21 = vector.shape_cast %20 : vector<1x128x128xbf16> to vector<128x128xbf16>
    %cst_19 = arith.constant dense<0.000000e+00> : vector<256x128xf32>
    %22 = tpu.matmul %19, %21, %cst_19 {dimension_numbers = #tpu.dot_dimension_numbers<[1], [0], [0], [1], [0, 0, 1, 1], [], []>} : vector<256x128xbf16>, vector<128x128xbf16>, vector<256x128xf32> -> vector<256x128xf32>
    %23 = vector.extract_strided_slice %17 {offsets = [0, 1, 0], sizes = [16, 16, 128], strides = [1, 1, 1]} : vector<18x18x128xbf16> to vector<16x16x128xbf16>
    %24 = vector.shape_cast %23 : vector<16x16x128xbf16> to vector<256x128xbf16>
    %c1_20 = arith.constant 1 : index
    %c0_21 = arith.constant 0 : index
    %c0_22 = arith.constant 0 : index
    %25 = vector.load %arg3[%c1_20, %c0_21, %c0_22] : memref<9x128x128xbf16, #tpu.memory_space<vmem>>, vector<1x128x128xbf16>
    %26 = vector.shape_cast %25 : vector<1x128x128xbf16> to vector<128x128xbf16>
    %cst_23 = arith.constant dense<0.000000e+00> : vector<256x128xf32>
    %27 = tpu.matmul %24, %26, %cst_23 {dimension_numbers = #tpu.dot_dimension_numbers<[1], [0], [0], [1], [0, 0, 1, 1], [], []>} : vector<256x128xbf16>, vector<128x128xbf16>, vector<256x128xf32> -> vector<256x128xf32>
    %28 = arith.addf %22, %27 : vector<256x128xf32>
    %29 = vector.extract_strided_slice %17 {offsets = [0, 2, 0], sizes = [16, 16, 128], strides = [1, 1, 1]} : vector<18x18x128xbf16> to vector<16x16x128xbf16>
    %30 = vector.shape_cast %29 : vector<16x16x128xbf16> to vector<256x128xbf16>
    %c2 = arith.constant 2 : index
    %c0_24 = arith.constant 0 : index
    %c0_25 = arith.constant 0 : index
    %31 = vector.load %arg3[%c2, %c0_24, %c0_25] : memref<9x128x128xbf16, #tpu.memory_space<vmem>>, vector<1x128x128xbf16>
    %32 = vector.shape_cast %31 : vector<1x128x128xbf16> to vector<128x128xbf16>
    %cst_26 = arith.constant dense<0.000000e+00> : vector<256x128xf32>
    %33 = tpu.matmul %30, %32, %cst_26 {dimension_numbers = #tpu.dot_dimension_numbers<[1], [0], [0], [1], [0, 0, 1, 1], [], []>} : vector<256x128xbf16>, vector<128x128xbf16>, vector<256x128xf32> -> vector<256x128xf32>
    %34 = arith.addf %28, %33 : vector<256x128xf32>
    %35 = vector.extract_strided_slice %17 {offsets = [1, 0, 0], sizes = [16, 16, 128], strides = [1, 1, 1]} : vector<18x18x128xbf16> to vector<16x16x128xbf16>
    %36 = vector.shape_cast %35 : vector<16x16x128xbf16> to vector<256x128xbf16>
    %c3 = arith.constant 3 : index
    %c0_27 = arith.constant 0 : index
    %c0_28 = arith.constant 0 : index
    %37 = vector.load %arg3[%c3, %c0_27, %c0_28] : memref<9x128x128xbf16, #tpu.memory_space<vmem>>, vector<1x128x128xbf16>
    %38 = vector.shape_cast %37 : vector<1x128x128xbf16> to vector<128x128xbf16>
    %cst_29 = arith.constant dense<0.000000e+00> : vector<256x128xf32>
    %39 = tpu.matmul %36, %38, %cst_29 {dimension_numbers = #tpu.dot_dimension_numbers<[1], [0], [0], [1], [0, 0, 1, 1], [], []>} : vector<256x128xbf16>, vector<128x128xbf16>, vector<256x128xf32> -> vector<256x128xf32>
    %40 = arith.addf %34, %39 : vector<256x128xf32>
    %41 = vector.extract_strided_slice %17 {offsets = [1, 1, 0], sizes = [16, 16, 128], strides = [1, 1, 1]} : vector<18x18x128xbf16> to vector<16x16x128xbf16>
    %42 = vector.shape_cast %41 : vector<16x16x128xbf16> to vector<256x128xbf16>
    %c4 = arith.constant 4 : index
    %c0_30 = arith.constant 0 : index
    %c0_31 = arith.constant 0 : index
    %43 = vector.load %arg3[%c4, %c0_30, %c0_31] : memref<9x128x128xbf16, #tpu.memory_space<vmem>>, vector<1x128x128xbf16>
    %44 = vector.shape_cast %43 : vector<1x128x128xbf16> to vector<128x128xbf16>
    %cst_32 = arith.constant dense<0.000000e+00> : vector<256x128xf32>
    %45 = tpu.matmul %42, %44, %cst_32 {dimension_numbers = #tpu.dot_dimension_numbers<[1], [0], [0], [1], [0, 0, 1, 1], [], []>} : vector<256x128xbf16>, vector<128x128xbf16>, vector<256x128xf32> -> vector<256x128xf32>
    %46 = arith.addf %40, %45 : vector<256x128xf32>
    %47 = vector.extract_strided_slice %17 {offsets = [1, 2, 0], sizes = [16, 16, 128], strides = [1, 1, 1]} : vector<18x18x128xbf16> to vector<16x16x128xbf16>
    %48 = vector.shape_cast %47 : vector<16x16x128xbf16> to vector<256x128xbf16>
    %c5 = arith.constant 5 : index
    %c0_33 = arith.constant 0 : index
    %c0_34 = arith.constant 0 : index
    %49 = vector.load %arg3[%c5, %c0_33, %c0_34] : memref<9x128x128xbf16, #tpu.memory_space<vmem>>, vector<1x128x128xbf16>
    %50 = vector.shape_cast %49 : vector<1x128x128xbf16> to vector<128x128xbf16>
    %cst_35 = arith.constant dense<0.000000e+00> : vector<256x128xf32>
    %51 = tpu.matmul %48, %50, %cst_35 {dimension_numbers = #tpu.dot_dimension_numbers<[1], [0], [0], [1], [0, 0, 1, 1], [], []>} : vector<256x128xbf16>, vector<128x128xbf16>, vector<256x128xf32> -> vector<256x128xf32>
    %52 = arith.addf %46, %51 : vector<256x128xf32>
    %53 = vector.extract_strided_slice %17 {offsets = [2, 0, 0], sizes = [16, 16, 128], strides = [1, 1, 1]} : vector<18x18x128xbf16> to vector<16x16x128xbf16>
    %54 = vector.shape_cast %53 : vector<16x16x128xbf16> to vector<256x128xbf16>
    %c6 = arith.constant 6 : index
    %c0_36 = arith.constant 0 : index
    %c0_37 = arith.constant 0 : index
    %55 = vector.load %arg3[%c6, %c0_36, %c0_37] : memref<9x128x128xbf16, #tpu.memory_space<vmem>>, vector<1x128x128xbf16>
    %56 = vector.shape_cast %55 : vector<1x128x128xbf16> to vector<128x128xbf16>
    %cst_38 = arith.constant dense<0.000000e+00> : vector<256x128xf32>
    %57 = tpu.matmul %54, %56, %cst_38 {dimension_numbers = #tpu.dot_dimension_numbers<[1], [0], [0], [1], [0, 0, 1, 1], [], []>} : vector<256x128xbf16>, vector<128x128xbf16>, vector<256x128xf32> -> vector<256x128xf32>
    %58 = arith.addf %52, %57 : vector<256x128xf32>
    %59 = vector.extract_strided_slice %17 {offsets = [2, 1, 0], sizes = [16, 16, 128], strides = [1, 1, 1]} : vector<18x18x128xbf16> to vector<16x16x128xbf16>
    %60 = vector.shape_cast %59 : vector<16x16x128xbf16> to vector<256x128xbf16>
    %c7 = arith.constant 7 : index
    %c0_39 = arith.constant 0 : index
    %c0_40 = arith.constant 0 : index
    %61 = vector.load %arg3[%c7, %c0_39, %c0_40] : memref<9x128x128xbf16, #tpu.memory_space<vmem>>, vector<1x128x128xbf16>
    %62 = vector.shape_cast %61 : vector<1x128x128xbf16> to vector<128x128xbf16>
    %cst_41 = arith.constant dense<0.000000e+00> : vector<256x128xf32>
    %63 = tpu.matmul %60, %62, %cst_41 {dimension_numbers = #tpu.dot_dimension_numbers<[1], [0], [0], [1], [0, 0, 1, 1], [], []>} : vector<256x128xbf16>, vector<128x128xbf16>, vector<256x128xf32> -> vector<256x128xf32>
    %64 = arith.addf %58, %63 : vector<256x128xf32>
    %65 = vector.extract_strided_slice %17 {offsets = [2, 2, 0], sizes = [16, 16, 128], strides = [1, 1, 1]} : vector<18x18x128xbf16> to vector<16x16x128xbf16>
    %66 = vector.shape_cast %65 : vector<16x16x128xbf16> to vector<256x128xbf16>
    %c8 = arith.constant 8 : index
    %c0_42 = arith.constant 0 : index
    %c0_43 = arith.constant 0 : index
    %67 = vector.load %arg3[%c8, %c0_42, %c0_43] : memref<9x128x128xbf16, #tpu.memory_space<vmem>>, vector<1x128x128xbf16>
    %68 = vector.shape_cast %67 : vector<1x128x128xbf16> to vector<128x128xbf16>
    %cst_44 = arith.constant dense<0.000000e+00> : vector<256x128xf32>
    %69 = tpu.matmul %66, %68, %cst_44 {dimension_numbers = #tpu.dot_dimension_numbers<[1], [0], [0], [1], [0, 0, 1, 1], [], []>} : vector<256x128xbf16>, vector<128x128xbf16>, vector<256x128xf32> -> vector<256x128xf32>
    %70 = arith.addf %64, %69 : vector<256x128xf32>
    %71 = vector.shape_cast %70 : vector<256x128xf32> to vector<16x16x128xf32>
    %72 = arith.truncf %71 : vector<16x16x128xf32> to vector<16x16x128xbf16>
    %c0_45 = arith.constant 0 : index
    %c0_46 = arith.constant 0 : index
    %c0_47 = arith.constant 0 : index
    %c0_48 = arith.constant 0 : index
    %73 = vector.load %arg6[%c0_45, %c0_46, %c0_47, %c0_48] : memref<1x16x16x128xbf16, #tpu.memory_space<vmem>>, vector<1x16x16x128xbf16>
    %74 = vector.shape_cast %73 : vector<1x16x16x128xbf16> to vector<16x16x128xbf16>
    %75 = vector.shape_cast %72 : vector<16x16x128xbf16> to vector<1x16x16x128xbf16>
    tpu.vector_store %arg6[%c0_45, %c0_46, %c0_47, %c0_48], %75 {strides = array<i32>} : memref<1x16x16x128xbf16, #tpu.memory_space<vmem>>, vector<1x16x16x128xbf16>,
    %c0_i32 = arith.constant 0 : i32
    %76 = arith.cmpi eq, %arg1, %c0_i32 : i32
    %77 = arith.extui %76 : i1 to i32
    %c0_i32_49 = arith.constant 0 : i32
    %78 = arith.cmpi ne, %77, %c0_i32_49 : i32
    scf.if %78 {
      %cst_64 = arith.constant 0.000000e+00 : f32
      %92 = vector.broadcast %cst_64 : f32 to vector<1x1x128xf32>
      %c0_65 = arith.constant 0 : index
      %c0_66 = arith.constant 0 : index
      %c0_67 = arith.constant 0 : index
      %93 = vector.load %arg7[%c0_65, %c0_66, %c0_67] : memref<1x1x128xf32, #tpu.memory_space<vmem>>, vector<1x1x128xf32>
      tpu.vector_store %arg7[%c0_65, %c0_66, %c0_67], %92 {strides = array<i32>} : memref<1x1x128xf32, #tpu.memory_space<vmem>>, vector<1x1x128xf32>,
      %cst_68 = arith.constant 0.000000e+00 : f32
      %94 = vector.broadcast %cst_68 : f32 to vector<1x1x128xf32>
      %c0_69 = arith.constant 0 : index
      %c0_70 = arith.constant 0 : index
      %c0_71 = arith.constant 0 : index
      %95 = vector.load %arg8[%c0_69, %c0_70, %c0_71] : memref<1x1x128xf32, #tpu.memory_space<vmem>>, vector<1x1x128xf32>
      tpu.vector_store %arg8[%c0_69, %c0_70, %c0_71], %94 {strides = array<i32>} : memref<1x1x128xf32, #tpu.memory_space<vmem>>, vector<1x1x128xf32>,
    } else {
    }
    %c0_50 = arith.constant 0 : index
    %c0_51 = arith.constant 0 : index
    %c0_52 = arith.constant 0 : index
    %79 = vector.load %arg7[%c0_50, %c0_51, %c0_52] : memref<1x1x128xf32, #tpu.memory_space<vmem>>, vector<1x1x128xf32>
    %cst_53 = arith.constant dense<0.000000e+00> : vector<128xf32>
    %80 = vector.multi_reduction <add>, %70, %cst_53 [0] : vector<256x128xf32> to vector<128xf32>
    %81 = vector.shape_cast %80 : vector<128xf32> to vector<1x128xf32>
    %82 = vector.shape_cast %81 : vector<1x128xf32> to vector<1x1x128xf32>
    %83 = arith.addf %79, %82 : vector<1x1x128xf32>
    %c0_54 = arith.constant 0 : index
    %c0_55 = arith.constant 0 : index
    %c0_56 = arith.constant 0 : index
    %84 = vector.load %arg7[%c0_54, %c0_55, %c0_56] : memref<1x1x128xf32, #tpu.memory_space<vmem>>, vector<1x1x128xf32>
    tpu.vector_store %arg7[%c0_54, %c0_55, %c0_56], %83 {strides = array<i32>} : memref<1x1x128xf32, #tpu.memory_space<vmem>>, vector<1x1x128xf32>,
    %c0_57 = arith.constant 0 : index
    %c0_58 = arith.constant 0 : index
    %c0_59 = arith.constant 0 : index
    %85 = vector.load %arg8[%c0_57, %c0_58, %c0_59] : memref<1x1x128xf32, #tpu.memory_space<vmem>>, vector<1x1x128xf32>
    %86 = arith.mulf %70, %70 : vector<256x128xf32>
    %cst_60 = arith.constant dense<0.000000e+00> : vector<128xf32>
    %87 = vector.multi_reduction <add>, %86, %cst_60 [0] : vector<256x128xf32> to vector<128xf32>
    %88 = vector.shape_cast %87 : vector<128xf32> to vector<1x128xf32>
    %89 = vector.shape_cast %88 : vector<1x128xf32> to vector<1x1x128xf32>
    %90 = arith.addf %85, %89 : vector<1x1x128xf32>
    %c0_61 = arith.constant 0 : index
    %c0_62 = arith.constant 0 : index
    %c0_63 = arith.constant 0 : index
    %91 = vector.load %arg8[%c0_61, %c0_62, %c0_63] : memref<1x1x128xf32, #tpu.memory_space<vmem>>, vector<1x1x128xf32>
    tpu.vector_store %arg8[%c0_61, %c0_62, %c0_63], %90 {strides = array<i32>} : memref<1x1x128xf32, #tpu.memory_space<vmem>>, vector<1x1x128xf32>,
    return
  }
  func.func @transform_0(%arg0: i32, %arg1: i32) -> (i32, i32, i32, i32) {
    %c1_i32 = arith.constant 1 : i32
    %0 = arith.muli %arg0, %c1_i32 : i32
    %1 = arith.addi %0, %arg1 : i32
    %c0_i32 = arith.constant 0 : i32
    %c0_i32_0 = arith.constant 0 : i32
    %c0_i32_1 = arith.constant 0 : i32
    %c0_i32_2 = arith.constant 0 : i32
    return %1, %c0_i32, %c0_i32_0, %c0_i32_1 : i32, i32, i32, i32
  }
  func.func @transform_1(%arg0: i32, %arg1: i32) -> (i32, i32, i32) {
    %c0_i32 = arith.constant 0 : i32
    %c0_i32_0 = arith.constant 0 : i32
    %c0_i32_1 = arith.constant 0 : i32
    %c0_i32_2 = arith.constant 0 : i32
    return %c0_i32, %c0_i32_0, %c0_i32_1 : i32, i32, i32
  }
  func.func @transform_2(%arg0: i32, %arg1: i32) -> (i32, i32) {
    %c0_i32 = arith.constant 0 : i32
    %c0_i32_0 = arith.constant 0 : i32
    %c0_i32_1 = arith.constant 0 : i32
    return %c0_i32, %c0_i32_0 : i32, i32
  }
  func.func @transform_3(%arg0: i32, %arg1: i32) -> (i32, i32) {
    %c0_i32 = arith.constant 0 : i32
    %c0_i32_0 = arith.constant 0 : i32
    %c0_i32_1 = arith.constant 0 : i32
    return %c0_i32, %c0_i32_0 : i32, i32
  }
  func.func @transform_4(%arg0: i32, %arg1: i32) -> (i32, i32, i32, i32) {
    %c1_i32 = arith.constant 1 : i32
    %0 = arith.muli %arg0, %c1_i32 : i32
    %1 = arith.addi %0, %arg1 : i32
    %c0_i32 = arith.constant 0 : i32
    %c0_i32_0 = arith.constant 0 : i32
    %c0_i32_1 = arith.constant 0 : i32
    %c0_i32_2 = arith.constant 0 : i32
    return %1, %c0_i32, %c0_i32_0, %c0_i32_1 : i32, i32, i32, i32
  }
  func.func @transform_5(%arg0: i32, %arg1: i32) -> (i32, i32, i32) {
    %c0_i32 = arith.constant 0 : i32
    %c0_i32_0 = arith.constant 0 : i32
    %c0_i32_1 = arith.constant 0 : i32
    return %arg0, %c0_i32, %c0_i32_0 : i32, i32, i32
  }
  func.func @transform_6(%arg0: i32, %arg1: i32) -> (i32, i32, i32) {
    %c0_i32 = arith.constant 0 : i32
    %c0_i32_0 = arith.constant 0 : i32
    %c0_i32_1 = arith.constant 0 : i32
    return %arg0, %c0_i32, %c0_i32_0 : i32, i32, i32
  }
}

module attributes {stable_mosaic.version = 11 : i64} {
  func.func @_bn_add_relu_kernel(%arg0: i32, %arg1: memref<2x16x16x128xbf16, #tpu.memory_space<vmem>>, %arg2: memref<2x18x18x128xbf16, #tpu.memory_space<vmem>>, %arg3: memref<1x128xf32, #tpu.memory_space<vmem>>, %arg4: memref<1x128xf32, #tpu.memory_space<vmem>>, %arg5: memref<2x16x16x128xf32, #tpu.memory_space<vmem>>) attributes {dimension_semantics = [#tpu.dimension_semantics<parallel>], iteration_bounds = array<i64: 1>, scalar_prefetch = 0 : i64, scratch_operands = 0 : i64, tpu.core_type = #tpu.core_type<tc>, window_params = [{transform_indices = @transform_0, window_bounds = array<i64: 2, 16, 16, 128>}, {transform_indices = @transform_1, window_bounds = array<i64: 2, 18, 18, 128>}, {pipeline_mode = #tpu.pipeline_mode<synchronous>, transform_indices = @transform_2, window_bounds = array<i64: 1, 128>}, {pipeline_mode = #tpu.pipeline_mode<synchronous>, transform_indices = @transform_3, window_bounds = array<i64: 1, 128>}, {transform_indices = @transform_4, window_bounds = array<i64: 2, 16, 16, 128>}]} {
    %c0 = arith.constant 0 : index
    %c0_0 = arith.constant 0 : index
    %c0_1 = arith.constant 0 : index
    %c0_2 = arith.constant 0 : index
    %0 = vector.load %arg1[%c0, %c0_0, %c0_1, %c0_2] : memref<2x16x16x128xbf16, #tpu.memory_space<vmem>>, vector<2x16x16x128xbf16>
    %1 = arith.extf %0 : vector<2x16x16x128xbf16> to vector<2x16x16x128xf32>
    %c0_3 = arith.constant 0 : index
    %c0_4 = arith.constant 0 : index
    %2 = vector.load %arg3[%c0_3, %c0_4] : memref<1x128xf32, #tpu.memory_space<vmem>>, vector<1x128xf32>
    %3 = vector.shape_cast %2 : vector<1x128xf32> to vector<1x1x1x128xf32>
    %c0_5 = arith.constant 0 : index
    %c0_6 = arith.constant 0 : index
    %4 = vector.load %arg4[%c0_5, %c0_6] : memref<1x128xf32, #tpu.memory_space<vmem>>, vector<1x128xf32>
    %5 = vector.shape_cast %4 : vector<1x128xf32> to vector<1x1x1x128xf32>
    %c0_7 = arith.constant 0 : index
    %c0_8 = arith.constant 0 : index
    %c0_9 = arith.constant 0 : index
    %c0_10 = arith.constant 0 : index
    %6 = vector.load %arg2[%c0_7, %c0_8, %c0_9, %c0_10] : memref<2x18x18x128xbf16, #tpu.memory_space<vmem>>, vector<2x18x18x128xbf16>
    %7 = vector.extract_strided_slice %6 {offsets = [0, 1, 1, 0], sizes = [2, 16, 16, 128], strides = [1, 1, 1, 1]} : vector<2x18x18x128xbf16> to vector<2x16x16x128xbf16>
    %8 = arith.extf %7 : vector<2x16x16x128xbf16> to vector<2x16x16x128xf32>
    %9 = vector.broadcast %3 : vector<1x1x1x128xf32> to vector<2x16x16x128xf32>
    %10 = arith.mulf %1, %9 : vector<2x16x16x128xf32>
    %11 = vector.broadcast %5 : vector<1x1x1x128xf32> to vector<2x16x16x128xf32>
    %12 = arith.addf %10, %11 : vector<2x16x16x128xf32>
    %13 = arith.addf %12, %8 : vector<2x16x16x128xf32>
    %cst = arith.constant 0.000000e+00 : f32
    %14 = vector.broadcast %cst : f32 to vector<2x16x16x128xf32>
    %15 = arith.maximumf %13, %14 : vector<2x16x16x128xf32>
    %c0_11 = arith.constant 0 : index
    %c0_12 = arith.constant 0 : index
    %c0_13 = arith.constant 0 : index
    %c0_14 = arith.constant 0 : index
    %16 = vector.load %arg5[%c0_11, %c0_12, %c0_13, %c0_14] : memref<2x16x16x128xf32, #tpu.memory_space<vmem>>, vector<2x16x16x128xf32>
    tpu.vector_store %arg5[%c0_11, %c0_12, %c0_13, %c0_14], %15 {strides = array<i32>} : memref<2x16x16x128xf32, #tpu.memory_space<vmem>>, vector<2x16x16x128xf32>,
    return
  }
  func.func @transform_0(%arg0: i32) -> (i32, i32, i32, i32) {
    %c0_i32 = arith.constant 0 : i32
    %c0_i32_0 = arith.constant 0 : i32
    %c0_i32_1 = arith.constant 0 : i32
    %c0_i32_2 = arith.constant 0 : i32
    return %arg0, %c0_i32, %c0_i32_0, %c0_i32_1 : i32, i32, i32, i32
  }
  func.func @transform_1(%arg0: i32) -> (i32, i32, i32, i32) {
    %c0_i32 = arith.constant 0 : i32
    %c0_i32_0 = arith.constant 0 : i32
    %c0_i32_1 = arith.constant 0 : i32
    %c0_i32_2 = arith.constant 0 : i32
    return %arg0, %c0_i32, %c0_i32_0, %c0_i32_1 : i32, i32, i32, i32
  }
  func.func @transform_2(%arg0: i32) -> (i32, i32) {
    %c0_i32 = arith.constant 0 : i32
    %c0_i32_0 = arith.constant 0 : i32
    %c0_i32_1 = arith.constant 0 : i32
    return %c0_i32, %c0_i32_0 : i32, i32
  }
  func.func @transform_3(%arg0: i32) -> (i32, i32) {
    %c0_i32 = arith.constant 0 : i32
    %c0_i32_0 = arith.constant 0 : i32
    %c0_i32_1 = arith.constant 0 : i32
    return %c0_i32, %c0_i32_0 : i32, i32
  }
  func.func @transform_4(%arg0: i32) -> (i32, i32, i32, i32) {
    %c0_i32 = arith.constant 0 : i32
    %c0_i32_0 = arith.constant 0 : i32
    %c0_i32_1 = arith.constant 0 : i32
    %c0_i32_2 = arith.constant 0 : i32
    return %arg0, %c0_i32, %c0_i32_0, %c0_i32_1 : i32, i32, i32, i32
  }
}

</mosaic_0001>

<bundles_post_ra>
// kernel: basic_block_bn_forward.5
= control target key start
LH: loop header
LB: loop body
LE: loop exit
PB: predicated region body
PF: predicated region fallthrough
CT: control target
= control target key end

     0   :  { %vm575_vm0 = vcmask 1046528   ;;  %s1956_s0 = inlined_call_operand.vmem [shape: bf16[2,16,16,128], index: 0, kind: input, shape index: {}]   ;;  %s1957_s1 = inlined_call_operand.vmem [shape: bf16[2,18,18,128], index: 1, kind: input, shape index: {}]   ;;  %s1958_s2 = inlined_call_operand.vmem [shape: f32[1,128], index: 2, kind: input, shape index: {}]   ;;  %s1959_s3 = inlined_call_operand.vmem [shape: f32[1,128], index: 3, kind: input, shape index: {}]   ;;  %s1960_s4 = inlined_call_operand.vmem [shape: f32[2,16,16,128], index: 4, kind: output, shape index: {}]  }
   0x1   :  { %v999_v0 = vld [vmem:[%s1956_s0] sm:$0xff]   ;;  %v147_v3 = vld [vmem:[%s1957_s1 + $0xc] sm:$0xff]   ;;  %v149_v5 = vld [vmem:[%s1957_s1 + $0x14] sm:$0x1] }
   0x2   :  { %v1270_v1 = vld [vmem:[%s1958_s2] ss:$0 sm:$0xff]  ;;  %v1000_v2 = vunpack.c.l.bf16 %v999_v0  ;;  %v1001_v4 = vunpack.c.h.bf16 %v999_v0  ;;  %v1190_v6 = vld [vmem:[%s1956_s0 + $0x8] sm:$0xff]   ;;  %v243_v8 = vunpack.c.l.bf16 %v147_v3  ;;  %v244_v9 = vunpack.c.h.bf16 %v147_v3  ;;  %v1221_v12 = vld [vmem:[%s1957_s1 + $0x18] sm:$0xff]  }
   0x3   :  { %v1284_v7 = vld [vmem:[%s1959_s3] ss:$0 sm:$0xff]  ;;  %v245_v10 = vunpack.c.l.bf16 %v149_v5  ;;  %v1004_v11 = vunpack.c.l.bf16 %v1190_v6  ;;  %v1128_v15 = vunpack.c.l.bf16 %v1221_v12  ;;  %v1129_v16 = vunpack.c.h.bf16 %v1221_v12  ;;  %v1191_v26 = vld [vmem:[%s1956_s0 + $0x10] sm:$0xff]   ;;  %v153_v27 = vld [vmem:[%s1957_s1 + $0x24] sm:$0xff]  }
   0x4   :  { %v345_v13 = vmul.f32 %v1000_v2, %v1270_v1  ;;  %v346_v14 = vmul.f32 %v1001_v4, %v1270_v1  ;;  %v576_v17 = vrot.slane %v243_v8, 1  ;;  %v577_v18 = vrot.slane %v244_v9, 1  ;;  %v152_v21 = vld [vmem:[%s1957_s1 + $0x20] sm:$0x1]  ;;  %v155_v40 = vld [vmem:[%s1957_s1 + $0x2c] sm:$0x1] }
   0x5   :  { %v579_v19 = vrot.slane %v245_v10, 1  ;;  %v347_v20 = vmul.f32 %v1004_v11, %v1270_v1  ;;  %v581_v24 = vrot.slane %v1128_v15, 1  ;;  %v582_v25 = vrot.slane %v1129_v16, 1  ;;  %v1192_v45 = vld [vmem:[%s1956_s0 + $0x18] sm:$0xff]   ;;  %v1222_v46 = vld [vmem:[%s1957_s1 + $0x30] sm:$0xff]   ;;  %v1193_v0 = vld [vmem:[%s1956_s0 + $0x20] sm:$0xff]  }
   0x6   :  { %v415_v22 = vadd.f32 %v1284_v7, %v345_v13  ;;  %v416_v23 = vadd.f32 %v1284_v7, %v346_v14  ;;  %v578_v28 = vsel %vm575_vm0, %v576_v17, %v577_v18  ;;  %v1005_v31 = vunpack.c.h.bf16 %v1190_v6  ;;  %v158_v63 = vld [vmem:[%s1957_s1 + $0x38] sm:$0x1]  ;;  %v159_v6 = vld [vmem:[%s1957_s1 + $0x3c] sm:$0xff]  }
   0x7   :  { %v580_v29 = vsel %vm575_vm0, %v577_v18, %v579_v19  ;;  %v417_v30 = vadd.f32 %v1284_v7, %v347_v20  ;;  %v583_v34 = vsel %vm575_vm0, %v581_v24, %v582_v25  ;;  %v248_v35 = vunpack.c.l.bf16 %v152_v21  ;;  %v161_v24 = vld [vmem:[%s1957_s1 + $0x44] sm:$0x1] }
   0x8   :  { %v800_v32 = vadd.f32 %v578_v28, %v415_v22  ;;  %v801_v33 = vadd.f32 %v580_v29, %v416_v23  ;;  %v348_v37 = vmul.f32 %v1005_v31, %v1270_v1  ;;  %v1008_v38 = vunpack.c.l.bf16 %v1191_v26 }
   0x9   :  { %v802_v36 = vadd.f32 %v583_v34, %v417_v30  ;;  %v249_v39 = vunpack.c.l.bf16 %v153_v27  ;;  %v584_v43 = vrot.slane %v248_v35, 1  ;;  %v250_v44 = vunpack.c.h.bf16 %v153_v27  ;;  %v1223_v30 = vld [vmem:[%s1957_s1 + $0x48] sm:$0xff]  }
   0xa   :  { %v864_v41 = vmax.f32 %v800_v32, 0.0  ;;  %v865_v42 = vmax.f32 %v801_v33, 0.0  ;;  %v418_v48 = vadd.f32 %v1284_v7, %v348_v37  ;;  %v349_v49 = vmul.f32 %v1008_v38, %v1270_v1 }
   0xb   :  { %v866_v47 = vmax.f32 %v802_v36, 0.0  ;;  %v586_v50 = vrot.slane %v249_v39, 1  ;;  %v585_v51 = vsel %vm575_vm0, %v582_v25, %v584_v43  ;;  %v587_v52 = vrot.slane %v250_v44, 1  ;;  %v1194_v25 = vld [vmem:[%s1956_s0 + $0x28] sm:$0xff]   ;;  %v164_v39 = vld [vmem:[%s1957_s1 + $0x50] sm:$0x1] }
   0xc   :  { %928 = vst [vmem:[%s1960_s4] sm:$0xff] %v864_v41  ;;  %929 = vst [vmem:[%s1960_s4 + $0x8] sm:$0xff] %v865_v42  ;;  %v1009_v53 = vunpack.c.h.bf16 %v1191_v26  ;;  %v251_v54 = vunpack.c.l.bf16 %v155_v40  ;;  %v803_v55 = vadd.f32 %v585_v51, %v418_v48  ;;  %v419_v56 = vadd.f32 %v1284_v7, %v349_v49  ;;  %v1195_v44 = vld [vmem:[%s1956_s0 + $0x30] sm:$0xff]  }
   0xd   :  { %930 = vst [vmem:[%s1960_s4 + $0x10] sm:$0xff] %v866_v47  ;;  %v1012_v57 = vunpack.c.l.bf16 %v1192_v45  ;;  %v1132_v58 = vunpack.c.l.bf16 %v1222_v46  ;;  %v588_v59 = vsel %vm575_vm0, %v586_v50, %v587_v52  ;;  %v1133_v62 = vunpack.c.h.bf16 %v1222_v46 }
   0xe   :  { %v350_v60 = vmul.f32 %v1009_v53, %v1270_v1  ;;  %v589_v61 = vrot.slane %v251_v54, 1  ;;  %v867_v2 = vmax.f32 %v803_v55, 0.0  ;;  %v804_v3 = vadd.f32 %v588_v59, %v419_v56  ;;  %v165_v53 = vld [vmem:[%s1957_s1 + $0x54] sm:$0xff]  }
   0xf   :  { %v351_v4 = vmul.f32 %v1012_v57, %v1270_v1  ;;  %v591_v5 = vrot.slane %v1132_v58, 1  ;;  %v592_v10 = vrot.slane %v1133_v62, 1  ;;  %v1013_v11 = vunpack.c.h.bf16 %v1192_v45 }
  0x10   :  { %v420_v8 = vadd.f32 %v1284_v7, %v350_v60  ;;  %v590_v9 = vsel %vm575_vm0, %v587_v52, %v589_v61  ;;  %931 = vst [vmem:[%s1960_s4 + $0x18] sm:$0xff] %v867_v2  ;;  %v868_v12 = vmax.f32 %v804_v3, 0.0  ;;  %v254_v14 = vunpack.c.l.bf16 %v158_v63  ;;  %v167_v3 = vld [vmem:[%s1957_s1 + $0x5c] sm:$0x1] }
  0x11   :  { %v421_v13 = vadd.f32 %v1284_v7, %v351_v4  ;;  %v1016_v15 = vunpack.c.l.bf16 %v1193_v0  ;;  %v593_v17 = vsel %vm575_vm0, %v591_v5, %v592_v10  ;;  %v352_v18 = vmul.f32 %v1013_v11, %v1270_v1  ;;  %v1196_v4 = vld [vmem:[%s1956_s0 + $0x38] sm:$0xff]  }
  0x12   :  { %v805_v16 = vadd.f32 %v590_v9, %v420_v8  ;;  %v255_v19 = vunpack.c.l.bf16 %v159_v6  ;;  %932 = vst [vmem:[%s1960_s4 + $0x20] sm:$0xff] %v868_v12  ;;  %v594_v21 = vrot.slane %v254_v14, 1  ;;  %v256_v22 = vunpack.c.h.bf16 %v159_v6 }
  0x13   :  { %v806_v20 = vadd.f32 %v593_v17, %v421_v13  ;;  %v353_v23 = vmul.f32 %v1016_v15, %v1270_v1  ;;  %v422_v27 = vadd.f32 %v1284_v7, %v352_v18  ;;  %v1017_v29 = vunpack.c.h.bf16 %v1193_v0 }
  0x14   :  { %v869_v26 = vmax.f32 %v805_v16, 0.0  ;;  %v596_v28 = vrot.slane %v255_v19, 1  ;;  %v595_v32 = vsel %vm575_vm0, %v592_v10, %v594_v21  ;;  %v597_v34 = vrot.slane %v256_v22, 1  ;;  %v1224_v10 = vld [vmem:[%s1957_s1 + $0x60] sm:$0xff]   ;;  %v170_v19 = vld [vmem:[%s1957_s1 + $0x68] sm:$0x1] }
  0x15   :  { %v870_v31 = vmax.f32 %v806_v20, 0.0  ;;  %v423_v33 = vadd.f32 %v1284_v7, %v353_v23  ;;  %v807_v35 = vadd.f32 %v595_v32, %v422_v27  ;;  %v257_v36 = vunpack.c.l.bf16 %v161_v24  ;;  %v1197_v24 = vld [vmem:[%s1956_s0 + $0x40] sm:$0xff]  }
  0x16   :  { %933 = vst [vmem:[%s1960_s4 + $0x28] sm:$0xff] %v869_v26  ;;  %v354_v37 = vmul.f32 %v1017_v29, %v1270_v1  ;;  %v1020_v38 = vunpack.c.l.bf16 %v1194_v25  ;;  %v598_v40 = vsel %vm575_vm0, %v596_v28, %v597_v34  ;;  %v1136_v41 = vunpack.c.l.bf16 %v1223_v30 }
  0x17   :  { %934 = vst [vmem:[%s1960_s4 + $0x30] sm:$0xff] %v870_v31  ;;  %v1137_v42 = vunpack.c.h.bf16 %v1223_v30  ;;  %v1021_v43 = vunpack.c.h.bf16 %v1194_v25  ;;  %v871_v45 = vmax.f32 %v807_v35, 0.0  ;;  %v808_v46 = vadd.f32 %v598_v40, %v423_v33  ;;  %v171_v33 = vld [vmem:[%s1957_s1 + $0x6c] sm:$0xff]  }
  0x18   :  { %v424_v47 = vadd.f32 %v1284_v7, %v354_v37  ;;  %v599_v48 = vrot.slane %v257_v36, 1  ;;  %v355_v49 = vmul.f32 %v1020_v38, %v1270_v1  ;;  %v601_v50 = vrot.slane %v1136_v41, 1 }
  0x19   :  { %v602_v51 = vrot.slane %v1137_v42, 1  ;;  %v260_v52 = vunpack.c.l.bf16 %v164_v39  ;;  %935 = vst [vmem:[%s1960_s4 + $0x38] sm:$0xff] %v871_v45  ;;  %v872_v54 = vmax.f32 %v808_v46, 0.0  ;;  %v356_v56 = vmul.f32 %v1021_v43, %v1270_v1  ;;  %v173_v46 = vld [vmem:[%s1957_s1 + $0x74] sm:$0x1] }
  0x1a   :  { %v600_v55 = vsel %vm575_vm0, %v597_v34, %v599_v48  ;;  %v1024_v57 = vunpack.c.l.bf16 %v1195_v44  ;;  %v425_v59 = vadd.f32 %v1284_v7, %v355_v49  ;;  %v261_v63 = vunpack.c.l.bf16 %v165_v53 }
  0x1b   :  { %v809_v58 = vadd.f32 %v600_v55, %v424_v47  ;;  %v603_v60 = vsel %vm575_vm0, %v601_v50, %v602_v51  ;;  %v604_v61 = vrot.slane %v260_v52, 1  ;;  %936 = vst [vmem:[%s1960_s4 + $0x40] sm:$0xff] %v872_v54  ;;  %v426_v62 = vadd.f32 %v1284_v7, %v356_v56  ;;  %v1198_v47 = vld [vmem:[%s1956_s0 + $0x48] sm:$0xff]   ;;  %v1225_v52 = vld [vmem:[%s1957_s1 + $0x78] sm:$0xff]  }
  0x1c   :  { %v262_v0 = vunpack.c.h.bf16 %v165_v53  ;;  %v357_v2 = vmul.f32 %v1024_v57, %v1270_v1  ;;  %v810_v6 = vadd.f32 %v603_v60, %v425_v59  ;;  %v1025_v9 = vunpack.c.h.bf16 %v1195_v44 }
  0x1d   :  { %v873_v5 = vmax.f32 %v809_v58, 0.0  ;;  %v605_v8 = vsel %vm575_vm0, %v602_v51, %v604_v61  ;;  %v606_v13 = vrot.slane %v261_v63, 1  ;;  %v263_v16 = vunpack.c.l.bf16 %v167_v3  ;;  %v176_v61 = vld [vmem:[%s1957_s1 + $0x80] sm:$0x1]  ;;  %v1199_v3 = vld [vmem:[%s1956_s0 + $0x50] sm:$0xff]  }
  0x1e   :  { %v811_v11 = vadd.f32 %v605_v8, %v426_v62  ;;  %v427_v12 = vadd.f32 %v1284_v7, %v357_v2  ;;  %v607_v14 = vrot.slane %v262_v0, 1  ;;  %v874_v15 = vmax.f32 %v810_v6, 0.0 }
  0x1f   :  { %937 = vst [vmem:[%s1960_s4 + $0x48] sm:$0xff] %v873_v5  ;;  %v358_v17 = vmul.f32 %v1025_v9, %v1270_v1  ;;  %v1028_v18 = vunpack.c.l.bf16 %v1196_v4  ;;  %v1140_v22 = vunpack.c.l.bf16 %v1224_v10  ;;  %v1141_v23 = vunpack.c.h.bf16 %v1224_v10 }
  0x20   :  { %v875_v20 = vmax.f32 %v811_v11, 0.0  ;;  %v608_v21 = vsel %vm575_vm0, %v606_v13, %v607_v14  ;;  %938 = vst [vmem:[%s1960_s4 + $0x50] sm:$0xff] %v874_v15  ;;  %v609_v27 = vrot.slane %v263_v16, 1  ;;  %v1029_v31 = vunpack.c.h.bf16 %v1196_v4  ;;  %v177_v13 = vld [vmem:[%s1957_s1 + $0x84] sm:$0xff]  }
  0x21   :  { %v812_v25 = vadd.f32 %v608_v21, %v427_v12  ;;  %v428_v26 = vadd.f32 %v1284_v7, %v358_v17  ;;  %v359_v28 = vmul.f32 %v1028_v18, %v1270_v1  ;;  %v611_v29 = vrot.slane %v1140_v22, 1 }
  0x22   :  { %939 = vst [vmem:[%s1960_s4 + $0x58] sm:$0xff] %v875_v20  ;;  %v612_v30 = vrot.slane %v1141_v23, 1  ;;  %v266_v32 = vunpack.c.l.bf16 %v170_v19  ;;  %v610_v35 = vsel %vm575_vm0, %v607_v14, %v609_v27  ;;  %v1032_v37 = vunpack.c.l.bf16 %v1197_v24  ;;  %v1200_v27 = vld [vmem:[%s1956_s0 + $0x58] sm:$0xff]  }
  0x23   :  { %v876_v34 = vmax.f32 %v812_v25, 0.0  ;;  %v429_v36 = vadd.f32 %v1284_v7, %v359_v28  ;;  %v813_v38 = vadd.f32 %v610_v35, %v428_v26  ;;  %v360_v40 = vmul.f32 %v1029_v31, %v1270_v1  ;;  %v179_v26 = vld [vmem:[%s1957_s1 + $0x8c] sm:$0x1] }
  0x24   :  { %v613_v39 = vsel %vm575_vm0, %v611_v29, %v612_v30  ;;  %v614_v41 = vrot.slane %v266_v32, 1  ;;  %v267_v43 = vunpack.c.l.bf16 %v171_v33  ;;  %v268_v44 = vunpack.c.h.bf16 %v171_v33  ;;  %v1226_v32 = vld [vmem:[%s1957_s1 + $0x90] sm:$0xff]  }
  0x25   :  { %940 = vst [vmem:[%s1960_s4 + $0x60] sm:$0xff] %v876_v34  ;;  %v814_v42 = vadd.f32 %v613_v39, %v429_v36  ;;  %v361_v45 = vmul.f32 %v1032_v37, %v1270_v1  ;;  %v877_v48 = vmax.f32 %v813_v38, 0.0  ;;  %v430_v49 = vadd.f32 %v1284_v7, %v360_v40 }
  0x26   :  { %v615_v50 = vsel %vm575_vm0, %v612_v30, %v614_v41  ;;  %v1033_v51 = vunpack.c.h.bf16 %v1197_v24  ;;  %v616_v55 = vrot.slane %v267_v43, 1  ;;  %v617_v56 = vrot.slane %v268_v44, 1  ;;  %v182_v41 = vld [vmem:[%s1957_s1 + $0x98] sm:$0x1] }
  0x27   :  { %v878_v53 = vmax.f32 %v814_v42, 0.0  ;;  %v431_v54 = vadd.f32 %v1284_v7, %v361_v45  ;;  %941 = vst [vmem:[%s1960_s4 + $0x68] sm:$0xff] %v877_v48  ;;  %v815_v57 = vadd.f32 %v615_v50, %v430_v49  ;;  %v269_v58 = vunpack.c.l.bf16 %v173_v46  ;;  %v1201_v46 = vld [vmem:[%s1956_s0 + $0x60] sm:$0xff]  }
  0x28   :  { %v362_v59 = vmul.f32 %v1033_v51, %v1270_v1  ;;  %v1036_v60 = vunpack.c.l.bf16 %v1198_v47  ;;  %v618_v62 = vsel %vm575_vm0, %v616_v55, %v617_v56  ;;  %v1144_v63 = vunpack.c.l.bf16 %v1225_v52  ;;  %v183_v55 = vld [vmem:[%s1957_s1 + $0x9c] sm:$0xff]  }
  0x29   :  { %942 = vst [vmem:[%s1960_s4 + $0x70] sm:$0xff] %v878_v53  ;;  %v1145_v0 = vunpack.c.h.bf16 %v1225_v52  ;;  %v1037_v2 = vunpack.c.h.bf16 %v1198_v47  ;;  %v879_v4 = vmax.f32 %v815_v57, 0.0  ;;  %v816_v5 = vadd.f32 %v618_v62, %v431_v54 }
  0x2a   :  { %v432_v6 = vadd.f32 %v1284_v7, %v362_v59  ;;  %v619_v8 = vrot.slane %v269_v58, 1  ;;  %v363_v9 = vmul.f32 %v1036_v60, %v1270_v1  ;;  %v621_v10 = vrot.slane %v1144_v63, 1 }
  0x2b   :  { %v622_v11 = vrot.slane %v1145_v0, 1  ;;  %v272_v12 = vunpack.c.l.bf16 %v176_v61  ;;  %943 = vst [vmem:[%s1960_s4 + $0x78] sm:$0xff] %v879_v4  ;;  %v880_v14 = vmax.f32 %v816_v5, 0.0  ;;  %v364_v16 = vmul.f32 %v1037_v2, %v1270_v1  ;;  %v185_v5 = vld [vmem:[%s1957_s1 + $0xa4] sm:$0x1] }
  0x2c   :  { %v620_v15 = vsel %vm575_vm0, %v617_v56, %v619_v8  ;;  %v1040_v17 = vunpack.c.l.bf16 %v1199_v3  ;;  %v433_v19 = vadd.f32 %v1284_v7, %v363_v9  ;;  %v273_v23 = vunpack.c.l.bf16 %v177_v13 }
  0x2d   :  { %v817_v18 = vadd.f32 %v620_v15, %v432_v6  ;;  %v623_v20 = vsel %vm575_vm0, %v621_v10, %v622_v11  ;;  %v624_v21 = vrot.slane %v272_v12, 1  ;;  %944 = vst [vmem:[%s1960_s4 + $0x80] sm:$0xff] %v880_v14  ;;  %v434_v22 = vadd.f32 %v1284_v7, %v364_v16  ;;  %v1202_v6 = vld [vmem:[%s1956_s0 + $0x68] sm:$0xff]  }
  0x2e   :  { %v274_v24 = vunpack.c.h.bf16 %v177_v13  ;;  %v365_v25 = vmul.f32 %v1040_v17, %v1270_v1  ;;  %v818_v29 = vadd.f32 %v623_v20, %v433_v19  ;;  %v1041_v31 = vunpack.c.h.bf16 %v1199_v3  ;;  %v1227_v12 = vld [vmem:[%s1957_s1 + $0xa8] sm:$0xff]  }
  0x2f   :  { %v881_v28 = vmax.f32 %v817_v18, 0.0  ;;  %v625_v30 = vsel %vm575_vm0, %v622_v11, %v624_v21  ;;  %v626_v35 = vrot.slane %v273_v23, 1  ;;  %v275_v38 = vunpack.c.l.bf16 %v179_v26  ;;  %v188_v21 = vld [vmem:[%s1957_s1 + $0xb0] sm:$0x1] }
  0x30   :  { %v819_v33 = vadd.f32 %v625_v30, %v434_v22  ;;  %v435_v34 = vadd.f32 %v1284_v7, %v365_v25  ;;  %v627_v36 = vrot.slane %v274_v24, 1  ;;  %v882_v37 = vmax.f32 %v818_v29, 0.0  ;;  %v1203_v26 = vld [vmem:[%s1956_s0 + $0x70] sm:$0xff]  }
  0x31   :  { %945 = vst [vmem:[%s1960_s4 + $0x88] sm:$0xff] %v881_v28  ;;  %v366_v39 = vmul.f32 %v1041_v31, %v1270_v1  ;;  %v1044_v40 = vunpack.c.l.bf16 %v1200_v27  ;;  %v1148_v44 = vunpack.c.l.bf16 %v1226_v32  ;;  %v1149_v45 = vunpack.c.h.bf16 %v1226_v32 }
  0x32   :  { %v883_v42 = vmax.f32 %v819_v33, 0.0  ;;  %v628_v43 = vsel %vm575_vm0, %v626_v35, %v627_v36  ;;  %946 = vst [vmem:[%s1960_s4 + $0x90] sm:$0xff] %v882_v37  ;;  %v629_v49 = vrot.slane %v275_v38, 1  ;;  %v1045_v53 = vunpack.c.h.bf16 %v1200_v27  ;;  %v189_v35 = vld [vmem:[%s1957_s1 + $0xb4] sm:$0xff]  }
  0x33   :  { %v820_v47 = vadd.f32 %v628_v43, %v435_v34  ;;  %v436_v48 = vadd.f32 %v1284_v7, %v366_v39  ;;  %v367_v50 = vmul.f32 %v1044_v40, %v1270_v1  ;;  %v631_v51 = vrot.slane %v1148_v44, 1 }
  0x34   :  { %947 = vst [vmem:[%s1960_s4 + $0x98] sm:$0xff] %v883_v42  ;;  %v632_v52 = vrot.slane %v1149_v45, 1  ;;  %v278_v54 = vunpack.c.l.bf16 %v182_v41  ;;  %v630_v57 = vsel %vm575_vm0, %v627_v36, %v629_v49  ;;  %v1048_v59 = vunpack.c.l.bf16 %v1201_v46  ;;  %v1204_v49 = vld [vmem:[%s1956_s0 + $0x78] sm:$0xff]  }
  0x35   :  { %v884_v56 = vmax.f32 %v820_v47, 0.0  ;;  %v437_v58 = vadd.f32 %v1284_v7, %v367_v50  ;;  %v821_v60 = vadd.f32 %v630_v57, %v436_v48  ;;  %v368_v62 = vmul.f32 %v1045_v53, %v1270_v1  ;;  %v191_v48 = vld [vmem:[%s1957_s1 + $0xbc] sm:$0x1] }
  0x36   :  { %v633_v61 = vsel %vm575_vm0, %v631_v51, %v632_v52  ;;  %v634_v63 = vrot.slane %v278_v54, 1  ;;  %v279_v2 = vunpack.c.l.bf16 %v183_v55  ;;  %v280_v3 = vunpack.c.h.bf16 %v183_v55  ;;  %v1228_v54 = vld [vmem:[%s1957_s1 + $0xc0] sm:$0xff]  }
  0x37   :  { %948 = vst [vmem:[%s1960_s4 + $0xa0] sm:$0xff] %v884_v56  ;;  %v822_v0 = vadd.f32 %v633_v61, %v437_v58  ;;  %v369_v4 = vmul.f32 %v1048_v59, %v1270_v1  ;;  %v885_v8 = vmax.f32 %v821_v60, 0.0  ;;  %v438_v9 = vadd.f32 %v1284_v7, %v368_v62 }
  0x38   :  { %v635_v10 = vsel %vm575_vm0, %v632_v52, %v634_v63  ;;  %v1049_v11 = vunpack.c.h.bf16 %v1201_v46  ;;  %v636_v15 = vrot.slane %v279_v2, 1  ;;  %v637_v16 = vrot.slane %v280_v3, 1  ;;  %v194_v63 = vld [vmem:[%s1957_s1 + $0xc8] sm:$0x1] }
  0x39   :  { %v886_v13 = vmax.f32 %v822_v0, 0.0  ;;  %v439_v14 = vadd.f32 %v1284_v7, %v369_v4  ;;  %949 = vst [vmem:[%s1960_s4 + $0xa8] sm:$0xff] %v885_v8  ;;  %v823_v17 = vadd.f32 %v635_v10, %v438_v9  ;;  %v281_v18 = vunpack.c.l.bf16 %v185_v5  ;;  %v1205_v5 = vld [vmem:[%s1956_s0 + $0x80] sm:$0xff]  }
  0x3a   :  { %v370_v19 = vmul.f32 %v1049_v11, %v1270_v1  ;;  %v1052_v20 = vunpack.c.l.bf16 %v1202_v6  ;;  %v638_v22 = vsel %vm575_vm0, %v636_v15, %v637_v16  ;;  %v1152_v23 = vunpack.c.l.bf16 %v1227_v12  ;;  %v195_v15 = vld [vmem:[%s1957_s1 + $0xe4] sm:$0xff]  }
  0x3b   :  { %950 = vst [vmem:[%s1960_s4 + $0xb0] sm:$0xff] %v886_v13  ;;  %v1153_v24 = vunpack.c.h.bf16 %v1227_v12  ;;  %v1053_v25 = vunpack.c.h.bf16 %v1202_v6  ;;  %v887_v27 = vmax.f32 %v823_v17, 0.0  ;;  %v824_v28 = vadd.f32 %v638_v22, %v439_v14 }
  0x3c   :  { %v440_v29 = vadd.f32 %v1284_v7, %v370_v19  ;;  %v639_v30 = vrot.slane %v281_v18, 1  ;;  %v371_v31 = vmul.f32 %v1052_v20, %v1270_v1  ;;  %v641_v32 = vrot.slane %v1152_v23, 1 }
  0x3d   :  { %v642_v33 = vrot.slane %v1153_v24, 1  ;;  %v284_v34 = vunpack.c.l.bf16 %v188_v21  ;;  %951 = vst [vmem:[%s1960_s4 + $0xb8] sm:$0xff] %v887_v27  ;;  %v888_v36 = vmax.f32 %v824_v28, 0.0  ;;  %v372_v38 = vmul.f32 %v1053_v25, %v1270_v1  ;;  %v197_v28 = vld [vmem:[%s1957_s1 + $0xec] sm:$0x1] }
  0x3e   :  { %v640_v37 = vsel %vm575_vm0, %v637_v16, %v639_v30  ;;  %v1056_v39 = vunpack.c.l.bf16 %v1203_v26  ;;  %v441_v41 = vadd.f32 %v1284_v7, %v371_v31  ;;  %v285_v45 = vunpack.c.l.bf16 %v189_v35 }
  0x3f   :  { %v825_v40 = vadd.f32 %v640_v37, %v440_v29  ;;  %v643_v42 = vsel %vm575_vm0, %v641_v32, %v642_v33  ;;  %v644_v43 = vrot.slane %v284_v34, 1  ;;  %952 = vst [vmem:[%s1960_s4 + $0xc0] sm:$0xff] %v888_v36  ;;  %v442_v44 = vadd.f32 %v1284_v7, %v372_v38  ;;  %v1206_v29 = vld [vmem:[%s1956_s0 + $0x88] sm:$0xff]   ;;  %v1229_v34 = vld [vmem:[%s1957_s1 + $0xf0] sm:$0xff]  }
  0x40   :  { %v286_v46 = vunpack.c.h.bf16 %v189_v35  ;;  %v373_v47 = vmul.f32 %v1056_v39, %v1270_v1  ;;  %v826_v51 = vadd.f32 %v643_v42, %v441_v41  ;;  %v1057_v53 = vunpack.c.h.bf16 %v1203_v26 }
  0x41   :  { %v889_v50 = vmax.f32 %v825_v40, 0.0  ;;  %v645_v52 = vsel %vm575_vm0, %v642_v33, %v644_v43  ;;  %v646_v57 = vrot.slane %v285_v45, 1  ;;  %v287_v60 = vunpack.c.l.bf16 %v191_v48  ;;  %v200_v43 = vld [vmem:[%s1957_s1 + $0xf8] sm:$0x1]  ;;  %v1207_v48 = vld [vmem:[%s1956_s0 + $0x90] sm:$0xff]  }
  0x42   :  { %v827_v55 = vadd.f32 %v645_v52, %v442_v44  ;;  %v443_v56 = vadd.f32 %v1284_v7, %v373_v47  ;;  %v647_v58 = vrot.slane %v286_v46, 1  ;;  %v890_v59 = vmax.f32 %v826_v51, 0.0 }
  0x43   :  { %953 = vst [vmem:[%s1960_s4 + $0xc8] sm:$0xff] %v889_v50  ;;  %v374_v61 = vmul.f32 %v1057_v53, %v1270_v1  ;;  %v1060_v62 = vunpack.c.l.bf16 %v1204_v49  ;;  %v1156_v3 = vunpack.c.l.bf16 %v1228_v54  ;;  %v1157_v4 = vunpack.c.h.bf16 %v1228_v54 }
  0x44   :  { %v891_v0 = vmax.f32 %v827_v55, 0.0  ;;  %v648_v2 = vsel %vm575_vm0, %v646_v57, %v647_v58  ;;  %954 = vst [vmem:[%s1960_s4 + $0xd0] sm:$0xff] %v890_v59  ;;  %v649_v9 = vrot.slane %v287_v60, 1  ;;  %v1061_v13 = vunpack.c.h.bf16 %v1204_v49  ;;  %v201_v57 = vld [vmem:[%s1957_s1 + $0xfc] sm:$0xff]  }
  0x45   :  { %v828_v6 = vadd.f32 %v648_v2, %v443_v56  ;;  %v444_v8 = vadd.f32 %v1284_v7, %v374_v61  ;;  %v375_v10 = vmul.f32 %v1060_v62, %v1270_v1  ;;  %v651_v11 = vrot.slane %v1156_v3, 1 }
  0x46   :  { %955 = vst [vmem:[%s1960_s4 + $0xd8] sm:$0xff] %v891_v0  ;;  %v652_v12 = vrot.slane %v1157_v4, 1  ;;  %v290_v14 = vunpack.c.l.bf16 %v194_v63  ;;  %v650_v17 = vsel %vm575_vm0, %v647_v58, %v649_v9  ;;  %v1064_v19 = vunpack.c.l.bf16 %v1205_v5  ;;  %v1208_v9 = vld [vmem:[%s1956_s0 + $0x98] sm:$0xff]  }
  0x47   :  { %v892_v16 = vmax.f32 %v828_v6, 0.0  ;;  %v445_v18 = vadd.f32 %v1284_v7, %v375_v10  ;;  %v829_v20 = vadd.f32 %v650_v17, %v444_v8  ;;  %v376_v22 = vmul.f32 %v1061_v13, %v1270_v1  ;;  %v203_v8 = vld [vmem:[%s1957_s1 + $0x104] sm:$0x1] }
  0x48   :  { %v653_v21 = vsel %vm575_vm0, %v651_v11, %v652_v12  ;;  %v654_v23 = vrot.slane %v290_v14, 1  ;;  %v291_v25 = vunpack.c.l.bf16 %v195_v15  ;;  %v292_v26 = vunpack.c.h.bf16 %v195_v15  ;;  %v1230_v14 = vld [vmem:[%s1957_s1 + $0x108] sm:$0xff]  }
  0x49   :  { %956 = vst [vmem:[%s1960_s4 + $0xe0] sm:$0xff] %v892_v16  ;;  %v830_v24 = vadd.f32 %v653_v21, %v445_v18  ;;  %v377_v27 = vmul.f32 %v1064_v19, %v1270_v1  ;;  %v893_v30 = vmax.f32 %v829_v20, 0.0  ;;  %v446_v31 = vadd.f32 %v1284_v7, %v376_v22 }
  0x4a   :  { %v655_v32 = vsel %vm575_vm0, %v652_v12, %v654_v23  ;;  %v1065_v33 = vunpack.c.h.bf16 %v1205_v5  ;;  %v656_v37 = vrot.slane %v291_v25, 1  ;;  %v657_v38 = vrot.slane %v292_v26, 1  ;;  %v206_v23 = vld [vmem:[%s1957_s1 + $0x110] sm:$0x1] }
  0x4b   :  { %v894_v35 = vmax.f32 %v830_v24, 0.0  ;;  %v447_v36 = vadd.f32 %v1284_v7, %v377_v27  ;;  %957 = vst [vmem:[%s1960_s4 + $0xe8] sm:$0xff] %v893_v30  ;;  %v831_v39 = vadd.f32 %v655_v32, %v446_v31  ;;  %v293_v40 = vunpack.c.l.bf16 %v197_v28  ;;  %v1209_v28 = vld [vmem:[%s1956_s0 + $0xa0] sm:$0xff]  }
  0x4c   :  { %v378_v41 = vmul.f32 %v1065_v33, %v1270_v1  ;;  %v1068_v42 = vunpack.c.l.bf16 %v1206_v29  ;;  %v658_v44 = vsel %vm575_vm0, %v656_v37, %v657_v38  ;;  %v1160_v45 = vunpack.c.l.bf16 %v1229_v34  ;;  %v207_v37 = vld [vmem:[%s1957_s1 + $0x114] sm:$0xff]  }
  0x4d   :  { %958 = vst [vmem:[%s1960_s4 + $0xf0] sm:$0xff] %v894_v35  ;;  %v1161_v46 = vunpack.c.h.bf16 %v1229_v34  ;;  %v1069_v47 = vunpack.c.h.bf16 %v1206_v29  ;;  %v895_v49 = vmax.f32 %v831_v39, 0.0  ;;  %v832_v50 = vadd.f32 %v658_v44, %v447_v36 }
  0x4e   :  { %v448_v51 = vadd.f32 %v1284_v7, %v378_v41  ;;  %v659_v52 = vrot.slane %v293_v40, 1  ;;  %v379_v53 = vmul.f32 %v1068_v42, %v1270_v1  ;;  %v661_v54 = vrot.slane %v1160_v45, 1 }
  0x4f   :  { %v662_v55 = vrot.slane %v1161_v46, 1  ;;  %v296_v56 = vunpack.c.l.bf16 %v200_v43  ;;  %959 = vst [vmem:[%s1960_s4 + $0xf8] sm:$0xff] %v895_v49  ;;  %v896_v58 = vmax.f32 %v832_v50, 0.0  ;;  %v380_v60 = vmul.f32 %v1069_v47, %v1270_v1  ;;  %v209_v50 = vld [vmem:[%s1957_s1 + $0x11c] sm:$0x1] }
  0x50   :  { %v660_v59 = vsel %vm575_vm0, %v657_v38, %v659_v52  ;;  %v1072_v61 = vunpack.c.l.bf16 %v1207_v48  ;;  %v449_v63 = vadd.f32 %v1284_v7, %v379_v53  ;;  %v297_v4 = vunpack.c.l.bf16 %v201_v57 }
  0x51   :  { %v833_v62 = vadd.f32 %v660_v59, %v448_v51  ;;  %v663_v0 = vsel %vm575_vm0, %v661_v54, %v662_v55  ;;  %v664_v2 = vrot.slane %v296_v56, 1  ;;  %960 = vst [vmem:[%s1960_s4 + $0x100] sm:$0xff] %v896_v58  ;;  %v450_v3 = vadd.f32 %v1284_v7, %v380_v60  ;;  %v1210_v51 = vld [vmem:[%s1956_s0 + $0xa8] sm:$0xff]   ;;  %v1231_v56 = vld [vmem:[%s1957_s1 + $0x120] sm:$0xff]  }
  0x52   :  { %v298_v5 = vunpack.c.h.bf16 %v201_v57  ;;  %v381_v6 = vmul.f32 %v1072_v61, %v1270_v1  ;;  %v834_v11 = vadd.f32 %v663_v0, %v449_v63  ;;  %v1073_v13 = vunpack.c.h.bf16 %v1207_v48 }
  0x53   :  { %v897_v10 = vmax.f32 %v833_v62, 0.0  ;;  %v665_v12 = vsel %vm575_vm0, %v662_v55, %v664_v2  ;;  %v666_v17 = vrot.slane %v297_v4, 1  ;;  %v299_v20 = vunpack.c.l.bf16 %v203_v8  ;;  %v212_v2 = vld [vmem:[%s1957_s1 + $0x128] sm:$0x1]  ;;  %v1211_v8 = vld [vmem:[%s1956_s0 + $0xb0] sm:$0xff]  }
  0x54   :  { %v835_v15 = vadd.f32 %v665_v12, %v450_v3  ;;  %v451_v16 = vadd.f32 %v1284_v7, %v381_v6  ;;  %v667_v18 = vrot.slane %v298_v5, 1  ;;  %v898_v19 = vmax.f32 %v834_v11, 0.0 }
  0x55   :  { %961 = vst [vmem:[%s1960_s4 + $0x108] sm:$0xff] %v897_v10  ;;  %v382_v21 = vmul.f32 %v1073_v13, %v1270_v1  ;;  %v1076_v22 = vunpack.c.l.bf16 %v1208_v9  ;;  %v1164_v26 = vunpack.c.l.bf16 %v1230_v14  ;;  %v1165_v27 = vunpack.c.h.bf16 %v1230_v14 }
  0x56   :  { %v899_v24 = vmax.f32 %v835_v15, 0.0  ;;  %v668_v25 = vsel %vm575_vm0, %v666_v17, %v667_v18  ;;  %962 = vst [vmem:[%s1960_s4 + $0x110] sm:$0xff] %v898_v19  ;;  %v669_v31 = vrot.slane %v299_v20, 1  ;;  %v1077_v35 = vunpack.c.h.bf16 %v1208_v9  ;;  %v213_v17 = vld [vmem:[%s1957_s1 + $0x12c] sm:$0xff]  }
  0x57   :  { %v836_v29 = vadd.f32 %v668_v25, %v451_v16  ;;  %v452_v30 = vadd.f32 %v1284_v7, %v382_v21  ;;  %v383_v32 = vmul.f32 %v1076_v22, %v1270_v1  ;;  %v671_v33 = vrot.slane %v1164_v26, 1 }
  0x58   :  { %963 = vst [vmem:[%s1960_s4 + $0x118] sm:$0xff] %v899_v24  ;;  %v672_v34 = vrot.slane %v1165_v27, 1  ;;  %v302_v36 = vunpack.c.l.bf16 %v206_v23  ;;  %v670_v39 = vsel %vm575_vm0, %v667_v18, %v669_v31  ;;  %v1080_v41 = vunpack.c.l.bf16 %v1209_v28  ;;  %v1212_v31 = vld [vmem:[%s1956_s0 + $0xb8] sm:$0xff]  }
  0x59   :  { %v900_v38 = vmax.f32 %v836_v29, 0.0  ;;  %v453_v40 = vadd.f32 %v1284_v7, %v383_v32  ;;  %v837_v42 = vadd.f32 %v670_v39, %v452_v30  ;;  %v384_v44 = vmul.f32 %v1077_v35, %v1270_v1  ;;  %v215_v30 = vld [vmem:[%s1957_s1 + $0x134] sm:$0x1] }
  0x5a   :  { %v673_v43 = vsel %vm575_vm0, %v671_v33, %v672_v34  ;;  %v674_v45 = vrot.slane %v302_v36, 1  ;;  %v303_v47 = vunpack.c.l.bf16 %v207_v37  ;;  %v304_v48 = vunpack.c.h.bf16 %v207_v37  ;;  %v1232_v36 = vld [vmem:[%s1957_s1 + $0x138] sm:$0xff]  }
  0x5b   :  { %964 = vst [vmem:[%s1960_s4 + $0x120] sm:$0xff] %v900_v38  ;;  %v838_v46 = vadd.f32 %v673_v43, %v453_v40  ;;  %v385_v49 = vmul.f32 %v1080_v41, %v1270_v1  ;;  %v901_v52 = vmax.f32 %v837_v42, 0.0  ;;  %v454_v53 = vadd.f32 %v1284_v7, %v384_v44  ;;  %v1750_v42 = vld [vmem:[%s1958_s2] ss:$0 sm:$0xff] }
  0x5c   :  { %v675_v54 = vsel %vm575_vm0, %v672_v34, %v674_v45  ;;  %v1081_v55 = vunpack.c.h.bf16 %v1209_v28  ;;  %v676_v59 = vrot.slane %v303_v47, 1  ;;  %v677_v60 = vrot.slane %v304_v48, 1 }
  0x5d   :  { %v902_v57 = vmax.f32 %v838_v46, 0.0  ;;  %v455_v58 = vadd.f32 %v1284_v7, %v385_v49  ;;  %965 = vst [vmem:[%s1960_s4 + $0x128] sm:$0xff] %v901_v52  ;;  %v839_v61 = vadd.f32 %v675_v54, %v454_v53  ;;  %v305_v62 = vunpack.c.l.bf16 %v209_v50  ;;  %v1213_v49 = vld [vmem:[%s1956_s0 + $0xc0] sm:$0xff]  }
  0x5e   :  { %v386_v63 = vmul.f32 %v1081_v55, %v1270_v1  ;;  %v1084_v0 = vunpack.c.l.bf16 %v1210_v51  ;;  %v678_v3 = vsel %vm575_vm0, %v676_v59, %v677_v60  ;;  %v1168_v4 = vunpack.c.l.bf16 %v1231_v56  ;;  %v219_v59 = vld [vmem:[%s1957_s1 + $0x144] sm:$0xff]  }
  0x5f   :  { %966 = vst [vmem:[%s1960_s4 + $0x130] sm:$0xff] %v902_v57  ;;  %v1169_v5 = vunpack.c.h.bf16 %v1231_v56  ;;  %v1085_v6 = vunpack.c.h.bf16 %v1210_v51  ;;  %v903_v9 = vmax.f32 %v839_v61, 0.0  ;;  %v840_v10 = vadd.f32 %v678_v3, %v455_v58  ;;  %v1766_v51 = vld [vmem:[%s1959_s3] ss:$0 sm:$0xff] }
  0x60   :  { %v456_v11 = vadd.f32 %v1284_v7, %v386_v63  ;;  %v679_v12 = vrot.slane %v305_v62, 1  ;;  %v387_v13 = vmul.f32 %v1084_v0, %v1270_v1  ;;  %v681_v14 = vrot.slane %v1168_v4, 1 }
  0x61   :  { %v682_v15 = vrot.slane %v1169_v5, 1  ;;  %v308_v16 = vunpack.c.l.bf16 %v212_v2  ;;  %967 = vst [vmem:[%s1960_s4 + $0x138] sm:$0xff] %v903_v9  ;;  %v904_v18 = vmax.f32 %v840_v10, 0.0  ;;  %v388_v20 = vmul.f32 %v1085_v6, %v1270_v1  ;;  %v221_v10 = vld [vmem:[%s1957_s1 + $0x14c] sm:$0x1] }
  0x62   :  { %v680_v19 = vsel %vm575_vm0, %v677_v60, %v679_v12  ;;  %v1088_v21 = vunpack.c.l.bf16 %v1211_v8  ;;  %v457_v23 = vadd.f32 %v1284_v7, %v387_v13  ;;  %v309_v27 = vunpack.c.l.bf16 %v213_v17 }
  0x63   :  { %v841_v22 = vadd.f32 %v680_v19, %v456_v11  ;;  %v683_v24 = vsel %vm575_vm0, %v681_v14, %v682_v15  ;;  %v684_v25 = vrot.slane %v308_v16, 1  ;;  %968 = vst [vmem:[%s1960_s4 + $0x140] sm:$0xff] %v904_v18  ;;  %v458_v26 = vadd.f32 %v1284_v7, %v388_v20  ;;  %v1214_v11 = vld [vmem:[%s1956_s0 + $0xc8] sm:$0xff]   ;;  %v1233_v16 = vld [vmem:[%s1957_s1 + $0x150] sm:$0xff]  }
  0x64   :  { %v310_v28 = vunpack.c.h.bf16 %v213_v17  ;;  %v389_v29 = vmul.f32 %v1088_v21, %v1270_v1  ;;  %v842_v33 = vadd.f32 %v683_v24, %v457_v23  ;;  %v1089_v35 = vunpack.c.h.bf16 %v1211_v8 }
  0x65   :  { %v905_v32 = vmax.f32 %v841_v22, 0.0  ;;  %v685_v34 = vsel %vm575_vm0, %v682_v15, %v684_v25  ;;  %v686_v38 = vrot.slane %v309_v27, 1  ;;  %v311_v41 = vunpack.c.l.bf16 %v215_v30  ;;  %v224_v25 = vld [vmem:[%s1957_s1 + $0x158] sm:$0x1]  ;;  %v1215_v30 = vld [vmem:[%s1956_s0 + $0xd0] sm:$0xff]  }
  0x66   :  { %v843_v37 = vadd.f32 %v685_v34, %v458_v26  ;;  %v459_v1 = vadd.f32 %v1284_v7, %v389_v29  ;;  %v687_v39 = vrot.slane %v310_v28, 1  ;;  %v906_v40 = vmax.f32 %v842_v33, 0.0  ;;  %v218_v7 = vld [vmem:[%s1957_s1 + $0x140] sm:$0x1] }
  0x67   :  { %969 = vst [vmem:[%s1960_s4 + $0x148] sm:$0xff] %v905_v32  ;;  %v390_v43 = vmul.f32 %v1750_v42, %v1089_v35  ;;  %v1092_v44 = vunpack.c.l.bf16 %v1212_v31  ;;  %v1172_v47 = vunpack.c.l.bf16 %v1232_v36  ;;  %v1173_v48 = vunpack.c.h.bf16 %v1232_v36 }
  0x68   :  { %v907_v45 = vmax.f32 %v843_v37, 0.0  ;;  %v688_v46 = vsel %vm575_vm0, %v686_v38, %v687_v39  ;;  %970 = vst [vmem:[%s1960_s4 + $0x150] sm:$0xff] %v906_v40  ;;  %v689_v53 = vrot.slane %v311_v41, 1  ;;  %v1093_v57 = vunpack.c.h.bf16 %v1212_v31  ;;  %v225_v38 = vld [vmem:[%s1957_s1 + $0x15c] sm:$0xff]  }
  0x69   :  { %v844_v50 = vadd.f32 %v688_v46, %v459_v1  ;;  %v460_v52 = vadd.f32 %v1766_v51, %v390_v43  ;;  %v391_v54 = vmul.f32 %v1750_v42, %v1092_v44  ;;  %v691_v55 = vrot.slane %v1172_v47, 1 }
  0x6a   :  { %971 = vst [vmem:[%s1960_s4 + $0x158] sm:$0xff] %v907_v45  ;;  %v692_v56 = vrot.slane %v1173_v48, 1  ;;  %v314_v58 = vunpack.c.l.bf16 %v218_v7  ;;  %v690_v61 = vsel %vm575_vm0, %v687_v39, %v689_v53  ;;  %v1096_v63 = vunpack.c.l.bf16 %v1213_v49  ;;  %v1216_v53 = vld [vmem:[%s1956_s0 + $0xd8] sm:$0xff]  }
  0x6b   :  { %v908_v60 = vmax.f32 %v844_v50, 0.0  ;;  %v461_v62 = vadd.f32 %v1766_v51, %v391_v54  ;;  %v845_v0 = vadd.f32 %v690_v61, %v460_v52  ;;  %v392_v3 = vmul.f32 %v1750_v42, %v1093_v57  ;;  %v227_v52 = vld [vmem:[%s1957_s1 + $0x164] sm:$0x1] }
  0x6c   :  { %v693_v2 = vsel %vm575_vm0, %v691_v55, %v692_v56  ;;  %v694_v4 = vrot.slane %v314_v58, 1  ;;  %v315_v6 = vunpack.c.l.bf16 %v219_v59  ;;  %v316_v8 = vunpack.c.h.bf16 %v219_v59  ;;  %v1234_v58 = vld [vmem:[%s1957_s1 + $0x168] sm:$0xff]  }
  0x6d   :  { %972 = vst [vmem:[%s1960_s4 + $0x160] sm:$0xff] %v908_v60  ;;  %v846_v5 = vadd.f32 %v693_v2, %v461_v62  ;;  %v393_v9 = vmul.f32 %v1750_v42, %v1096_v63  ;;  %v909_v12 = vmax.f32 %v845_v0, 0.0  ;;  %v462_v13 = vadd.f32 %v1766_v51, %v392_v3 }
  0x6e   :  { %v695_v14 = vsel %vm575_vm0, %v692_v56, %v694_v4  ;;  %v1097_v15 = vunpack.c.h.bf16 %v1213_v49  ;;  %v696_v19 = vrot.slane %v315_v6, 1  ;;  %v697_v20 = vrot.slane %v316_v8, 1  ;;  %v230_v4 = vld [vmem:[%s1957_s1 + $0x170] sm:$0x1] }
  0x6f   :  { %v910_v17 = vmax.f32 %v846_v5, 0.0  ;;  %v463_v18 = vadd.f32 %v1766_v51, %v393_v9  ;;  %973 = vst [vmem:[%s1960_s4 + $0x168] sm:$0xff] %v909_v12  ;;  %v847_v21 = vadd.f32 %v695_v14, %v462_v13  ;;  %v317_v22 = vunpack.c.l.bf16 %v221_v10  ;;  %v1217_v10 = vld [vmem:[%s1956_s0 + $0xe0] sm:$0xff]  }
  0x70   :  { %v394_v23 = vmul.f32 %v1750_v42, %v1097_v15  ;;  %v1100_v24 = vunpack.c.l.bf16 %v1214_v11  ;;  %v698_v26 = vsel %vm575_vm0, %v696_v19, %v697_v20  ;;  %v1176_v27 = vunpack.c.l.bf16 %v1233_v16  ;;  %v231_v19 = vld [vmem:[%s1957_s1 + $0x174] sm:$0xff]  }
  0x71   :  { %974 = vst [vmem:[%s1960_s4 + $0x170] sm:$0xff] %v910_v17  ;;  %v1177_v28 = vunpack.c.h.bf16 %v1233_v16  ;;  %v1101_v29 = vunpack.c.h.bf16 %v1214_v11  ;;  %v911_v31 = vmax.f32 %v847_v21, 0.0  ;;  %v848_v32 = vadd.f32 %v698_v26, %v463_v18 }
  0x72   :  { %v464_v33 = vadd.f32 %v1766_v51, %v394_v23  ;;  %v699_v34 = vrot.slane %v317_v22, 1  ;;  %v395_v35 = vmul.f32 %v1750_v42, %v1100_v24  ;;  %v701_v36 = vrot.slane %v1176_v27, 1 }
  0x73   :  { %v702_v37 = vrot.slane %v1177_v28, 1  ;;  %v320_v1 = vunpack.c.l.bf16 %v224_v25  ;;  %975 = vst [vmem:[%s1960_s4 + $0x178] sm:$0xff] %v911_v31  ;;  %v912_v39 = vmax.f32 %v848_v32, 0.0  ;;  %v396_v41 = vmul.f32 %v1750_v42, %v1101_v29  ;;  %v233_v32 = vld [vmem:[%s1957_s1 + $0x17c] sm:$0x1] }
  0x74   :  { %v700_v40 = vsel %vm575_vm0, %v697_v20, %v699_v34  ;;  %v1104_v43 = vunpack.c.l.bf16 %v1215_v30  ;;  %v465_v7 = vadd.f32 %v1766_v51, %v395_v35  ;;  %v321_v48 = vunpack.c.l.bf16 %v225_v38 }
  0x75   :  { %v849_v44 = vadd.f32 %v700_v40, %v464_v33  ;;  %v703_v45 = vsel %vm575_vm0, %v701_v36, %v702_v37  ;;  %v704_v46 = vrot.slane %v320_v1, 1  ;;  %976 = vst [vmem:[%s1960_s4 + $0x180] sm:$0xff] %v912_v39  ;;  %v466_v47 = vadd.f32 %v1766_v51, %v396_v41  ;;  %v1218_v33 = vld [vmem:[%s1956_s0 + $0xe8] sm:$0xff]   ;;  %v1235_v1 = vld [vmem:[%s1957_s1 + $0x180] sm:$0xff]  }
  0x76   :  { %v322_v49 = vunpack.c.h.bf16 %v225_v38  ;;  %v397_v50 = vmul.f32 %v1750_v42, %v1104_v43  ;;  %v850_v55 = vadd.f32 %v703_v45, %v465_v7  ;;  %v1105_v57 = vunpack.c.h.bf16 %v1215_v30 }
  0x77   :  { %v913_v54 = vmax.f32 %v849_v44, 0.0  ;;  %v705_v56 = vsel %vm575_vm0, %v702_v37, %v704_v46  ;;  %v706_v61 = vrot.slane %v321_v48, 1  ;;  %v323_v0 = vunpack.c.l.bf16 %v227_v52  ;;  %v236_v46 = vld [vmem:[%s1957_s1 + $0x188] sm:$0x1]  ;;  %v1219_v52 = vld [vmem:[%s1956_s0 + $0xf0] sm:$0xff]  }
  0x78   :  { %v851_v59 = vadd.f32 %v705_v56, %v466_v47  ;;  %v467_v60 = vadd.f32 %v1766_v51, %v397_v50  ;;  %v707_v62 = vrot.slane %v322_v49, 1  ;;  %v914_v63 = vmax.f32 %v850_v55, 0.0 }
  0x79   :  { %977 = vst [vmem:[%s1960_s4 + $0x188] sm:$0xff] %v913_v54  ;;  %v398_v2 = vmul.f32 %v1750_v42, %v1105_v57  ;;  %v1108_v3 = vunpack.c.l.bf16 %v1216_v53  ;;  %v1180_v8 = vunpack.c.l.bf16 %v1234_v58  ;;  %v1181_v9 = vunpack.c.h.bf16 %v1234_v58 }
  0x7a   :  { %v915_v5 = vmax.f32 %v851_v59, 0.0  ;;  %v708_v6 = vsel %vm575_vm0, %v706_v61, %v707_v62  ;;  %978 = vst [vmem:[%s1960_s4 + $0x190] sm:$0xff] %v914_v63  ;;  %v709_v13 = vrot.slane %v323_v0, 1  ;;  %v1109_v17 = vunpack.c.h.bf16 %v1216_v53  ;;  %v237_v61 = vld [vmem:[%s1957_s1 + $0x18c] sm:$0xff]  }
  0x7b   :  { %v852_v11 = vadd.f32 %v708_v6, %v467_v60  ;;  %v468_v12 = vadd.f32 %v1766_v51, %v398_v2  ;;  %v399_v14 = vmul.f32 %v1750_v42, %v1108_v3  ;;  %v711_v15 = vrot.slane %v1180_v8, 1 }
  0x7c   :  { %979 = vst [vmem:[%s1960_s4 + $0x198] sm:$0xff] %v915_v5  ;;  %v712_v16 = vrot.slane %v1181_v9, 1  ;;  %v326_v18 = vunpack.c.l.bf16 %v230_v4  ;;  %v710_v21 = vsel %vm575_vm0, %v707_v62, %v709_v13  ;;  %v1112_v23 = vunpack.c.l.bf16 %v1217_v10  ;;  %v1220_v13 = vld [vmem:[%s1956_s0 + $0xf8] sm:$0xff]  }
  0x7d   :  { %v916_v20 = vmax.f32 %v852_v11, 0.0  ;;  %v469_v22 = vadd.f32 %v1766_v51, %v399_v14  ;;  %v853_v24 = vadd.f32 %v710_v21, %v468_v12  ;;  %v400_v26 = vmul.f32 %v1750_v42, %v1109_v17  ;;  %v239_v12 = vld [vmem:[%s1957_s1 + $0x194] sm:$0x1] }
  0x7e   :  { %v713_v25 = vsel %vm575_vm0, %v711_v15, %v712_v16  ;;  %v714_v27 = vrot.slane %v326_v18, 1  ;;  %v327_v29 = vunpack.c.l.bf16 %v231_v19  ;;  %v328_v30 = vunpack.c.h.bf16 %v231_v19  ;;  %v1236_v18 = vld [vmem:[%s1957_s1 + $0x198] sm:$0xff]  }
  0x7f   :  { %980 = vst [vmem:[%s1960_s4 + $0x1a0] sm:$0xff] %v916_v20  ;;  %v854_v28 = vadd.f32 %v713_v25, %v469_v22  ;;  %v401_v31 = vmul.f32 %v1750_v42, %v1112_v23  ;;  %v917_v34 = vmax.f32 %v853_v24, 0.0  ;;  %v470_v35 = vadd.f32 %v1766_v51, %v400_v26 }
  0x80   :  { %v715_v36 = vsel %vm575_vm0, %v712_v16, %v714_v27  ;;  %v1113_v37 = vunpack.c.h.bf16 %v1217_v10  ;;  %v716_v40 = vrot.slane %v327_v29, 1  ;;  %v717_v41 = vrot.slane %v328_v30, 1  ;;  %v242_v27 = vld [vmem:[%s1957_s1 + $0x1a0] sm:$0x1] }
  0x81   :  { %v918_v38 = vmax.f32 %v854_v28, 0.0  ;;  %v471_v39 = vadd.f32 %v1766_v51, %v401_v31  ;;  %981 = vst [vmem:[%s1960_s4 + $0x1a8] sm:$0xff] %v917_v34  ;;  %v855_v43 = vadd.f32 %v715_v36, %v470_v35  ;;  %v329_v44 = vunpack.c.l.bf16 %v233_v32 }
  0x82   :  { %v402_v7 = vmul.f32 %v1750_v42, %v1113_v37  ;;  %v1116_v45 = vunpack.c.l.bf16 %v1218_v33  ;;  %v718_v47 = vsel %vm575_vm0, %v716_v40, %v717_v41  ;;  %v1184_v48 = vunpack.c.l.bf16 %v1235_v1 }
  0x83   :  { %982 = vst [vmem:[%s1960_s4 + $0x1b0] sm:$0xff] %v918_v38  ;;  %v1185_v49 = vunpack.c.h.bf16 %v1235_v1  ;;  %v1117_v50 = vunpack.c.h.bf16 %v1218_v33  ;;  %v919_v53 = vmax.f32 %v855_v43, 0.0  ;;  %v856_v54 = vadd.f32 %v718_v47, %v471_v39 }
  0x84   :  { %v472_v55 = vadd.f32 %v1766_v51, %v402_v7  ;;  %v719_v56 = vrot.slane %v329_v44, 1  ;;  %v403_v57 = vmul.f32 %v1750_v42, %v1116_v45  ;;  %v721_v58 = vrot.slane %v1184_v48, 1 }
  0x85   :  { %v722_v59 = vrot.slane %v1185_v49, 1  ;;  %v332_v60 = vunpack.c.l.bf16 %v236_v46  ;;  %983 = vst [vmem:[%s1960_s4 + $0x1b8] sm:$0xff] %v919_v53  ;;  %v920_v62 = vmax.f32 %v856_v54, 0.0  ;;  %v404_v0 = vmul.f32 %v1750_v42, %v1117_v50 }
  0x86   :  { %v720_v63 = vsel %vm575_vm0, %v717_v41, %v719_v56  ;;  %v1120_v2 = vunpack.c.l.bf16 %v1219_v52  ;;  %v473_v4 = vadd.f32 %v1766_v51, %v403_v57  ;;  %v333_v9 = vunpack.c.l.bf16 %v237_v61 }
  0x87   :  { %v857_v3 = vadd.f32 %v720_v63, %v472_v55  ;;  %v723_v5 = vsel %vm575_vm0, %v721_v58, %v722_v59  ;;  %v724_v6 = vrot.slane %v332_v60, 1  ;;  %984 = vst [vmem:[%s1960_s4 + $0x1c0] sm:$0xff] %v920_v62  ;;  %v474_v8 = vadd.f32 %v1766_v51, %v404_v0 }
  0x88   :  { %v334_v10 = vunpack.c.h.bf16 %v237_v61  ;;  %v405_v11 = vmul.f32 %v1750_v42, %v1120_v2  ;;  %v858_v15 = vadd.f32 %v723_v5, %v473_v4  ;;  %v1121_v17 = vunpack.c.h.bf16 %v1219_v52 }
  0x89   :  { %v921_v14 = vmax.f32 %v857_v3, 0.0  ;;  %v725_v16 = vsel %vm575_vm0, %v722_v59, %v724_v6  ;;  %v726_v21 = vrot.slane %v333_v9, 1  ;;  %v335_v24 = vunpack.c.l.bf16 %v239_v12 }
  0x8a   :  { %v859_v19 = vadd.f32 %v725_v16, %v474_v8  ;;  %v475_v20 = vadd.f32 %v1766_v51, %v405_v11  ;;  %v727_v22 = vrot.slane %v334_v10, 1  ;;  %v922_v23 = vmax.f32 %v858_v15, 0.0 }
  0x8b   :  { %985 = vst [vmem:[%s1960_s4 + $0x1c8] sm:$0xff] %v921_v14  ;;  %v406_v25 = vmul.f32 %v1750_v42, %v1121_v17  ;;  %v1124_v26 = vunpack.c.l.bf16 %v1220_v13  ;;  %v1188_v30 = vunpack.c.l.bf16 %v1236_v18  ;;  %v1189_v31 = vunpack.c.h.bf16 %v1236_v18 }
  0x8c   :  { %v923_v28 = vmax.f32 %v859_v19, 0.0  ;;  %v728_v29 = vsel %vm575_vm0, %v726_v21, %v727_v22  ;;  %986 = vst [vmem:[%s1960_s4 + $0x1d0] sm:$0xff] %v922_v23  ;;  %v729_v34 = vrot.slane %v335_v24, 1  ;;  %v1125_v1 = vunpack.c.h.bf16 %v1220_v13 }
  0x8d   :  { %v860_v32 = vadd.f32 %v728_v29, %v475_v20  ;;  %v476_v33 = vadd.f32 %v1766_v51, %v406_v25  ;;  %v407_v35 = vmul.f32 %v1750_v42, %v1124_v26  ;;  %v731_v36 = vrot.slane %v1188_v30, 1 }
  0x8e   :  { %987 = vst [vmem:[%s1960_s4 + $0x1d8] sm:$0xff] %v923_v28  ;;  %v732_v37 = vrot.slane %v1189_v31, 1  ;;  %v338_v38 = vunpack.c.l.bf16 %v242_v27  ;;  %v730_v40 = vsel %vm575_vm0, %v727_v22, %v729_v34  ;;  %v408_v7 = vmul.f32 %v1750_v42, %v1125_v1 }
  0x8f   :  { %v924_v39 = vmax.f32 %v860_v32, 0.0  ;;  %v477_v41 = vadd.f32 %v1766_v51, %v407_v35  ;;  %v861_v43 = vadd.f32 %v730_v40, %v476_v33 }
  0x90   :  { %v733_v44 = vsel %vm575_vm0, %v731_v36, %v732_v37  ;;  %v734_v45 = vrot.slane %v338_v38, 1  ;;  %v478_v48 = vadd.f32 %v1766_v51, %v408_v7 }
  0x91   :  { %988 = vst [vmem:[%s1960_s4 + $0x1e0] sm:$0xff] %v924_v39  ;;  %v862_v46 = vadd.f32 %v733_v44, %v477_v41  ;;  %v925_v47 = vmax.f32 %v861_v43, 0.0 }
  0x92   :  { %v735_v49 = vsel %vm575_vm0, %v732_v37, %v734_v45 }
  0x93   :  { %v926_v50 = vmax.f32 %v862_v46, 0.0  ;;  %989 = vst [vmem:[%s1960_s4 + $0x1e8] sm:$0xff] %v925_v47  ;;  %v863_v52 = vadd.f32 %v735_v49, %v478_v48 }
  0x95   :  { %990 = vst [vmem:[%s1960_s4 + $0x1f0] sm:$0xff] %v926_v50  ;;  %v927_v42 = vmax.f32 %v863_v52, 0.0 }
  0x97   :  { %991 = vst [vmem:[%s1960_s4 + $0x1f8] sm:$0xff] %v927_v42 }

// kernel: basic_block_bn_forward.3
= control target key start
LH: loop header
LB: loop body
LE: loop exit
PB: predicated region body
PF: predicated region fallthrough
CT: control target
= control target key end

     0   :  { %s5325_s15 = smov 0   ;;  %s5327_s16 = smov 0   ;;  %s6386_s0 = inlined_call_operand.vmem [shape: bf16[2,18,18,128], index: 0, kind: input, shape index: {}]   ;;  %s6387_s1 = inlined_call_operand.vmem [shape: bf16[9,128,128], index: 1, kind: input, shape index: {}]   ;;  %s6388_s2 = inlined_call_operand.vmem [shape: bf16[2,16,16,128], index: 2, kind: output, shape index: {0}]   ;;  %s6389_s3 = inlined_call_operand.vmem [shape: f32[2,1,128], index: 3, kind: output, shape index: {1}]   ;;  %s6390_s4 = inlined_call_operand.vmem [shape: f32[2,1,128], index: 4, kind: output, shape index: {2}]  }
   0x1   :  { %s5329_s17 = smov 0  }
   0x2 LB: > { %s27_s18 = sadd.s32 1, %s5293_s16  ;;  %p3784_p0 = scmp.ge.s32.totalorder %s5297_s17, 1  ;;  %s5297_s17 = sphi %s5329_s17, %s15_s17   ;;  %s5293_s16 = sphi %s5327_s16, %s6435_s16   ;;  %s5289_s15 = sphi %s5325_s15, %s6434_s15  }
   0x3   : > { %p29_p1 = scmp.ge.s32.totalorder %s27_s18, 2  ;;  %p185_p2 = scmp.lt.s32.totalorder %s5297_s17, 3 }
   0x5   : > { %s6437_s18 = smov (%p29_p1, %s27_s18), 0  ;;  %p186_p3 = pnand %p3784_p0, %p185_p2 }
   0x7   : > { %189 = sbr.rel (%p186_p3) target bundleno = 578 (0x242), region = 28 }
   0xe   : > { %v5168_v0 = vld [vmem:[%s6387_s1 + $0x40] sm:$0xff]   ;;  %p220_p4 = scmp.lt.s32.totalorder %s5289_s15, 1  ;;  %v5170_v2 = vld [vmem:[%s6387_s1 + $0x48] sm:$0xff]   ;;  %v5172_v4 = vld [vmem:[%s6387_s1 + $0x50] sm:$0xff]   ;;  %vm310_vm0 = vsmask.f32 3328 }
   0xf   : > { %v5169_v1 = vld [vmem:[%s6387_s1 + $0x100] sm:$0xff]   ;;  %4438 = vmatprep.subr.bf16.mxu1 %v5168_v0  ;;  %v5171_v3 = vld [vmem:[%s6387_s1 + $0x108] sm:$0xff]   ;;  %v5173_v5 = vld [vmem:[%s6387_s1 + $0x110] sm:$0xff]   ;;  %vm311_vm1 = vsmask.f32 7440  ;;  %vm1308_vm3 = vcmask 1042432  }
  0x10   : > { %4630 = vmatprep.subr.bf16.mxu0 %v5169_v1  ;;  %4439 = vmatpush3.bf16.msra.mxu1 %v5168_v0  ;;  %s6439_s15 = smov (!%p220_p4, %s5289_s15), 1  ;;  %v5174_v6 = vld [vmem:[%s6387_s1 + $0x58] sm:$0xff]   ;;  %v5176_v8 = vld [vmem:[%s6387_s1 + $0x60] sm:$0xff]   ;;  %v5178_v10 = vld [vmem:[%s6387_s1 + $0x68] sm:$0xff]   ;;  %vm1309_vm4 = vcmask 1046532  }
  0x11   : > { %4631 = vmatpush3.bf16.msra.mxu0 %v5169_v1  ;;  %4440 = vmatprep.subr.bf16.mxu1 %v5170_v2  ;;  %v5175_v7 = vld [vmem:[%s6387_s1 + $0x118] sm:$0xff]   ;;  %s5142_s9 = smul.u32 216, %s6439_s15  ;;  %v5177_v9 = vld [vmem:[%s6387_s1 + $0x120] sm:$0xff]   ;;  %v5179_v11 = vld [vmem:[%s6387_s1 + $0x128] sm:$0xff]   ;;  %s6329_s10 = scalar_lea.vmem %s6389_s3, %s6439_s15 }
  0x12   : > { %4632 = vmatprep.subr.bf16.mxu0 %v5171_v3  ;;  %v5180_v17 = vld [vmem:[%s6387_s1 + $0x70] sm:$0xff]   ;;  %v5182_v36 = vld [vmem:[%s6387_s1 + $0x78] sm:$0xff]   ;;  %vm5424_vm2 = vmor %vm310_vm0, %vm311_vm1  ;;  %s6335_s13 = scalar_lea.vmem %s6390_s4, %s6439_s15  ;;  %s4094_s14 = sshll.u32 %s6439_s15, 7 }
  0x13   : > { %s5379_s20 = scalar_lea.vmem %s6386_s0, %s5142_s9  ;;  %v5181_v31 = vld [vmem:[%s6387_s1 + $0x130] sm:$0xff]   ;;  %v5183_v53 = vld [vmem:[%s6387_s1 + $0x138] sm:$0xff]   ;;  %v5184_v1 = vld [vmem:[%s6387_s1] sm:$0xff]   ;;  %s6351_s22 = scalar_lea.vmem %s6388_s2, %s4094_s14 }
  0x14   : > { %4441 = vmatpush3.bf16.msra.mxu1 %v5170_v2  ;;  %v5388_v12 = vld [vmem:[%s5379_s20] sm:$0xf]  ;;  %v5391_v13 = vld [vmem:[%s5379_s20 + $0x4] sm:$0xf]  ;;  %v242_v14 = vld [vmem:[%s5379_s20 + $0x8] sm:$0x1] }
  0x15   : > { %4633 = vmatpush3.bf16.msra.mxu0 %v5171_v3  ;;  %4442 = vmatprep.subr.bf16.mxu1 %v5172_v4  ;;  %v314_v15 = vshrl.u32 %v5388_v12, 16  ;;  %v317_v16 = vshll.u32 %v5388_v12, 16  ;;  %v323_v18 = vshll.u32 %v5391_v13, 16  ;;  %v327_v19 = vshrl.u32 %v5391_v13, 16  ;;  %v5402_v21 = vld [vmem:[%s5379_s20 + $0xc] sm:$0xf]  ;;  %vm5631_vm5 = vmor %vm1308_vm3, %vm1309_vm4 }
  0x16   : > { %4634 = vmatprep.subr.bf16.mxu0 %v5173_v5  ;;  %v333_v20 = vshll.u32 %v242_v14, 16  ;;  %v5405_v24 = vld [vmem:[%s5379_s20 + $0x10] sm:$0xf]  ;;  %v5408_v25 = vld [vmem:[%s5379_s20 + $0x14] sm:$0x1]  ;;  %v338_v30 = vshrl.u32 %v5402_v21, 16 }
  0x17   : > { %v316_v22 = vrot.slane %v314_v15, 4  ;;  %v319_v23 = vrot.slane %v317_v16, 5  ;;  %v325_v27 = vrot.slane %v323_v18, 5  ;;  %v329_v28 = vrot.slane %v327_v19, 4  ;;  %v5430_v41 = vld [vmem:[%s5379_s20 + $0x18] sm:$0xf] }
  0x18   : > { %4443 = vmatpush3.bf16.msra.mxu1 %v5172_v4  ;;  %v335_v29 = vrot.slane %v333_v20, 5  ;;  %v341_v33 = vshll.u32 %v5402_v21, 16  ;;  %v347_v34 = vshll.u32 %v5405_v24, 16  ;;  %v351_v35 = vshrl.u32 %v5405_v24, 16  ;;  %v5433_v42 = vld [vmem:[%s5379_s20 + $0x1c] sm:$0xf] }
  0x19   : > { %4635 = vmatpush3.bf16.msra.mxu0 %v5173_v5  ;;  %4444 = vmatprep.subr.bf16.mxu1 %v5174_v6  ;;  %v320_v32 = vor.u32 %v319_v23, %v316_v22  ;;  %v330_v38 = vor.u32 %v329_v28, %v325_v27  ;;  %v340_v39 = vrot.slane %v338_v30, 4  ;;  %v357_v40 = vshll.u32 %v5408_v25, 16  ;;  %v5440_v48 = vld [vmem:[%s5379_s20 + $0x20] sm:$0x1]  ;;  %v5457_v3 = vld [vmem:[%s5379_s20 + $0x24] sm:$0xf] }
  0x1a   : > { %4636 = vmatprep.subr.bf16.mxu0 %v5175_v7  ;;  %v5437_v43 = vcombine.low %v5402_v21, %v5405_v24  ;;  %v343_v45 = vrot.slane %v341_v33, 5  ;;  %v349_v46 = vrot.slane %v347_v34, 5  ;;  %v353_v47 = vrot.slane %v351_v35, 4  ;;  %v5472_v14 = vld [vmem:[%s5379_s20 + $0x2c] sm:$0x1]  ;;  %v5274_v37 = vld [vmem:[%s6387_s1 + $0x138] sm:$0xff]  }
  0x1b   : > { %v321_v44 = vrot.slane %v320_v32, 4  ;;  %v331_v49 = vrot.slane %v330_v38, 4  ;;  %v359_v50 = vrot.slane %v357_v40, 5  ;;  %v362_v51 = vshrl.u32 %v5430_v41, 16  ;;  %v5477_v22 = vld [vmem:[%s5379_s20 + $0x30] sm:$0xf] }
  0x1c   : > { %4445 = vmatpush3.bf16.msra.mxu1 %v5174_v6  ;;  %v365_v52 = vshll.u32 %v5430_v41, 16  ;;  %v344_v55 = vor.u32 %v343_v45, %v340_v39  ;;  %v354_v56 = vor.u32 %v353_v47, %v349_v46  ;;  %v371_v57 = vshll.u32 %v5433_v42, 16  ;;  %v5482_v30 = vld [vmem:[%s5379_s20 + $0x34] sm:$0xf]  ;;  %v5187_v34 = vld [vmem:[%s6387_s1 + $0x8] sm:$0xff]  }
  0x1d   : > { %4637 = vmatpush3.bf16.msra.mxu0 %v5175_v7  ;;  %4446 = vmatprep.subr.bf16.mxu1 %v5176_v8  ;;  %v326_v54 = vsel %vm5424_vm2, %v321_v44, %v325_v27  ;;  %v336_v58 = vsel %vm5424_vm2, %v331_v49, %v335_v29  ;;  %v364_v59 = vrot.slane %v362_v51, 4  ;;  %v375_v61 = vshrl.u32 %v5433_v42, 16  ;;  %v5491_v35 = vld [vmem:[%s5379_s20 + $0x38] sm:$0x1] }
  0x1e   : > { %4638 = vmatprep.subr.bf16.mxu0 %v5177_v9  ;;  %v367_v60 = vrot.slane %v365_v52, 5  ;;  %v3804_v62 = vcombine.low %v326_v54, %v336_v58  ;;  %v345_v63 = vrot.slane %v344_v55, 4  ;;  %v355_v0 = vrot.slane %v354_v56, 4  ;;  %v5506_v58 = vld [vmem:[%s5379_s20 + $0x3c] sm:$0xf] }
  0x1f   : > { %v373_v2 = vrot.slane %v371_v57, 5  ;;  %v377_v5 = vrot.slane %v375_v61, 4  ;;  %v381_v6 = vshll.u32 %v5440_v48, 16  ;;  %v1330_v7 = vrot.slane %v5440_v48, 5 }
  0x20   : > { %4447 = vmatpush3.bf16.msra.mxu1 %v5176_v8  ;;  %v368_v4 = vor.u32 %v367_v60, %v364_v59  ;;  %v5185_v8 = vld [vmem:[%s6387_s1 + $0x140] sm:$0xff]   ;;  %4454 = vmatprep.mubr.bf16.mxu1 %v3804_v62  ;;  %v386_v15 = vshrl.u32 %v5457_v3, 16  ;;  %v389_v16 = vshll.u32 %v5457_v3, 16  ;;  %v405_v33 = vshll.u32 %v5472_v14, 16  ;;  %v5190_v59 = vld [vmem:[%s6387_s1 + $0x10] sm:$0xff]  }
  0x21   : > { %4639 = vmatpush3.bf16.msra.mxu0 %v5177_v9  ;;  %4448 = vmatprep.subr.bf16.mxu1 %v5178_v10  ;;  %v5465_v9 = vld [vmem:[%s5379_s20 + $0x28] sm:$0xf]  ;;  %v378_v19 = vor.u32 %v377_v5, %v373_v2  ;;  %v383_v20 = vrot.slane %v381_v6, 5  ;;  %v413_v44 = vshll.u32 %v5477_v22, 16  ;;  %v423_v56 = vshrl.u32 %v5482_v30, 16 }
  0x22   : > { %4640 = vmatprep.subr.bf16.mxu0 %v5179_v11  ;;  %v369_v18 = vrot.slane %v368_v4, 4  ;;  %v388_v23 = vrot.slane %v386_v15, 4  ;;  %v391_v27 = vrot.slane %v389_v16, 5  ;;  %v395_v28 = vshll.u32 %v5465_v9, 16  ;;  %v5188_v16 = vld [vmem:[%s6387_s1 + $0x150] sm:$0xff]  }
  0x23   : > { %v399_v29 = vshrl.u32 %v5465_v9, 16  ;;  %v379_v32 = vrot.slane %v378_v19, 4  ;;  %v407_v47 = vrot.slane %v405_v33, 5  ;;  %v415_v54 = vrot.slane %v413_v44, 5  ;;  %v5546_v33 = vld [vmem:[%s5379_s20 + $0x50] sm:$0x1] }
  0x24   : > { %4449 = vmatpush3.bf16.msra.mxu1 %v5178_v10  ;;  %v350_v10 = vsel %vm5424_vm2, %v345_v63, %v349_v46  ;;  %v392_v38 = vor.u32 %v391_v27, %v388_v23  ;;  %v397_v39 = vrot.slane %v395_v28, 5  ;;  %v5186_v46 = vld [vmem:[%s6387_s1 + $0x148] sm:$0xff]   ;;  %v429_v57 = vshll.u32 %v5491_v35, 16 }
  0x25   : > { %4641 = vmatpush3.bf16.msra.mxu0 %v5179_v11  ;;  %4450 = vmatprep.subr.bf16.mxu1 %v5180_v17  ;;  %v360_v11 = vsel %vm5424_vm2, %v355_v0, %v359_v50  ;;  %v401_v40 = vrot.slane %v399_v29, 4  ;;  %v384_v45 = vsel %vm5424_vm2, %v379_v32, %v383_v20  ;;  %v419_v50 = vshll.u32 %v5482_v30, 16  ;;  %v5520_v0 = vld [vmem:[%s5379_s20 + $0x40] sm:$0xf]  ;;  %v5537_v27 = vld [vmem:[%s5379_s20 + $0x48] sm:$0xf] }
  0x26   : > { %4642 = vmatprep.subr.bf16.mxu0 %v5181_v31  ;;  %v393_v52 = vrot.slane %v392_v38, 4  ;;  %v5513_v60 = vcombine.low %v5430_v41, %v5433_v42  ;;  %v425_v4 = vrot.slane %v423_v56, 4  ;;  %v431_v5 = vrot.slane %v429_v57, 5  ;;  %v5540_v28 = vld [vmem:[%s5379_s20 + $0x4c] sm:$0xf] }
  0x27   : > { %v421_v55 = vrot.slane %v419_v50, 5  ;;  %v437_v6 = vshll.u32 %v5506_v58, 16  ;;  %v467_v44 = vshll.u32 %v5540_v28, 16  ;;  %v471_v50 = vshrl.u32 %v5540_v28, 16 }
  0x28   : > { %4451 = vmatpush3.bf16.msra.mxu1 %v5180_v17  ;;  %v3805_v17 = vcombine.low %v350_v10, %v360_v11  ;;  %v398_v61 = vsel %vm5424_vm2, %v393_v52, %v397_v39  ;;  %v443_v10 = vshll.u32 %v5520_v0, 16 }
  0x29   : > { %4643 = vmatpush3.bf16.msra.mxu0 %v5181_v31  ;;  %4452 = vmatprep.subr.bf16.mxu1 %v5182_v36  ;;  %v374_v31 = vsel %vm5424_vm2, %v369_v18, %v373_v2  ;;  %v434_v2 = vshrl.u32 %v5506_v58, 16  ;;  %v426_v19 = vor.u32 %v425_v4, %v421_v55  ;;  %v439_v20 = vrot.slane %v437_v6, 5  ;;  %v5577_v6 = vld [vmem:[%s5379_s20 + $0x58] sm:$0xf] }
  0x2a   : > { %4644 = vmatprep.subr.bf16.mxu0 %v5183_v53  ;;  %4646 = vmatprep.mubr.bf16.mxu0 %v3805_v17  ;;  %v5501_v51 = vcombine.low %v374_v31, %v384_v45  ;;  %v445_v23 = vrot.slane %v443_v10, 5  ;;  %v5189_v45 = vld [vmem:[%s6387_s1 + $0x158] sm:$0xff]  }
  0x2b   : > { %v427_v38 = vrot.slane %v426_v19, 4  ;;  %v5580_v10 = vld [vmem:[%s5379_s20 + $0x5c] sm:$0x1] }
  0x2c   : > { %4453 = vmatpush3.bf16.msra.mxu1 %v5182_v36  ;;  %v410_v36 = vshrl.u32 %v5477_v22, 16 }
  0x2d   : > { %4645 = vmatpush3.bf16.msra.mxu0 %v5183_v53  ;;  %4486 = vmatprep.subr.bf16.mxu1 %v5184_v1  ;;  %v402_v53 = vor.u32 %v401_v40, %v397_v39  ;;  %v461_v40 = vshll.u32 %v5537_v27, 16  ;;  %v432_v52 = vsel %vm5424_vm2, %v427_v38, %v431_v5  ;;  %v5574_v5 = vld [vmem:[%s5379_s20 + $0x54] sm:$0xf] }
  0x2e   : > { %4678 = vmatprep.subr.bf16.mxu0 %v5185_v8  ;;  %v412_v49 = vrot.slane %v410_v36, 4  ;;  %v5193_v36 = vld [vmem:[%s6387_s1 + $0x18] sm:$0xff]   ;;  %v482_v19 = vshrl.u32 %v5574_v5, 16 }
  0x2f   : > { %4455 = vmatmul.mubr.bf16.vlgmr.msra.gmra.mrb[0].mxu1 %v3805_v17  ;;  %v403_v62 = vrot.slane %v402_v53, 4  ;;  %v447_v17 = vshrl.u32 %v5520_v0, 16 }
  0x30   : > { %4487 = vmatpush3.bf16.msra.mxu1 %v5184_v1  ;;  %4647 = vmatmul.mubr.bf16.vlgmr.msra.gmra.mrb[0].mxu0 %v5501_v51  ;;  %v416_v63 = vor.u32 %v415_v54, %v412_v49  ;;  %v5523_v1 = vld [vmem:[%s5379_s20 + $0x44] sm:$0x1]  ;;  %v463_v54 = vrot.slane %v461_v40, 5  ;;  %v495_v40 = vshrl.u32 %v5577_v6, 16 }
  0x31   : > { %4488 = vmatprep.subr.bf16.mxu1 %v5187_v34  ;;  %4458 = vmatprep.mubr.bf16.mxu1 %v5501_v51  ;;  %v408_v11 = vsel %vm5424_vm2, %v403_v62, %v407_v47  ;;  %v449_v31 = vrot.slane %v447_v17, 4  ;;  %v453_v32 = vshll.u32 %v5523_v1, 16  ;;  %v477_v62 = vshll.u32 %v5546_v33, 16 }
  0x32   : > { %4679 = vmatpush3.bf16.msra.mxu0 %v5185_v8  ;;  %v417_v15 = vrot.slane %v416_v63, 4  ;;  %v436_v8 = vrot.slane %v434_v2, 4  ;;  %v5534_v18 = vcombine.low %v398_v61, %v408_v11  ;;  %v473_v61 = vrot.slane %v471_v50, 4  ;;  %v5191_v63 = vld [vmem:[%s6387_s1 + $0x160] sm:$0xff]   ;;  %v5614_v50 = vld [vmem:[%s5379_s20 + $0x68] sm:$0x1] }
  0x33   : > { %4680 = vmatprep.subr.bf16.mxu0 %v5186_v46  ;;  %v450_v47 = vor.u32 %v449_v31, %v445_v23  ;;  %v455_v49 = vrot.slane %v453_v32, 5  ;;  %v5196_v2 = vld [vmem:[%s6387_s1 + $0x20] sm:$0xff]   ;;  %v5584_v11 = vcombine.low %v5457_v3, %v5465_v9  ;;  %v479_v17 = vrot.slane %v477_v62, 5 }
  0x34   : > { %4489 = vmatpush3.bf16.msra.mxu1 %v5187_v34  ;;  %6409 = vst [vmem:[#allocation2_spill] sm:$0xff] %v5534_v18  ;;  %v422_v29 = vsel %vm5424_vm2, %v417_v15, %v421_v55  ;;  %v458_v34 = vshrl.u32 %v5537_v27, 16  ;;  %4650 = vmatprep.mubr.bf16.mxu0 %v5534_v18  ;;  %v440_v39 = vor.u32 %v439_v20, %v436_v8  ;;  %v469_v55 = vrot.slane %v467_v44, 5  ;;  %v5600_v32 = vld [vmem:[%s5379_s20 + $0x60] sm:$0xf] }
  0x35   : > { %4490 = vmatprep.subr.bf16.mxu1 %v5190_v59  ;;  %v5562_v56 = vcombine.low %v422_v29, %v432_v52  ;;  %v451_v57 = vrot.slane %v450_v47, 4  ;;  %v5588_v15 = vcombine.low %v5477_v22, %v5482_v30  ;;  %v485_v29 = vshll.u32 %v5574_v5, 16  ;;  %v5608_v47 = vld [vmem:[%s5379_s20 + $0x64] sm:$0xf] }
  0x36   : > { %4681 = vmatpush3.bf16.msra.mxu0 %v5186_v46  ;;  %v460_v46 = vrot.slane %v458_v34, 4  ;;  %v441_v53 = vrot.slane %v440_v39, 4  ;;  %v474_v8 = vor.u32 %v473_v61, %v469_v55  ;;  %v491_v31 = vshll.u32 %v5577_v6, 16  ;;  %v5198_v34 = vld [vmem:[%s6387_s1 + $0x28] sm:$0xff]  }
  0x37   : > { %4459 = vmatmul.mubr.bf16.gmra.mrb[4].mxu1 %v5534_v18  ;;  %4682 = vmatprep.subr.bf16.mxu0 %v5188_v16  ;;  %6410 = vst [vmem:[#allocation3_spill] sm:$0xff] %v5562_v56  ;;  %v484_v39 = vrot.slane %v482_v19, 4  ;;  %v501_v44 = vshll.u32 %v5580_v10, 16  ;;  %v506_v52 = vshrl.u32 %v5600_v32, 16  ;;  %v525_v19 = vshll.u32 %v5614_v50, 16 }
  0x38   : > { %4491 = vmatpush3.bf16.msra.mxu1 %v5190_v59  ;;  %v446_v4 = vsel %vm5424_vm2, %v441_v53, %v445_v23  ;;  %v464_v59 = vor.u32 %v463_v54, %v460_v46  ;;  %4651 = vmatmul.mubr.bf16.gmra.mrb[4].mxu0 %v5562_v56  ;;  %v475_v38 = vrot.slane %v474_v8, 4  ;;  %v493_v46 = vrot.slane %v491_v31, 5 }
  0x39   : > { %4492 = vmatprep.subr.bf16.mxu1 %v5193_v36  ;;  %4462 = vmatprep.mubr.bf16.mxu1 %v5562_v56  ;;  %v497_v54 = vrot.slane %v495_v40, 4  ;;  %v5642_v40 = vld [vmem:[%s5379_s20 + $0x6c] sm:$0xf] }
  0x3a   : > { %4683 = vmatpush3.bf16.msra.mxu0 %v5188_v16  ;;  %v456_v16 = vsel %vm5424_vm2, %v451_v57, %v455_v49  ;;  %v465_v23 = vrot.slane %v464_v59, 4  ;;  %v480_v53 = vsel %vm5424_vm2, %v475_v38, %v479_v17  ;;  %v503_v57 = vrot.slane %v501_v44, 5 }
  0x3b   : > { %4684 = vmatprep.subr.bf16.mxu0 %v5189_v45  ;;  %v5595_v20 = vcombine.low %v446_v4, %v456_v16  ;;  %v508_v4 = vrot.slane %v506_v52, 4  ;;  %v515_v59 = vshll.u32 %v5608_v47, 16  ;;  %v498_v16 = vor.u32 %v497_v54, %v493_v46 }
  0x3c   : > { %4493 = vmatpush3.bf16.msra.mxu1 %v5193_v36  ;;  %v470_v49 = vsel %vm5424_vm2, %v465_v23, %v469_v55  ;;  %v487_v36 = vrot.slane %v485_v29, 5  ;;  %v509_v55 = vshll.u32 %v5600_v32, 16  ;;  %v519_v17 = vshrl.u32 %v5608_v47, 16  ;;  %v5200_v29 = vld [vmem:[%s6387_s1 + $0x30] sm:$0xff]  }
  0x3d   : > { %6411 = vst [vmem:[#allocation4_spill] sm:$0xff] %v5595_v20  ;;  %4494 = vmatprep.subr.bf16.mxu1 %v5196_v2  ;;  %4654 = vmatprep.mubr.bf16.mxu0 %v5595_v20  ;;  %v5624_v61 = vcombine.low %v470_v49, %v480_v53  ;;  %v517_v31 = vrot.slane %v515_v59, 5  ;;  %v3853_v38 = vrot.slane %v5402_v21, 9  ;;  %v499_v44 = vrot.slane %v498_v16, 4  ;;  %v5649_v53 = vld [vmem:[%s5379_s20 + $0x70] sm:$0xf] }
  0x3e   : > { %4685 = vmatpush3.bf16.msra.mxu0 %v5189_v45  ;;  %v5192_v45 = vld [vmem:[%s6387_s1 + $0x168] sm:$0xff]   ;;  %v488_v62 = vor.u32 %v487_v36, %v484_v39  ;;  %v511_v8 = vrot.slane %v509_v55, 5  ;;  %v1320_v39 = vrot.slane %v5405_v24, 5  ;;  %v521_v36 = vrot.slane %v519_v17, 4 }
  0x3f   : > { %4463 = vmatmul.mubr.bf16.gmra.mrb[8].mxu1 %v5595_v20  ;;  %4686 = vmatprep.subr.bf16.mxu0 %v5191_v63  ;;  %6412 = vst [vmem:[#allocation5_spill] sm:$0xff] %v5624_v61  ;;  %v527_v52 = vrot.slane %v525_v19, 5  ;;  %v1323_v55 = vrot.slane %v5408_v25, 5  ;;  %v504_v59 = vsel %vm5424_vm2, %v499_v44, %v503_v57  ;;  %v539_v19 = vshll.u32 %v5649_v53, 16 }
  0x40   : > { %4495 = vmatpush3.bf16.msra.mxu1 %v5196_v2  ;;  %4466 = vmatprep.mubr.bf16.mxu1 %v5624_v61  ;;  %v489_v2 = vrot.slane %v488_v62, 4  ;;  %v512_v49 = vor.u32 %v511_v8, %v508_v4  ;;  %v1321_v24 = vsel %vm5631_vm5, %v3853_v38, %v1320_v39  ;;  %v1322_v54 = vrot.slane %v1320_v39, 4  ;;  %v5657_v62 = vld [vmem:[%s5379_s20 + $0x74] sm:$0x1]  ;;  %v5202_v4 = vld [vmem:[%s6387_s1 + $0x38] sm:$0xff]  }
  0x41   : > { %4496 = vmatprep.subr.bf16.mxu1 %v5198_v34  ;;  %4655 = vmatmul.mubr.bf16.gmra.mrb[8].mxu0 %v5624_v61  ;;  %v522_v8 = vor.u32 %v521_v36, %v517_v31  ;;  %v541_v36 = vrot.slane %v539_v19, 5  ;;  %v1341_v20 = vrot.slane %v5482_v30, 5 }
  0x42   : > { %4687 = vmatpush3.bf16.msra.mxu0 %v5191_v63  ;;  %v5194_v63 = vld [vmem:[%s6387_s1 + $0x170] sm:$0xff]   ;;  %v494_v21 = vsel %vm5424_vm2, %v489_v2, %v493_v46  ;;  %v513_v16 = vrot.slane %v512_v49, 4  ;;  %v530_v46 = vshrl.u32 %v5642_v40, 16  ;;  %v1324_v25 = vsel %vm5631_vm5, %v1322_v54, %v1323_v55  ;;  %v5672_v2 = vld [vmem:[%s5379_s20 + $0x78] sm:$0xf] }
  0x43   : > { %4688 = vmatprep.subr.bf16.mxu0 %v5192_v45  ;;  %v5665_v17 = vcombine.low %v494_v21, %v504_v59  ;;  %v523_v38 = vrot.slane %v522_v8, 4  ;;  %v5679_v39 = vcombine.low %v1321_v24, %v1324_v25  ;;  %v543_v21 = vshrl.u32 %v5649_v53, 16  ;;  %v5686_v54 = vld [vmem:[%s5379_s20 + $0x7c] sm:$0xf] }
  0x44   : > { %4497 = vmatpush3.bf16.msra.mxu1 %v5198_v34  ;;  %v533_v34 = vshll.u32 %v5642_v40, 16  ;;  %v518_v57 = vsel %vm5424_vm2, %v513_v16, %v517_v31  ;;  %v532_v44 = vrot.slane %v530_v46, 4  ;;  %v549_v31 = vshll.u32 %v5657_v62, 16  ;;  %v5693_v16 = vld [vmem:[%s5379_s20 + $0x80] sm:$0x1] }
  0x45   : > { %4498 = vmatprep.subr.bf16.mxu1 %v5200_v29  ;;  %6415 = vst [vmem:[#allocation6_spill] sm:$0xff] %v5665_v17  ;;  %4658 = vmatprep.mubr.bf16.mxu0 %v5665_v17  ;;  %v528_v55 = vsel %vm5424_vm2, %v523_v38, %v527_v52  ;;  %v3854_v59 = vrot.slane %v5430_v41, 9  ;;  %v1327_v24 = vrot.slane %v5433_v42, 5  ;;  %v554_v8 = vshrl.u32 %v5672_v2, 16  ;;  %v5701_v52 = vld [vmem:[%s6387_s1 + $0x80] sm:$0xff]  }
  0x46   : > { %4689 = vmatpush3.bf16.msra.mxu0 %v5192_v45  ;;  %v5195_v45 = vld [vmem:[%s6387_s1 + $0x178] sm:$0xff]   ;;  %v535_v49 = vrot.slane %v533_v34, 5  ;;  %v5696_v46 = vcombine.low %v518_v57, %v528_v55  ;;  %v545_v34 = vrot.slane %v543_v21, 4  ;;  %v551_v19 = vrot.slane %v549_v31, 5  ;;  %v5710_v38 = vld [vmem:[%s5379_s20 + $0x84] sm:$0xf] }
  0x47   : > { %4690 = vmatprep.subr.bf16.mxu0 %v5194_v63  ;;  %4467 = vmatmul.mubr.bf16.gmra.mrb[12].mxu1 %v5665_v17  ;;  %v1328_v41 = vsel %vm5631_vm5, %v3854_v59, %v1327_v24  ;;  %v1329_v42 = vrot.slane %v1327_v24, 4  ;;  %v556_v57 = vrot.slane %v554_v8, 4  ;;  %v563_v21 = vshll.u32 %v5686_v54, 16 }
  0x48   : > { %4499 = vmatpush3.bf16.msra.mxu1 %v5200_v29  ;;  %6416 = vst [vmem:[#allocation7_spill] sm:$0xff] %v5696_v46  ;;  %v536_v25 = vor.u32 %v535_v49, %v532_v44  ;;  %v5197_v29 = vld [vmem:[%s6387_s1 + $0x180] sm:$0xff]   ;;  %4470 = vmatprep.mubr.bf16.mxu1 %v5696_v46  ;;  %v546_v49 = vor.u32 %v545_v34, %v541_v36  ;;  %v567_v31 = vshrl.u32 %v5686_v54, 16  ;;  %v573_v24 = vshll.u32 %v5693_v16, 16 }
  0x49   : > { %4500 = vmatprep.subr.bf16.mxu1 %v5202_v4  ;;  %4659 = vmatmul.mubr.bf16.gmra.mrb[12].mxu0 %v5696_v46  ;;  %v1331_v55 = vsel %vm5631_vm5, %v1329_v42, %v1330_v7  ;;  %v3855_v8 = vrot.slane %v5457_v3, 9  ;;  %v565_v46 = vrot.slane %v563_v21, 5  ;;  %v5730_v3 = vld [vmem:[%s5379_s20 + $0x88] sm:$0xf] }
  0x4a   : > { %4691 = vmatpush3.bf16.msra.mxu0 %v5194_v63  ;;  %v557_v63 = vshll.u32 %v5672_v2, 16  ;;  %v537_v44 = vrot.slane %v536_v25, 4  ;;  %4694 = vmatprep.mubr.bf16.mxu0 %v5679_v39  ;;  %v547_v34 = vrot.slane %v546_v49, 4  ;;  %v5725_v26 = vcombine.low %v1328_v41, %v1331_v55 }
  0x4b   : > { %4692 = vmatprep.subr.bf16.mxu0 %v5195_v45  ;;  %v569_v7 = vrot.slane %v567_v31, 4  ;;  %v575_v42 = vrot.slane %v573_v24, 5  ;;  %v578_v41 = vshrl.u32 %v5710_v38, 16  ;;  %v5199_v31 = vld [vmem:[%s6387_s1 + $0x188] sm:$0xff]   ;;  %v5749_v24 = vld [vmem:[%s5379_s20 + $0x90] sm:$0xf] }
  0x4c   : > { %v559_v59 = vrot.slane %v557_v63, 5  ;;  %4501 = vmatpush3.bf16.msra.mxu1 %v5202_v4  ;;  %v542_v25 = vsel %vm5424_vm2, %v537_v44, %v541_v36  ;;  %v1334_v63 = vrot.slane %v5465_v9, 5  ;;  %v552_v4 = vsel %vm5424_vm2, %v547_v34, %v551_v19  ;;  %v5736_v36 = vld [vmem:[%s5379_s20 + $0x8c] sm:$0x1]  ;;  %v5752_v34 = vld [vmem:[%s5379_s20 + $0x94] sm:$0xf] }
  0x4d   : > { %4534 = vmatprep.subr.bf16.mxu1 %v5701_v52  ;;  %v581_v44 = vshll.u32 %v5710_v38, 16  ;;  %v570_v21 = vor.u32 %v569_v7, %v565_v46  ;;  %v580_v55 = vrot.slane %v578_v41, 4  ;;  %v597_v7 = vshll.u32 %v5736_v36, 16 }
  0x4e   : > { %4693 = vmatpush3.bf16.msra.mxu0 %v5195_v45  ;;  %v560_v48 = vor.u32 %v559_v59, %v556_v57  ;;  %v1337_v45 = vrot.slane %v5472_v14, 5  ;;  %v5740_v57 = vcombine.low %v542_v25, %v552_v4  ;;  %v1335_v9 = vsel %vm5631_vm5, %v3855_v8, %v1334_v63 }
  0x4f   : > { %4726 = vmatprep.subr.bf16.mxu0 %v5197_v29  ;;  %v1336_v19 = vrot.slane %v1334_v63, 4  ;;  %v583_v14 = vrot.slane %v581_v44, 5  ;;  %v587_v59 = vshll.u32 %v5730_v3, 16  ;;  %v591_v8 = vshrl.u32 %v5730_v3, 16 }
  0x50   : > { %6417 = vst [vmem:[#allocation8_spill] sm:$0xff] %v5740_v57  ;;  %v561_v49 = vrot.slane %v560_v48, 4  ;;  %4471 = vmatmul.mubr.bf16.gmra.mrb[16].mxu1 %v5740_v57  ;;  %v571_v48 = vrot.slane %v570_v21, 4  ;;  %v3856_v44 = vrot.slane %v5477_v22, 9  ;;  %v599_v21 = vrot.slane %v597_v7, 5  ;;  %v5201_v22 = vld [vmem:[%s6387_s1 + $0x190] sm:$0xff]  }
  0x51   : > { %4695 = vmatmul.mubr.bf16.vlgmr.msra.gmra.mrb[0].mxu0 %v5725_v26  ;;  %v1338_v63 = vsel %vm5631_vm5, %v1336_v19, %v1337_v45  ;;  %v584_v4 = vor.u32 %v583_v14, %v580_v55  ;;  %v589_v41 = vrot.slane %v587_v59, 5  ;;  %v1344_v45 = vrot.slane %v5491_v35, 5  ;;  %v5788_v59 = vld [vmem:[%s5379_s20 + $0x9c] sm:$0xf] }
  0x52   : > { %v566_v25 = vsel %vm5424_vm2, %v561_v49, %v565_v46  ;;  %4727 = vmatpush3.bf16.msra.mxu0 %v5197_v29  ;;  %v576_v57 = vsel %vm5424_vm2, %v571_v48, %v575_v42  ;;  %v5765_v46 = vcombine.low %v1335_v9, %v1338_v63  ;;  %v593_v49 = vrot.slane %v591_v8, 4  ;;  %v5776_v42 = vld [vmem:[%s5379_s20 + $0x98] sm:$0x1]  ;;  %v5791_v63 = vld [vmem:[%s5379_s20 + $0xa0] sm:$0xf] }
  0x53   : > { %v5767_v17 = vcombine.low %v566_v25, %v576_v57  ;;  %v585_v61 = vrot.slane %v584_v4, 4  ;;  %4728 = vmatprep.subr.bf16.mxu0 %v5199_v31  ;;  %v602_v57 = vshrl.u32 %v5749_v24, 16  ;;  %v605_v9 = vshll.u32 %v5749_v24, 16 }
  0x54   : > { %4698 = vmatprep.mubr.bf16.mxu0 %v5765_v46  ;;  %v594_v29 = vor.u32 %v593_v49, %v589_v41  ;;  %v611_v19 = vshll.u32 %v5752_v34, 16  ;;  %v1342_v35 = vsel %vm5631_vm5, %v3856_v44, %v1341_v20  ;;  %v1343_v55 = vrot.slane %v1341_v20, 4  ;;  %v5798_v20 = vld [vmem:[%s5379_s20 + $0xa4] sm:$0x1] }
  0x55   : > { %6418 = vst [vmem:[#allocation9_spill] sm:$0xff] %v5767_v17  ;;  %4474 = vmatprep.mubr.bf16.mxu1 %v5767_v17  ;;  %v590_v30 = vsel %vm5424_vm2, %v585_v61, %v589_v41  ;;  %v615_v14 = vshrl.u32 %v5752_v34, 16  ;;  %v604_v48 = vrot.slane %v602_v57, 4  ;;  %v607_v8 = vrot.slane %v605_v9, 5 }
  0x56   : > { %v595_v25 = vrot.slane %v594_v29, 4  ;;  %4729 = vmatpush3.bf16.msra.mxu0 %v5199_v31  ;;  %v613_v7 = vrot.slane %v611_v19, 5  ;;  %v1345_v4 = vsel %vm5631_vm5, %v1343_v55, %v1344_v45  ;;  %v621_v61 = vshll.u32 %v5776_v42, 16  ;;  %v5203_v45 = vld [vmem:[%s6387_s1 + $0x198] sm:$0xff]  }
  0x57   : > { %v617_v49 = vrot.slane %v615_v14, 4  ;;  %v3857_v41 = vrot.slane %v5506_v58, 9  ;;  %4730 = vmatprep.subr.bf16.mxu0 %v5201_v22  ;;  %v5802_v44 = vcombine.low %v1342_v35, %v1345_v4  ;;  %v608_v29 = vor.u32 %v607_v8, %v604_v48 }
  0x58   : > { %v600_v31 = vsel %vm5424_vm2, %v595_v25, %v599_v21  ;;  %v1348_v57 = vrot.slane %v5520_v0, 5  ;;  %v623_v58 = vrot.slane %v621_v61, 5  ;;  %v1351_v55 = vrot.slane %v5523_v1, 5  ;;  %v5816_v25 = vld [vmem:[%s5379_s20 + $0xa8] sm:$0xf] }
  0x59   : > { %v5808_v9 = vcombine.low %v590_v30, %v600_v31  ;;  %v618_v19 = vor.u32 %v617_v49, %v613_v7  ;;  %4699 = vmatmul.mubr.bf16.gmra.mrb[4].mxu0 %v5802_v44  ;;  %v609_v14 = vrot.slane %v608_v29, 4  ;;  %v626_v0 = vshrl.u32 %v5788_v59, 16  ;;  %v5207_v30 = vld [vmem:[%s6387_s1 + $0x1a0] sm:$0xff]   ;;  %v5826_v49 = vld [vmem:[%s5379_s20 + $0xac] sm:$0xf] }
  0x5a   : > { %v1349_v21 = vsel %vm5631_vm5, %v3857_v41, %v1348_v57  ;;  %v1350_v35 = vrot.slane %v1348_v57, 4  ;;  %v629_v1 = vshll.u32 %v5788_v59, 16  ;;  %v635_v8 = vshll.u32 %v5791_v63, 16  ;;  %4731 = vmatpush3.bf16.msra.mxu0 %v5201_v22 }
  0x5b   : > { %6419 = vst [vmem:[#allocation10_spill] sm:$0xff] %v5808_v9  ;;  %4475 = vmatmul.mubr.bf16.gmra.mrb[20].mxu1 %v5808_v9  ;;  %v619_v48 = vrot.slane %v618_v19, 4  ;;  %v639_v4 = vshrl.u32 %v5791_v63, 16  ;;  %v614_v61 = vsel %vm5424_vm2, %v609_v14, %v613_v7  ;;  %v628_v31 = vrot.slane %v626_v0, 4  ;;  %4732 = vmatprep.subr.bf16.mxu0 %v5203_v45  ;;  %v5841_v14 = vld [vmem:[%s5379_s20 + $0xb0] sm:$0x1] }
  0x5c   : > { %v1352_v41 = vsel %vm5631_vm5, %v1350_v35, %v1351_v55  ;;  %v645_v29 = vshll.u32 %v5798_v20, 16  ;;  %v631_v9 = vrot.slane %v629_v1, 5  ;;  %v637_v17 = vrot.slane %v635_v8, 5 }
  0x5d   : > { %v624_v57 = vsel %vm5424_vm2, %v619_v48, %v623_v58  ;;  %v5835_v19 = vcombine.low %v1349_v21, %v1352_v41  ;;  %v641_v56 = vrot.slane %v639_v4, 4  ;;  %v3858_v7 = vrot.slane %v5537_v27, 9 }
  0x5e   : > { %v5837_v22 = vcombine.low %v614_v61, %v624_v57  ;;  %v647_v18 = vrot.slane %v645_v29, 5  ;;  %v632_v55 = vor.u32 %v631_v9, %v628_v31  ;;  %v1355_v35 = vrot.slane %v5540_v28, 5  ;;  %4733 = vmatpush3.bf16.msra.mxu0 %v5203_v45  ;;  %v5211_v28 = vld [vmem:[%s6387_s1 + $0x1a8] sm:$0xff]  }
  0x5f   : > { %4702 = vmatprep.mubr.bf16.mxu0 %v5835_v19  ;;  %v1358_v0 = vrot.slane %v5546_v33, 5  ;;  %v650_v58 = vshrl.u32 %v5816_v25, 16  ;;  %v642_v21 = vor.u32 %v641_v56, %v637_v17  ;;  %v653_v48 = vshll.u32 %v5816_v25, 16  ;;  %4734 = vmatprep.subr.bf16.mxu0 %v5207_v30 }
  0x60   : > { %6420 = vst [vmem:[#allocation11_spill] sm:$0xff] %v5837_v22  ;;  %4478 = vmatprep.mubr.bf16.mxu1 %v5837_v22  ;;  %v659_v1 = vshll.u32 %v5826_v49, 16  ;;  %v663_v27 = vshrl.u32 %v5826_v49, 16  ;;  %v633_v9 = vrot.slane %v632_v55, 4  ;;  %v1356_v33 = vsel %vm5631_vm5, %v3858_v7, %v1355_v35  ;;  %v5863_v22 = vld [vmem:[%s5379_s20 + $0xb4] sm:$0xf] }
  0x61   : > { %v1357_v45 = vrot.slane %v1355_v35, 4  ;;  %v652_v8 = vrot.slane %v650_v58, 4  ;;  %v643_v56 = vrot.slane %v642_v21, 4  ;;  %v655_v4 = vrot.slane %v653_v48, 5  ;;  %v5870_v48 = vld [vmem:[%s5379_s20 + $0xb8] sm:$0xf] }
  0x62   : > { %v661_v61 = vrot.slane %v659_v1, 5  ;;  %v665_v41 = vrot.slane %v663_v27, 4  ;;  %v638_v31 = vsel %vm5424_vm2, %v633_v9, %v637_v17  ;;  %v669_v57 = vshll.u32 %v5841_v14, 16  ;;  %4735 = vmatpush3.bf16.msra.mxu0 %v5207_v30  ;;  %v5215_v17 = vld [vmem:[%s6387_s1 + $0x1b0] sm:$0xff]   ;;  %v5880_v27 = vld [vmem:[%s5379_s20 + $0xbc] sm:$0x1] }
  0x63   : > { %v1359_v29 = vsel %vm5631_vm5, %v1357_v45, %v1358_v0  ;;  %v3859_v55 = vrot.slane %v5574_v5, 9  ;;  %v648_v7 = vsel %vm5424_vm2, %v643_v56, %v647_v18  ;;  %v656_v58 = vor.u32 %v655_v4, %v652_v8  ;;  %4736 = vmatprep.subr.bf16.mxu0 %v5211_v28  ;;  %v5219_v4 = vld [vmem:[%s6387_s1 + $0x1b8] sm:$0xff]  }
  0x64   : > { %v5867_v35 = vcombine.low %v1356_v33, %v1359_v29  ;;  %v666_v21 = vor.u32 %v665_v41, %v661_v61  ;;  %v5875_v0 = vcombine.low %v638_v31, %v648_v7  ;;  %v671_v5 = vrot.slane %v669_v57, 5 }
  0x65   : > { %v1362_v1 = vrot.slane %v5577_v6, 5  ;;  %v1365_v30 = vrot.slane %v5580_v10, 5  ;;  %v657_v18 = vrot.slane %v656_v58, 4  ;;  %v674_v33 = vshrl.u32 %v5863_v22, 16 }
  0x66   : > { %6421 = vst [vmem:[#allocation12_spill] sm:$0xff] %v5875_v0  ;;  %4703 = vmatmul.mubr.bf16.gmra.mrb[8].mxu0 %v5867_v35  ;;  %v667_v9 = vrot.slane %v666_v21, 4  ;;  %v677_v45 = vshll.u32 %v5863_v22, 16  ;;  %4479 = vmatmul.mubr.bf16.gmra.mrb[24].mxu1 %v5875_v0  ;;  %v683_v6 = vshll.u32 %v5870_v48, 16  ;;  %v687_v10 = vshrl.u32 %v5870_v48, 16 }
  0x67   : > { %v1363_v8 = vsel %vm5631_vm5, %v3859_v55, %v1362_v1  ;;  %v1364_v56 = vrot.slane %v1362_v1, 4  ;;  %4737 = vmatpush3.bf16.msra.mxu0 %v5211_v28  ;;  %v662_v41 = vsel %vm5424_vm2, %v657_v18, %v661_v61  ;;  %v676_v29 = vrot.slane %v674_v33, 4 }
  0x68   : > { %v672_v31 = vsel %vm5424_vm2, %v667_v9, %v671_v5  ;;  %v679_v57 = vrot.slane %v677_v45, 5  ;;  %4738 = vmatprep.subr.bf16.mxu0 %v5215_v17  ;;  %v685_v58 = vrot.slane %v683_v6, 5  ;;  %v689_v28 = vrot.slane %v687_v10, 4 }
  0x69   : > { %v5897_v55 = vcombine.low %v662_v41, %v672_v31  ;;  %v1366_v7 = vsel %vm5631_vm5, %v1364_v56, %v1365_v30  ;;  %v693_v0 = vshll.u32 %v5880_v27, 16  ;;  %v3860_v61 = vrot.slane %v5600_v32, 9  ;;  %v5912_v30 = vld [vmem:[%s6387_s1 + $0x1c0] sm:$0xff]  }
  0x6a   : > { %v5901_v21 = vcombine.low %v1363_v8, %v1366_v7  ;;  %v680_v1 = vor.u32 %v679_v57, %v676_v29  ;;  %v690_v5 = vor.u32 %v689_v28, %v685_v58  ;;  %v1369_v18 = vrot.slane %v5608_v47, 5 }
  0x6b   : > { %4482 = vmatprep.mubr.bf16.mxu1 %v5897_v55  ;;  %v1372_v9 = vrot.slane %v5614_v50, 5  ;;  %v3861_v33 = vrot.slane %v5642_v40, 9  ;;  %4739 = vmatpush3.bf16.msra.mxu0 %v5215_v17  ;;  %v695_v8 = vrot.slane %v693_v0, 5  ;;  %v1376_v56 = vrot.slane %v5649_v53, 5 }
  0x6c   : > { %4706 = vmatprep.mubr.bf16.mxu0 %v5901_v21  ;;  %v681_v45 = vrot.slane %v680_v1, 4  ;;  %v1379_v6 = vrot.slane %v5657_v62, 5  ;;  %4740 = vmatprep.subr.bf16.mxu0 %v5219_v4  ;;  %v691_v10 = vrot.slane %v690_v5, 4  ;;  %v1370_v50 = vsel %vm5631_vm5, %v3860_v61, %v1369_v18 }
  0x6d   : > { %v1371_v41 = vrot.slane %v1369_v18, 4  ;;  %v3862_v17 = vrot.slane %v5672_v2, 9  ;;  %v1377_v29 = vsel %vm5631_vm5, %v3861_v33, %v1376_v56  ;;  %v1378_v57 = vrot.slane %v1376_v56, 4 }
  0x6e   : > { %v686_v31 = vsel %vm5424_vm2, %v681_v45, %v685_v58  ;;  %v1383_v0 = vrot.slane %v5686_v54, 5  ;;  %v696_v62 = vsel %vm5424_vm2, %v691_v10, %v695_v8  ;;  %v1386_v28 = vrot.slane %v5693_v16, 5 }
  0x6f   : > { %v1373_v7 = vsel %vm5631_vm5, %v1371_v41, %v1372_v9  ;;  %v3863_v1 = vrot.slane %v5710_v38, 9  ;;  %4741 = vmatpush3.bf16.msra.mxu0 %v5219_v4  ;;  %v5931_v61 = vcombine.low %v686_v31, %v696_v62  ;;  %v1380_v5 = vsel %vm5631_vm5, %v1378_v57, %v1379_v6  ;;  %v5210_v57 = vld [vmem:[%s6387_s1 + $0x88] sm:$0xff]  }
  0x70   : > { %v5933_v58 = vcombine.low %v1370_v50, %v1373_v7  ;;  %4774 = vmatprep.subr.bf16.mxu0 %v5912_v30  ;;  %v5938_v18 = vcombine.low %v1377_v29, %v1380_v5  ;;  %v1385_v33 = vrot.slane %v1383_v0, 4  ;;  %v1390_v45 = vrot.slane %v5730_v3, 5 }
  0x71   : > { %v1393_v9 = vrot.slane %v5736_v36, 5  ;;  %4483 = vmatmul.mubr.bf16.gmra.mrb[28].mxu1 %v5931_v61  ;;  %v6422_v16 = vcombine.low %v5388_v12, %v5391_v13  ;;  %v1384_v4 = vsel %vm5631_vm5, %v3862_v17, %v1383_v0  ;;  %v1397_v6 = vrot.slane %v5752_v34, 5 }
  0x72   : > { %4707 = vmatmul.mubr.bf16.gmra.mrb[12].mxu0 %v5933_v58  ;;  %v1387_v8 = vsel %vm5631_vm5, %v1385_v33, %v1386_v28  ;;  %v1392_v56 = vrot.slane %v1390_v45, 4  ;;  %v1404_v36 = vrot.slane %v5791_v63, 5  ;;  %v1391_v10 = vsel %vm5631_vm5, %v3863_v1, %v1390_v45 }
  0x73   : > { %4502 = vmatprep.mubr.bf16.mxu1 %v6422_v16  ;;  %4710 = vmatprep.mubr.bf16.mxu0 %v5938_v18  ;;  %v5958_v13 = vcombine.low %v1384_v4, %v1387_v8  ;;  %v3864_v50 = vrot.slane %v5749_v24, 9  ;;  %v1400_v41 = vrot.slane %v5776_v42, 5  ;;  %v1399_v17 = vrot.slane %v1397_v6, 4 }
  0x74   : > { %v1394_v12 = vsel %vm5631_vm5, %v1392_v56, %v1393_v9  ;;  %v3865_v31 = vrot.slane %v5788_v59, 9  ;;  %v1406_v0 = vrot.slane %v1404_v36, 4  ;;  %v1407_v62 = vrot.slane %v5798_v20, 5 }
  0x75   : > { %v5963_v29 = vcombine.low %v1391_v10, %v1394_v12  ;;  %v1398_v7 = vsel %vm5631_vm5, %v3864_v50, %v1397_v6  ;;  %v1411_v42 = vrot.slane %v5826_v49, 5  ;;  %v5976_v28 = vcombine.low %v5600_v32, %v5608_v47  ;;  %v5214_v47 = vld [vmem:[%s6387_s1 + $0x90] sm:$0xff]   ;;  %v290_v6 = vld [vmem:[%s5379_s20 + $0xc8] sm:$0x1]  ;;  %v5259_v10 = vld [vmem:[%s5379_s20 + $0x40] sm:$0xf] }
  0x76   : > { %v1401_v20 = vsel %vm5631_vm5, %v1399_v17, %v1400_v41  ;;  %v1405_v1 = vsel %vm5631_vm5, %v3865_v31, %v1404_v36  ;;  %v3866_v5 = vrot.slane %v5816_v25, 9  ;;  %v5987_v33 = vcombine.low %v5642_v40, %v5649_v53  ;;  %v5258_v36 = vld [vmem:[%s5379_s20 + $0x3c] sm:$0xf]  ;;  %v5260_v41 = vld [vmem:[%s5379_s20 + $0x48] sm:$0xf] }
  0x77   : > { %v1408_v32 = vsel %vm5631_vm5, %v1406_v0, %v1407_v62  ;;  %v5998_v45 = vcombine.low %v5672_v2, %v5686_v54  ;;  %v6002_v40 = vcombine.low %v5710_v38, %v5730_v3  ;;  %v6006_v53 = vcombine.low %v5749_v24, %v5752_v34  ;;  %v6026_v24 = vld [vmem:[%s5379_s20 + $0xc4] sm:$0xf]  ;;  %v5261_v17 = vld [vmem:[%s5379_s20 + $0x4c] sm:$0xf] }
  0x78   : > { %v6010_v9 = vcombine.low %v5788_v59, %v5791_v63  ;;  %v6014_v16 = vcombine.low %v5816_v25, %v5826_v49  ;;  %v6016_v4 = vcombine.low %v1398_v7, %v1401_v20  ;;  %v1413_v2 = vrot.slane %v1411_v42, 4  ;;  %v5218_v25 = vld [vmem:[%s6387_s1 + $0x98] sm:$0xff]  }
  0x79   : > { %4503 = vmatmul.mubr.bf16.vlgmr.msra.gmra.mrb[0].mxu1 %v5437_v43  ;;  %v1414_v54 = vrot.slane %v5841_v14, 5  ;;  %v6021_v38 = vcombine.low %v5863_v22, %v5870_v48  ;;  %v6023_v3 = vcombine.low %v1405_v1, %v1408_v32  ;;  %v3867_v34 = vrot.slane %v5863_v22, 9  ;;  %v6040_v14 = vld [vmem:[%s5379_s20 + $0xc0] sm:$0xf] }
  0x7a   : > { %4711 = vmatmul.mubr.bf16.gmra.mrb[16].mxu0 %v5958_v13  ;;  %4535 = vmatpush3.bf16.msra.mxu1 %v5701_v52  ;;  %v1418_v52 = vrot.slane %v5870_v48, 5  ;;  %v1421_v63 = vrot.slane %v5880_v27, 5  ;;  %v1412_v49 = vsel %vm5631_vm5, %v3866_v5, %v1411_v42  ;;  %v2298_v48 = vrot.slane %v6026_v24, 5  ;;  %v5222_v27 = vld [vmem:[%s6387_s1 + $0xa0] sm:$0xff]  }
  0x7b   : > { %4506 = vmatprep.mubr.bf16.mxu1 %v5513_v60  ;;  %4714 = vmatprep.mubr.bf16.mxu0 %v5963_v29  ;;  %v1415_v22 = vsel %vm5631_vm5, %v1413_v2, %v1414_v54  ;;  %v6055_v12 = vcombine.low %v5258_v36, %v5259_v10  ;;  %v6061_v31 = vcombine.low %v5260_v41, %v5261_v17  ;;  %v2013_v0 = vshll.u32 %v6040_v14, 16  ;;  %v5226_v54 = vld [vmem:[%s6387_s1 + $0xa8] sm:$0xff]   ;;  %v5230_v36 = vld [vmem:[%s6387_s1 + $0xb0] sm:$0xff]   ;;  %v5263_v10 = vld [vmem:[%s5379_s20 + $0x58] sm:$0xf] }
  0x7c   : > { %4536 = vmatprep.subr.bf16.mxu1 %v5210_v57  ;;  %v1420_v59 = vrot.slane %v1418_v52, 4  ;;  %v1419_v8 = vsel %vm5631_vm5, %v3867_v34, %v1418_v52  ;;  %v6057_v50 = vcombine.low %v1412_v49, %v1415_v22  ;;  %v2019_v62 = vshll.u32 %v6026_v24, 16 }
  0x7d   : > { %v2023_v7 = vshrl.u32 %v6026_v24, 16  ;;  %v3958_v20 = vrot.slane %v6040_v14, 9  ;;  %v2300_v1 = vrot.slane %v2298_v48, 4  ;;  %v2301_v5 = vrot.slane %v290_v6, 5 }
  0x7e   : > { %4537 = vmatpush3.bf16.msra.mxu1 %v5210_v57  ;;  %v1422_v56 = vsel %vm5631_vm5, %v1420_v59, %v1421_v63  ;;  %v2010_v57 = vshrl.u32 %v6040_v14, 16  ;;  %v2021_v52 = vrot.slane %v2019_v62, 5  ;;  %v2029_v63 = vshll.u32 %v290_v6, 16  ;;  %v5262_v6 = vld [vmem:[%s5379_s20 + $0x54] sm:$0xf]  ;;  %v5236_v62 = vld [vmem:[%s6387_s1 + $0xc0] sm:$0xff]  }
  0x7f   : > { %4538 = vmatprep.subr.bf16.mxu1 %v5214_v47  ;;  %v6067_v42 = vcombine.low %v1419_v8, %v1422_v56  ;;  %v2025_v2 = vrot.slane %v2023_v7, 4  ;;  %v2302_v49 = vsel %vm5631_vm5, %v2300_v1, %v2301_v5  ;;  %v6086_v41 = vcombine.low %v5262_v6, %v5263_v10  ;;  %v5227_v7 = vld [vmem:[%s6387_s1 + $0x1c8] sm:$0xff]   ;;  %v5235_v1 = vld [vmem:[%s6387_s1 + $0x1d8] sm:$0xff]   ;;  %v5240_v6 = vld [vmem:[%s6387_s1 + $0xd0] sm:$0xff]  }
  0x80   : > { %v2012_v32 = vrot.slane %v2010_v57, 4  ;;  %v2031_v56 = vrot.slane %v2029_v63, 5  ;;  %v5243_v10 = vld [vmem:[%s6387_s1 + $0xd8] sm:$0xff]  }
  0x81   : > { %4507 = vmatmul.mubr.bf16.gmra.mrb[4].mxu1 %v5584_v11  ;;  %v2026_v59 = vor.u32 %v2025_v2, %v2021_v52  ;;  %v5266_v2 = vld [vmem:[%s5379_s20] sm:$0xf] }
  0x82   : > { %4715 = vmatmul.mubr.bf16.gmra.mrb[20].mxu0 %v6016_v4  ;;  %4510 = vmatprep.mubr.bf16.mxu1 %v5588_v15 }
  0x83   : > { %4718 = vmatprep.mubr.bf16.mxu0 %v6023_v3  ;;  %4539 = vmatpush3.bf16.msra.mxu1 %v5214_v47  ;;  %v2015_v47 = vrot.slane %v2013_v0, 5  ;;  %v2027_v8 = vrot.slane %v2026_v59, 4  ;;  %v5234_v0 = vld [vmem:[%s6387_s1 + $0xb8] sm:$0xff]   ;;  %v5239_v59 = vld [vmem:[%s6387_s1 + $0x1e8] sm:$0xff]  }
  0x84   : > { %4540 = vmatprep.subr.bf16.mxu1 %v5218_v25 }
  0x85   : > { %v2016_v34 = vor.u32 %v2015_v47, %v2012_v32  ;;  %v5237_v32 = vld [vmem:[%s6387_s1 + $0x1e0] sm:$0xff]   ;;  %v5265_v47 = vld [vmem:[%s5379_s20 + $0x8] sm:$0x1] }
  0x87   : > { %4541 = vmatpush3.bf16.msra.mxu1 %v5218_v25  ;;  %v2299_v25 = vsel %vm5631_vm5, %v3958_v20, %v2298_v48  ;;  %v2017_v22 = vrot.slane %v2016_v34, 4  ;;  %v5231_v20 = vld [vmem:[%s6387_s1 + $0x1d0] sm:$0xff]  }
  0x88   : > { %4542 = vmatprep.subr.bf16.mxu1 %v5222_v27  ;;  %v6088_v17 = vcombine.low %v2299_v25, %v2302_v49  ;;  %v5241_v49 = vld [vmem:[%s6387_s1 + $0x1f0] sm:$0xff]  }
  0x89   : > { %4511 = vmatmul.mubr.bf16.gmra.mrb[8].mxu1 %v6055_v12  ;;  %v2022_v48 = vsel %vm5424_vm2, %v2017_v22, %v2021_v52  ;;  %v1316_v52 = vrot.slane %v5265_v47, 5  ;;  %v6425_v47 = vld [vmem:[#allocation4_spill] sm:$0xff] }
  0x8a   : > { %4719 = vmatmul.mubr.bf16.gmra.mrb[24].mxu0 %v6057_v50  ;;  %4514 = vmatprep.mubr.bf16.mxu1 %v6061_v31 }
  0x8b   : > { %4722 = vmatprep.mubr.bf16.mxu0 %v6067_v42  ;;  %4543 = vmatpush3.bf16.msra.mxu1 %v5222_v27  ;;  %v2032_v27 = vsel %vm5424_vm2, %v2027_v8, %v2031_v56  ;;  %v5245_v8 = vld [vmem:[%s6387_s1 + $0x1f8] sm:$0xff]   ;;  %v5247_v56 = vld [vmem:[%s6387_s1 + $0x200] sm:$0xff]  }
  0x8c   : > { %4544 = vmatprep.subr.bf16.mxu1 %v5226_v54  ;;  %v6094_v57 = vcombine.low %v2022_v48, %v2032_v27  ;;  %v6175_v48 = vcombine.low %v6040_v14, %v6026_v24  ;;  %v5248_v27 = vld [vmem:[%s6387_s1 + $0xe8] sm:$0xff]   ;;  %v5250_v24 = vld [vmem:[%s6387_s1 + $0xf0] sm:$0xff]  }
  0x8f   : > { %4545 = vmatpush3.bf16.msra.mxu1 %v5226_v54  ;;  %v3852_v54 = vrot.slane %v5266_v2, 9  ;;  %v5254_v2 = vld [vmem:[%s6387_s1 + $0x220] sm:$0xff]  }
  0x90   : > { %4546 = vmatprep.subr.bf16.mxu1 %v5230_v36 }
  0x91   : > { %4515 = vmatmul.mubr.bf16.gmra.mrb[12].mxu1 %v6086_v41 }
  0x92   : > { %4723 = vmatmul.mubr.bf16.gmra.mrb[28].mxu0 %v6088_v17  ;;  %4518 = vmatprep.mubr.bf16.mxu1 %v5976_v28 }
  0x93   : > { %4742 = vmatprep.mubr.bf16.mxu0 %v5513_v60  ;;  %4547 = vmatpush3.bf16.msra.mxu1 %v5230_v36  ;;  %v5238_v36 = vld [vmem:[%s6387_s1 + $0xc8] sm:$0xff]  }
  0x94   : > { %4548 = vmatprep.subr.bf16.mxu1 %v5234_v0 }
  0x97   : > { %4549 = vmatpush3.bf16.msra.mxu1 %v5234_v0  ;;  %v6185_v0 = vld [vmem:[%s5379_s20 + $0xcc] sm:$0xf] }
  0x98   : > { %4582 = vmatprep.subr.bf16.mxu1 %v5236_v62 }
  0x99   : > { %4519 = vmatmul.mubr.bf16.gmra.mrb[16].mxu1 %v5987_v33 }
  0x9a   : > { %4743 = vmatmul.mubr.bf16.vlgmr.msra.gmra.mrb[0].mxu0 %v5584_v11  ;;  %4522 = vmatprep.mubr.bf16.mxu1 %v5998_v45 }
  0x9b   : > { %4775 = vmatpush3.bf16.msra.mxu0 %v5912_v30  ;;  %4746 = vmatprep.mubr.bf16.mxu0 %v5588_v15  ;;  %v5264_v30 = vld [vmem:[%s5379_s20 + $0x4] sm:$0xf] }
  0x9c   : > { %4776 = vmatprep.subr.bf16.mxu0 %v5227_v7  ;;  %v1313_v5 = vrot.slane %v5264_v30, 5  ;;  %v6423_v30 = vld [vmem:[#allocation2_spill] sm:$0xff] }
  0x9e   : > { %v1315_v34 = vrot.slane %v1313_v5, 4  ;;  %v1314_v63 = vsel %vm5631_vm5, %v3852_v54, %v1313_v5  ;;  %v5251_v5 = vld [vmem:[%s6387_s1 + $0x210] sm:$0xff]   ;;  %v5255_v54 = vld [vmem:[%s6387_s1 + $0x228] sm:$0xff]  }
  0x9f   : > { %4777 = vmatpush3.bf16.msra.mxu0 %v5227_v7  ;;  %v5252_v7 = vld [vmem:[%s6387_s1 + $0xf8] sm:$0xff]  }
  0xa0   : > { %4778 = vmatprep.subr.bf16.mxu0 %v5231_v20  ;;  %v1317_v25 = vsel %vm5631_vm5, %v1315_v34, %v1316_v52  ;;  %v6426_v52 = vld [vmem:[#allocation5_spill] sm:$0xff]  ;;  %v6427_v34 = vld [vmem:[#allocation6_spill] sm:$0xff] }
  0xa1   : > { %4523 = vmatmul.mubr.bf16.gmra.mrb[20].mxu1 %v6002_v40  ;;  %v3884_v22 = vcombine.low %v1314_v63, %v1317_v25  ;;  %v5256_v63 = vld [vmem:[%s6387_s1 + $0x230] sm:$0xff]   ;;  %v5257_v25 = vld [vmem:[%s6387_s1 + $0x238] sm:$0xff]  }
  0xa2   : > { %4747 = vmatmul.mubr.bf16.gmra.mrb[4].mxu0 %v6055_v12  ;;  %4526 = vmatprep.mubr.bf16.mxu1 %v6006_v53 }
  0xa3   : > { %4750 = vmatprep.mubr.bf16.mxu0 %v6061_v31  ;;  %4779 = vmatpush3.bf16.msra.mxu0 %v5231_v20  ;;  %v5249_v20 = vld [vmem:[%s6387_s1 + $0x208] sm:$0xff]  }
  0xa4   : > { %4780 = vmatprep.subr.bf16.mxu0 %v5235_v1 }
  0xa7   : > { %4781 = vmatpush3.bf16.msra.mxu0 %v5235_v1  ;;  %v5267_v1 = vld [vmem:[%s6387_s1 + $0x100] sm:$0xff]  }
  0xa8   : > { %4782 = vmatprep.subr.bf16.mxu0 %v5237_v32 }
  0xa9   : > { %4527 = vmatmul.mubr.bf16.gmra.mrb[24].mxu1 %v6010_v9 }
  0xaa   : > { %4751 = vmatmul.mubr.bf16.gmra.mrb[8].mxu0 %v6086_v41  ;;  %4530 = vmatprep.mubr.bf16.mxu1 %v6014_v16 }
  0xab   : > { %4754 = vmatprep.mubr.bf16.mxu0 %v5976_v28  ;;  %4783 = vmatpush3.bf16.msra.mxu0 %v5237_v32  ;;  %v5253_v32 = vld [vmem:[%s6387_s1 + $0x218] sm:$0xff]  }
  0xac   : > { %4784 = vmatprep.subr.bf16.mxu0 %v5239_v59 }
  0xaf   : > { %4785 = vmatpush3.bf16.msra.mxu0 %v5239_v59  ;;  %v6428_v59 = vld [vmem:[#allocation7_spill] sm:$0xff] }
  0xb0   : > { %4786 = vmatprep.subr.bf16.mxu0 %v5241_v49 }
  0xb1   : > { %4531 = vmatmul.mubr.bf16.gmra.mrb[28].mxu1 %v6021_v38 }
  0xb2   : > { %4755 = vmatmul.mubr.bf16.gmra.mrb[12].mxu0 %v5987_v33  ;;  %4550 = vmatprep.mubr.bf16.mxu1 %v3884_v22  ;;  %v6430_v22 = vld [vmem:[#allocation9_spill] sm:$0xff] }
  0xb3   : > { %4758 = vmatprep.mubr.bf16.mxu0 %v5998_v45  ;;  %4787 = vmatpush3.bf16.msra.mxu0 %v5241_v49  ;;  %v6429_v49 = vld [vmem:[#allocation8_spill] sm:$0xff] }
  0xb4   : > { %4788 = vmatprep.subr.bf16.mxu0 %v5245_v8 }
  0xb7   : > { %4789 = vmatpush3.bf16.msra.mxu0 %v5245_v8  ;;  %v6431_v8 = vld [vmem:[#allocation10_spill] sm:$0xff] }
  0xb8   : > { %4822 = vmatprep.subr.bf16.mxu0 %v5247_v56 }
  0xb9   : > { %4551 = vmatmul.mubr.bf16.vlgmr.msra.gmra.mrb[0].mxu1 %v5679_v39  ;;  %v5246_v39 = vld [vmem:[%s6387_s1 + $0xe0] sm:$0xff]  }
  0xba   : > { %4759 = vmatmul.mubr.bf16.gmra.mrb[16].mxu0 %v6002_v40  ;;  %4583 = vmatpush3.bf16.msra.mxu1 %v5236_v62  ;;  %v6188_v62 = vld [vmem:[%s5379_s20 + $0xd0] sm:$0xf] }
  0xbb   : > { %4554 = vmatprep.mubr.bf16.mxu1 %v5725_v26  ;;  %4762 = vmatprep.mubr.bf16.mxu0 %v6006_v53  ;;  %v4000_v14 = vcombine.low %v6185_v0, %v6188_v62 }
  0xbc   : > { %4584 = vmatprep.subr.bf16.mxu1 %v5238_v36 }
  0xbe   : > { %4585 = vmatpush3.bf16.msra.mxu1 %v5238_v36  ;;  %v2833_v36 = vshll.u32 %v6185_v0, 16 }
  0xbf   : > { %4586 = vmatprep.subr.bf16.mxu1 %v5240_v6 }
  0xc1   : > { %4555 = vmatmul.mubr.bf16.gmra.mrb[4].mxu1 %v5765_v46 }
  0xc2   : > { %4763 = vmatmul.mubr.bf16.gmra.mrb[20].mxu0 %v6010_v9  ;;  %4558 = vmatprep.mubr.bf16.mxu1 %v5802_v44 }
  0xc3   : > { %4766 = vmatprep.mubr.bf16.mxu0 %v6014_v16  ;;  %4587 = vmatpush3.bf16.msra.mxu1 %v5240_v6  ;;  %v2843_v6 = vshrl.u32 %v6188_v62, 16 }
  0xc4   : > { %4588 = vmatprep.subr.bf16.mxu1 %v5243_v10 }
  0xc7   : > { %4589 = vmatpush3.bf16.msra.mxu1 %v5243_v10  ;;  %v6432_v10 = vld [vmem:[#allocation11_spill] sm:$0xff] }
  0xc8   : > { %4590 = vmatprep.subr.bf16.mxu1 %v5246_v39 }
  0xc9   : > { %4559 = vmatmul.mubr.bf16.gmra.mrb[8].mxu1 %v5835_v19 }
  0xca   : > { %4767 = vmatmul.mubr.bf16.gmra.mrb[24].mxu0 %v6021_v38  ;;  %4562 = vmatprep.mubr.bf16.mxu1 %v5867_v35 }
  0xcb   : > { %4770 = vmatprep.mubr.bf16.mxu0 %v6175_v48  ;;  %4591 = vmatpush3.bf16.msra.mxu1 %v5246_v39 }
  0xcc   : > { %4592 = vmatprep.subr.bf16.mxu1 %v5248_v27 }
  0xcf   : > { %4593 = vmatpush3.bf16.msra.mxu1 %v5248_v27  ;;  %v2835_v27 = vrot.slane %v2833_v36, 5 }
  0xd0   : > { %4594 = vmatprep.subr.bf16.mxu1 %v5250_v24 }
  0xd1   : > { %4563 = vmatmul.mubr.bf16.gmra.mrb[12].mxu1 %v5901_v21 }
  0xd2   : > { %4771 = vmatmul.mubr.bf16.gmra.mrb[28].mxu0 %v4000_v14  ;;  %4566 = vmatprep.mubr.bf16.mxu1 %v5933_v58  ;;  %v2845_v14 = vrot.slane %v2843_v6, 4 }
  0xd3   : > { %4790 = vmatprep.mubr.bf16.mxu0 %v5501_v51  ;;  %4595 = vmatpush3.bf16.msra.mxu1 %v5250_v24  ;;  %v6424_v51 = vld [vmem:[#allocation3_spill] sm:$0xff] }
  0xd4   : > { %4596 = vmatprep.subr.bf16.mxu1 %v5252_v7 }
  0xd7   : > { %4597 = vmatpush3.bf16.msra.mxu1 %v5252_v7  ;;  %v5269_v7 = vld [vmem:[%s6387_s1 + $0x110] sm:$0xff]  }
  0xd8   : > { %4870 = vmatprep.subr.bf16.mxu1 %v5267_v1 }
  0xd9   : > { %4567 = vmatmul.mubr.bf16.gmra.mrb[16].mxu1 %v5938_v18 }
  0xda   : > { %4791 = vmatmul.mubr.bf16.vlgmr.msra.gmra.mrb[0].mxu0 %v6423_v30  ;;  %4570 = vmatprep.mubr.bf16.mxu1 %v5958_v13 }
  0xdb   : > { %4823 = vmatpush3.bf16.msra.mxu0 %v5247_v56  ;;  %4794 = vmatprep.mubr.bf16.mxu0 %v6424_v51  ;;  %v2830_v56 = vshrl.u32 %v6185_v0, 16 }
  0xdc   : > { %4824 = vmatprep.subr.bf16.mxu0 %v5249_v20 }
  0xdd   : > { %v2832_v39 = vrot.slane %v2830_v56, 4 }
  0xdf   : > { %4825 = vmatpush3.bf16.msra.mxu0 %v5249_v20  ;;  %v6433_v20 = vld [vmem:[#allocation12_spill] sm:$0xff] }
  0xe0   : > { %4826 = vmatprep.subr.bf16.mxu0 %v5251_v5 }
  0xe1   : > { %4571 = vmatmul.mubr.bf16.gmra.mrb[20].mxu1 %v5963_v29 }
  0xe2   : > { %4795 = vmatmul.mubr.bf16.gmra.mrb[4].mxu0 %v6425_v47  ;;  %4574 = vmatprep.mubr.bf16.mxu1 %v6016_v4 }
  0xe3   : > { %4798 = vmatprep.mubr.bf16.mxu0 %v6426_v52  ;;  %4827 = vmatpush3.bf16.msra.mxu0 %v5251_v5  ;;  %v5270_v5 = vld [vmem:[%s6387_s1 + $0x118] sm:$0xff]  }
  0xe4   : > { %4828 = vmatprep.subr.bf16.mxu0 %v5253_v32 }
  0xe7   : > { %4829 = vmatpush3.bf16.msra.mxu0 %v5253_v32 }
  0xe8   : > { %4830 = vmatprep.subr.bf16.mxu0 %v5254_v2 }
  0xe9   : > { %4575 = vmatmul.mubr.bf16.gmra.mrb[24].mxu1 %v6023_v3 }
  0xea   : > { %4799 = vmatmul.mubr.bf16.gmra.mrb[8].mxu0 %v6427_v34  ;;  %4578 = vmatprep.mubr.bf16.mxu1 %v6057_v50 }
  0xeb   : > { %4802 = vmatprep.mubr.bf16.mxu0 %v6428_v59  ;;  %4831 = vmatpush3.bf16.msra.mxu0 %v5254_v2 }
  0xec   : > { %4832 = vmatprep.subr.bf16.mxu0 %v5255_v54 }
  0xef   : > { %4833 = vmatpush3.bf16.msra.mxu0 %v5255_v54  ;;  %v5272_v54 = vld [vmem:[%s6387_s1 + $0x128] sm:$0xff]  }
  0xf0   : > { %4834 = vmatprep.subr.bf16.mxu0 %v5256_v63 }
  0xf1   : > { %4579 = vmatmul.mubr.bf16.gmra.mrb[28].mxu1 %v6067_v42 }
  0xf2   : > { %4803 = vmatmul.mubr.bf16.gmra.mrb[12].mxu0 %v6429_v49  ;;  %4598 = vmatprep.mubr.bf16.mxu1 %v5437_v43  ;;  %v2839_v43 = vshll.u32 %v6188_v62, 16 }
  0xf3   : > { %4806 = vmatprep.mubr.bf16.mxu0 %v6430_v22  ;;  %4835 = vmatpush3.bf16.msra.mxu0 %v5256_v63 }
  0xf4   : > { %4836 = vmatprep.subr.bf16.mxu0 %v5257_v25  ;;  %v2841_v24 = vrot.slane %v2839_v43, 5 }
  0xf6   : > { %v2846_v30 = vor.u32 %v2845_v14, %v2841_v24 }
  0xf7   : > { %4837 = vmatpush3.bf16.msra.mxu0 %v5257_v25 }
  0xf8   : > { %v2847_v47 = vrot.slane %v2846_v30, 4 }
  0xf9   : > { %4599 = vmatmul.mubr.bf16.vlgmr.msra.gmra.mrb[0].mxu1 %v5513_v60  ;;  %v5268_v60 = vld [vmem:[%s6387_s1 + $0x108] sm:$0xff]  }
  0xfa   : > { %4807 = vmatmul.mubr.bf16.gmra.mrb[16].mxu0 %v6431_v8  ;;  %4878 = vmatpush3.bf16.msra.mxu1 %v5267_v1  ;;  %v2836_v1 = vor.u32 %v2835_v27, %v2832_v39 }
  0xfb   : > { %4602 = vmatprep.mubr.bf16.mxu1 %v5584_v11  ;;  %4810 = vmatprep.mubr.bf16.mxu0 %v6432_v10  ;;  %v6256_v11 = vld [vmem:[%s5379_s20 + $0xd4] sm:$0x1] }
  0xfc   : > { %4871 = vmatprep.subr.bf16.mxu1 %v5268_v60  ;;  %v2849_v51 = vshll.u32 %v6256_v11, 16  ;;  %v2837_v32 = vrot.slane %v2836_v1, 4 }
  0xfe   : > { %4879 = vmatpush3.bf16.msra.mxu1 %v5268_v60  ;;  %v2851_v52 = vrot.slane %v2849_v51, 5 }
  0xff   : > { %4872 = vmatprep.subr.bf16.mxu1 %v5269_v7 }
 0x100   : > { %v2852_v2 = vsel %vm5424_vm2, %v2847_v47, %v2851_v52 }
 0x101   : > { %4603 = vmatmul.mubr.bf16.gmra.mrb[4].mxu1 %v5588_v15  ;;  %v5271_v15 = vld [vmem:[%s6387_s1 + $0x120] sm:$0xff]  }
 0x102   : > { %4811 = vmatmul.mubr.bf16.gmra.mrb[20].mxu0 %v6433_v20  ;;  %4606 = vmatprep.mubr.bf16.mxu1 %v6055_v12  ;;  %v2842_v12 = vsel %vm5424_vm2, %v2837_v32, %v2841_v24 }
 0x103   : > { %4814 = vmatprep.mubr.bf16.mxu0 %v5897_v55  ;;  %4880 = vmatpush3.bf16.msra.mxu1 %v5269_v7  ;;  %v4025_v34 = vcombine.low %v2842_v12, %v2852_v2 }
 0x104   : > { %4873 = vmatprep.subr.bf16.mxu1 %v5270_v5 }
 0x107   : > { %4881 = vmatpush3.bf16.msra.mxu1 %v5270_v5 }
 0x108   : > { %4874 = vmatprep.subr.bf16.mxu1 %v5271_v15 }
 0x109   : > { %4607 = vmatmul.mubr.bf16.gmra.mrb[8].mxu1 %v6061_v31  ;;  %v5273_v31 = vld [vmem:[%s6387_s1 + $0x130] sm:$0xff]  }
 0x10a   : > { %4815 = vmatmul.mubr.bf16.gmra.mrb[24].mxu0 %v5931_v61  ;;  %4610 = vmatprep.mubr.bf16.mxu1 %v6086_v41 }
 0x10b   : > { %4818 = vmatprep.mubr.bf16.mxu0 %v6094_v57  ;;  %4882 = vmatpush3.bf16.msra.mxu1 %v5271_v15 }
 0x10c   : > { %4875 = vmatprep.subr.bf16.mxu1 %v5272_v54 }
 0x10f   : > { %4883 = vmatpush3.bf16.msra.mxu1 %v5272_v54 }
 0x110   : > { %4876 = vmatprep.subr.bf16.mxu1 %v5273_v31 }
 0x111   : > { %4611 = vmatmul.mubr.bf16.gmra.mrb[12].mxu1 %v5976_v28 }
 0x112   : > { %4819 = vmatmul.mubr.bf16.gmra.mrb[28].mxu0 %v4025_v34  ;;  %4614 = vmatprep.mubr.bf16.mxu1 %v5987_v33 }
 0x113   : > { %4838 = vmatprep.mubr.bf16.mxu0 %v5725_v26  ;;  %4884 = vmatpush3.bf16.msra.mxu1 %v5273_v31  ;;  %v3118_v26 = vrot.slane %v6188_v62, 5 }
 0x114   : > { %4877 = vmatprep.subr.bf16.mxu1 %v5274_v37 }
 0x117   : > { %4885 = vmatpush3.bf16.msra.mxu1 %v5274_v37 }
 0x119   : > { %4615 = vmatmul.mubr.bf16.gmra.mrb[16].mxu1 %v5998_v45 }
 0x11a   : > { %4839 = vmatmul.mubr.bf16.vlgmr.msra.gmra.mrb[0].mxu0 %v5765_v46  ;;  %4618 = vmatprep.mubr.bf16.mxu1 %v6002_v40  ;;  %v4034_v46 = vrot.slane %v6185_v0, 9 }
 0x11b   : > { %4842 = vmatprep.mubr.bf16.mxu0 %v5802_v44  ;;  %v3120_v44 = vrot.slane %v3118_v26, 4 }
 0x121   : > { %4619 = vmatmul.mubr.bf16.gmra.mrb[20].mxu1 %v6006_v53 }
 0x122   : > { %4843 = vmatmul.mubr.bf16.gmra.mrb[4].mxu0 %v5835_v19  ;;  %4622 = vmatprep.mubr.bf16.mxu1 %v6010_v9  ;;  %v3121_v19 = vrot.slane %v6256_v11, 5 }
 0x123   : > { %4846 = vmatprep.mubr.bf16.mxu0 %v5867_v35  ;;  %v3119_v35 = vsel %vm5631_vm5, %v4034_v46, %v3118_v26 }
 0x129   : > { %4623 = vmatmul.mubr.bf16.gmra.mrb[24].mxu1 %v6014_v16 }
 0x12a   : > { %4847 = vmatmul.mubr.bf16.gmra.mrb[8].mxu0 %v5901_v21  ;;  %4626 = vmatprep.mubr.bf16.mxu1 %v6021_v38  ;;  %v3122_v21 = vsel %vm5631_vm5, %v3120_v44, %v3121_v19 }
 0x12b   : > { %4850 = vmatprep.mubr.bf16.mxu0 %v5933_v58  ;;  %v4051_v58 = vcombine.low %v3119_v35, %v3122_v21 }
 0x131   : > { %4627 = vmatmul.mubr.bf16.gmra.mrb[28].mxu1 %v6175_v48 }
 0x132   : > { %4851 = vmatmul.mubr.bf16.gmra.mrb[12].mxu0 %v5938_v18  ;;  %4662 = vmatprep.mubr.bf16.mxu1 %v6429_v49 }
 0x133   : > { %4854 = vmatprep.mubr.bf16.mxu0 %v5958_v13 }
 0x139   : > { %4663 = vmatmul.mubr.bf16.vlgmr.msra.gmra.mrb[16].mxu1 %v6430_v22 }
 0x13a   : > { %4855 = vmatmul.mubr.bf16.gmra.mrb[16].mxu0 %v5963_v29  ;;  %4666 = vmatprep.mubr.bf16.mxu1 %v6431_v8 }
 0x13b   : > { %4858 = vmatprep.mubr.bf16.mxu0 %v6016_v4 }
 0x141   : > { %4667 = vmatmul.mubr.bf16.gmra.mrb[20].mxu1 %v6432_v10 }
 0x142   : > { %4859 = vmatmul.mubr.bf16.gmra.mrb[20].mxu0 %v6023_v3  ;;  %4670 = vmatprep.mubr.bf16.mxu1 %v6433_v20 }
 0x143   : > { %4862 = vmatprep.mubr.bf16.mxu0 %v6057_v50 }
 0x149   : > { %4671 = vmatmul.mubr.bf16.gmra.mrb[24].mxu1 %v5897_v55  ;;  %v5299_v55 = vmov 0.0  }
 0x14a   : > { %4863 = vmatmul.mubr.bf16.gmra.mrb[24].mxu0 %v6067_v42  ;;  %4674 = vmatprep.mubr.bf16.mxu1 %v5931_v61  ;;  %3549 = vst [vmem:[%s6329_s10] sm:$0x1] %v5299_v55  ;;  %3550 = vst [vmem:[%s6335_s13] sm:$0x1] %v5299_v55 }
 0x14b   : > { %4866 = vmatprep.mubr.bf16.mxu0 %v6088_v17 }
 0x151   : > { %4675 = vmatmul.mubr.bf16.gmra.mrb[28].mxu1 %v6094_v57 }
 0x152   : > { %4867 = vmatmul.mubr.bf16.gmra.mrb[28].mxu0 %v4051_v58 }
 0x1cc   : > { %v4600_v23 = vpop.f32.mrb[0].mxu1 }
 0x1cd   : > { %v1850_v61 = vpop.f32.mrb[1].mxu1 }
 0x1ce   : > { %v4601_v18 = vpop.f32.mrb[2].mxu1 }
 0x1cf   : > { %v1853_v13 = vpop.f32.mrb[3].mxu1 }
 0x1d4   : > { %v4604_v29 = vpop.f32.mrb[4].mxu1 }
 0x1d5   : > { %v1866_v28 = vpop.f32.mrb[5].mxu1 }
 0x1d6   : > { %v4605_v33 = vpop.f32.mrb[6].mxu1 }
 0x1d7   : > { %v1869_v45 = vpop.f32.mrb[7].mxu1 }
 0x1dc   : > { %v4608_v40 = vpop.f32.mrb[8].mxu1 }
 0x1dd   : > { %v1882_v53 = vpop.f32.mrb[9].mxu1 }
 0x1de   : > { %v4609_v9 = vpop.f32.mrb[10].mxu1 }
 0x1df   : > { %v1885_v16 = vpop.f32.mrb[11].mxu1 }
 0x1e4   : > { %v6339_v4 = vpop.f32.mrb[12].mxu1 }
 0x1e5   : > { %v6341_v38 = vpop.f32.mrb[13].mxu1 }
 0x1e6   : > { %v6343_v3 = vpop.f32.mrb[14].mxu1 }
 0x1e7   : > { %v6345_v50 = vpop.f32.mrb[15].mxu1 }
 0x1ed   : > { %v4840_v42 = vpop.f32.mrb[0].mxu0 }
 0x1ee   : > { %v4886_v41 = vadd.f32 %v4840_v42, %v4600_v23  ;;  %v3226_v17 = vpop.f32.mrb[1].mxu0 }
 0x1ef   : > { %v4887_v57 = vadd.f32 %v3226_v17, %v1850_v61  ;;  %v4841_v48 = vpop.f32.mrb[2].mxu0 }
 0x1f0   : > { %v4888_v0 = vadd.f32 %v4841_v48, %v4601_v18  ;;  %v3229_v62 = vpop.f32.mrb[3].mxu0  ;;  %v3594_v56 = vmul.f32 %v4886_v41, %v4886_v41 }
 0x1f1   : > { %v4889_v59 = vadd.f32 %v3229_v62, %v1853_v13  ;;  %v3592_v25 = vmul.f32 %v4887_v57, %v4887_v57 }
 0x1f2   : > { %v4135_v63 = vpack.c.bf16 %v4888_v0, %v4886_v41  ;;  %v3595_v39 = vmul.f32 %v4888_v0, %v4888_v0 }
 0x1f3   : > { %v4130_v49 = vpack.c.bf16 %v4889_v59, %v4887_v57  ;;  %v3552_v22 = vadd.f32 %v4889_v59, %v4887_v57  ;;  %v3593_v8 = vmul.f32 %v4889_v59, %v4889_v59 }
 0x1f4   : > { %4207 = vst [vmem:[%s6351_s22 + $0x8] sm:$0xff] %v4135_v63  }
 0x1f5   : > { %4131 = vst [vmem:[%s6351_s22] sm:$0xff] %v4130_v49   ;;  %v3553_v36 = vadd.f32 %v4886_v41, %v3552_v22  ;;  %v3624_v6 = vadd.f32 %v3593_v8, %v3592_v25  ;;  %v4844_v43 = vpop.f32.mrb[4].mxu0 }
 0x1f6   : > { %v4890_v10 = vadd.f32 %v4844_v43, %v4604_v29  ;;  %v3242_v60 = vpop.f32.mrb[5].mxu0 }
 0x1f7   : > { %v3625_v27 = vadd.f32 %v3624_v6, %v3594_v56  ;;  %v4891_v24 = vadd.f32 %v3242_v60, %v1866_v28  ;;  %v3554_v14 = vadd.f32 %v4888_v0, %v3553_v36  ;;  %v4845_v7 = vpop.f32.mrb[6].mxu0 }
 0x1f8   : > { %v4892_v11 = vadd.f32 %v4845_v7, %v4605_v33  ;;  %v3245_v20 = vpop.f32.mrb[7].mxu0  ;;  %v3598_v2 = vmul.f32 %v4890_v10, %v4890_v10 }
 0x1f9   : > { %v3555_v1 = vadd.f32 %v4891_v24, %v3554_v14  ;;  %v3596_v30 = vmul.f32 %v4891_v24, %v4891_v24  ;;  %v3626_v51 = vadd.f32 %v3625_v27, %v3595_v39  ;;  %v4893_v5 = vadd.f32 %v3245_v20, %v1869_v45 }
 0x1fa   : > { %v4145_v32 = vpack.c.bf16 %v4892_v11, %v4890_v10  ;;  %v3599_v46 = vmul.f32 %v4892_v11, %v4892_v11 }
 0x1fb   : > { %v3627_v47 = vadd.f32 %v3626_v51, %v3596_v30  ;;  %v4140_v52 = vpack.c.bf16 %v4893_v5, %v4891_v24  ;;  %v3556_v15 = vadd.f32 %v4893_v5, %v3555_v1  ;;  %v3597_v12 = vmul.f32 %v4893_v5, %v4893_v5 }
 0x1fc   : > { %4209 = vst [vmem:[%s6351_s22 + $0x18] sm:$0xff] %v4145_v32  }
 0x1fd   : > { %4208 = vst [vmem:[%s6351_s22 + $0x10] sm:$0xff] %v4140_v52   ;;  %v3557_v54 = vadd.f32 %v4890_v10, %v3556_v15  ;;  %v3628_v34 = vadd.f32 %v3627_v47, %v3597_v12  ;;  %v4848_v31 = vpop.f32.mrb[8].mxu0 }
 0x1fe   : > { %v4894_v37 = vadd.f32 %v4848_v31, %v4608_v40  ;;  %v3258_v26 = vpop.f32.mrb[9].mxu0 }
 0x1ff   : > { %v3629_v44 = vadd.f32 %v3628_v34, %v3598_v2  ;;  %v4895_v19 = vadd.f32 %v3258_v26, %v1882_v53  ;;  %v3558_v35 = vadd.f32 %v4892_v11, %v3557_v54  ;;  %v4849_v21 = vpop.f32.mrb[10].mxu0 }
 0x200   : > { %v4896_v58 = vadd.f32 %v4849_v21, %v4609_v9  ;;  %v3261_v55 = vpop.f32.mrb[11].mxu0  ;;  %v3602_v40 = vmul.f32 %v4894_v37, %v4894_v37 }
 0x201   : > { %v3559_v23 = vadd.f32 %v4895_v19, %v3558_v35  ;;  %v3600_v61 = vmul.f32 %v4895_v19, %v4895_v19  ;;  %v3630_v18 = vadd.f32 %v3629_v44, %v3599_v46  ;;  %v4897_v13 = vadd.f32 %v3261_v55, %v1885_v16 }
 0x202   : > { %v4155_v29 = vpack.c.bf16 %v4896_v58, %v4894_v37  ;;  %v3603_v9 = vmul.f32 %v4896_v58, %v4896_v58 }
 0x203   : > { %v3631_v28 = vadd.f32 %v3630_v18, %v3600_v61  ;;  %v4150_v33 = vpack.c.bf16 %v4897_v13, %v4895_v19  ;;  %v3560_v45 = vadd.f32 %v4897_v13, %v3559_v23  ;;  %v3601_v42 = vmul.f32 %v4897_v13, %v4897_v13 }
 0x204   : > { %4211 = vst [vmem:[%s6351_s22 + $0x28] sm:$0xff] %v4155_v29  }
 0x205   : > { %4210 = vst [vmem:[%s6351_s22 + $0x20] sm:$0xff] %v4150_v33   ;;  %v3561_v41 = vadd.f32 %v4894_v37, %v3560_v45  ;;  %v3632_v17 = vadd.f32 %v3631_v28, %v3601_v42  ;;  %v4852_v53 = vpop.f32.mrb[12].mxu0 }
 0x206   : > { %v4898_v57 = vadd.f32 %v4852_v53, %v6339_v4  ;;  %v3274_v48 = vpop.f32.mrb[13].mxu0 }
 0x207   : > { %v3633_v0 = vadd.f32 %v3632_v17, %v3602_v40  ;;  %v4899_v62 = vadd.f32 %v3274_v48, %v6341_v38  ;;  %v3562_v16 = vadd.f32 %v4896_v58, %v3561_v41  ;;  %v4853_v59 = vpop.f32.mrb[14].mxu0 }
 0x208   : > { %v4900_v63 = vadd.f32 %v4853_v59, %v6343_v3  ;;  %v3277_v25 = vpop.f32.mrb[15].mxu0  ;;  %v3606_v60 = vmul.f32 %v4898_v57, %v4898_v57 }
 0x209   : > { %v3563_v49 = vadd.f32 %v4899_v62, %v3562_v16  ;;  %v3604_v22 = vmul.f32 %v4899_v62, %v4899_v62  ;;  %v3634_v8 = vadd.f32 %v3633_v0, %v3603_v9  ;;  %v4901_v56 = vadd.f32 %v3277_v25, %v6345_v50 }
 0x20a   : > { %v4165_v36 = vpack.c.bf16 %v4900_v63, %v4898_v57  ;;  %v3607_v11 = vmul.f32 %v4900_v63, %v4900_v63 }
 0x20b   : > { %v3635_v6 = vadd.f32 %v3634_v8, %v3604_v22  ;;  %v4160_v4 = vpack.c.bf16 %v4901_v56, %v4899_v62  ;;  %v3564_v43 = vadd.f32 %v4901_v56, %v3563_v49  ;;  %v3605_v10 = vmul.f32 %v4901_v56, %v4901_v56 }
 0x20c   : > { %4213 = vst [vmem:[%s6351_s22 + $0x38] sm:$0xff] %v4165_v36   ;;  %v4664_v27 = vpop.f32.mrb[16].mxu1 }
 0x20d   : > { %4212 = vst [vmem:[%s6351_s22 + $0x30] sm:$0xff] %v4160_v4   ;;  %v3565_v38 = vadd.f32 %v4898_v57, %v3564_v43  ;;  %v3636_v39 = vadd.f32 %v3635_v6, %v3605_v10  ;;  %v4856_v24 = vpop.f32.mrb[16].mxu0  ;;  %v2200_v3 = vpop.f32.mrb[17].mxu1 }
 0x20e   : > { %v4902_v14 = vadd.f32 %v4856_v24, %v4664_v27  ;;  %v3290_v7 = vpop.f32.mrb[17].mxu0  ;;  %v4665_v30 = vpop.f32.mrb[18].mxu1 }
 0x20f   : > { %v3637_v20 = vadd.f32 %v3636_v39, %v3606_v60  ;;  %v4903_v1 = vadd.f32 %v3290_v7, %v2200_v3  ;;  %v3566_v50 = vadd.f32 %v4900_v63, %v3565_v38  ;;  %v4857_v51 = vpop.f32.mrb[18].mxu0  ;;  %v2203_v32 = vpop.f32.mrb[19].mxu1 }
 0x210   : > { %v4904_v5 = vadd.f32 %v4857_v51, %v4665_v30  ;;  %v3293_v47 = vpop.f32.mrb[19].mxu0  ;;  %v3610_v46 = vmul.f32 %v4902_v14, %v4902_v14 }
 0x211   : > { %v3567_v52 = vadd.f32 %v4903_v1, %v3566_v50  ;;  %v3608_v15 = vmul.f32 %v4903_v1, %v4903_v1  ;;  %v3638_v12 = vadd.f32 %v3637_v20, %v3607_v11  ;;  %v4905_v2 = vadd.f32 %v3293_v47, %v2203_v32 }
 0x212   : > { %v4175_v54 = vpack.c.bf16 %v4904_v5, %v4902_v14  ;;  %v3611_v61 = vmul.f32 %v4904_v5, %v4904_v5 }
 0x213   : > { %v3639_v34 = vadd.f32 %v3638_v12, %v3608_v15  ;;  %v4170_v31 = vpack.c.bf16 %v4905_v2, %v4903_v1  ;;  %v3568_v37 = vadd.f32 %v4905_v2, %v3567_v52  ;;  %v3609_v26 = vmul.f32 %v4905_v2, %v4905_v2 }
 0x214   : > { %4215 = vst [vmem:[%s6351_s22 + $0x48] sm:$0xff] %v4175_v54   ;;  %v4668_v35 = vpop.f32.mrb[20].mxu1 }
 0x215   : > { %4214 = vst [vmem:[%s6351_s22 + $0x40] sm:$0xff] %v4170_v31   ;;  %v3569_v44 = vadd.f32 %v4902_v14, %v3568_v37  ;;  %v3640_v19 = vadd.f32 %v3639_v34, %v3609_v26  ;;  %v4860_v21 = vpop.f32.mrb[20].mxu0  ;;  %v2216_v55 = vpop.f32.mrb[21].mxu1 }
 0x216   : > { %v4906_v58 = vadd.f32 %v4860_v21, %v4668_v35  ;;  %v3306_v23 = vpop.f32.mrb[21].mxu0  ;;  %v4669_v28 = vpop.f32.mrb[22].mxu1 }
 0x217   : > { %v3641_v18 = vadd.f32 %v3640_v19, %v3610_v46  ;;  %v4907_v13 = vadd.f32 %v3306_v23, %v2216_v55  ;;  %v3570_v29 = vadd.f32 %v4904_v5, %v3569_v44  ;;  %v4861_v33 = vpop.f32.mrb[22].mxu0  ;;  %v2219_v42 = vpop.f32.mrb[23].mxu1 }
 0x218   : > { %v4908_v45 = vadd.f32 %v4861_v33, %v4669_v28  ;;  %v3309_v40 = vpop.f32.mrb[23].mxu0  ;;  %v3614_v59 = vmul.f32 %v4906_v58, %v4906_v58 }
 0x219   : > { %v3571_v41 = vadd.f32 %v4907_v13, %v3570_v29  ;;  %v3612_v17 = vmul.f32 %v4907_v13, %v4907_v13  ;;  %v3642_v53 = vadd.f32 %v3641_v18, %v3611_v61  ;;  %v4909_v57 = vadd.f32 %v3309_v40, %v2219_v42 }
 0x21a   : > { %v4185_v48 = vpack.c.bf16 %v4908_v45, %v4906_v58  ;;  %v3615_v6 = vmul.f32 %v4908_v45, %v4908_v45 }
 0x21b   : > { %v3643_v9 = vadd.f32 %v3642_v53, %v3612_v17  ;;  %v4180_v0 = vpack.c.bf16 %v4909_v57, %v4907_v13  ;;  %v3572_v62 = vadd.f32 %v4909_v57, %v3571_v41  ;;  %v3613_v16 = vmul.f32 %v4909_v57, %v4909_v57 }
 0x21c   : > { %4217 = vst [vmem:[%s6351_s22 + $0x58] sm:$0xff] %v4185_v48   ;;  %v4672_v49 = vpop.f32.mrb[24].mxu1 }
 0x21d   : > { %4216 = vst [vmem:[%s6351_s22 + $0x50] sm:$0xff] %v4180_v0   ;;  %v3573_v63 = vadd.f32 %v4906_v58, %v3572_v62  ;;  %v3644_v25 = vadd.f32 %v3643_v9, %v3613_v16  ;;  %v4864_v22 = vpop.f32.mrb[24].mxu0  ;;  %v2232_v56 = vpop.f32.mrb[25].mxu1 }
 0x21e   : > { %v4910_v8 = vadd.f32 %v4864_v22, %v4672_v49  ;;  %v3322_v36 = vpop.f32.mrb[25].mxu0  ;;  %v4673_v60 = vpop.f32.mrb[26].mxu1  ;;  %v3551_v22 = vld [vmem:[%s6329_s10] sm:$0x1] }
 0x21f   : > { %v3645_v4 = vadd.f32 %v3644_v25, %v3614_v59  ;;  %v4911_v43 = vadd.f32 %v3322_v36, %v2232_v56  ;;  %v3574_v10 = vadd.f32 %v4908_v45, %v3573_v63  ;;  %v4865_v38 = vpop.f32.mrb[26].mxu0  ;;  %v2235_v27 = vpop.f32.mrb[27].mxu1  ;;  %v3591_v36 = vld [vmem:[%s6335_s13] sm:$0x1] }
 0x220   : > { %v4912_v39 = vadd.f32 %v4865_v38, %v4673_v60  ;;  %v3325_v24 = vpop.f32.mrb[27].mxu0  ;;  %v3618_v5 = vmul.f32 %v4910_v8, %v4910_v8 }
 0x221   : > { %v3575_v14 = vadd.f32 %v4911_v43, %v3574_v10  ;;  %v3616_v3 = vmul.f32 %v4911_v43, %v4911_v43  ;;  %v3646_v7 = vadd.f32 %v3645_v4, %v3615_v6  ;;  %v4913_v11 = vadd.f32 %v3325_v24, %v2235_v27 }
 0x222   : > { %v4195_v20 = vpack.c.bf16 %v4912_v39, %v4910_v8  ;;  %v3619_v34 = vmul.f32 %v4912_v39, %v4912_v39 }
 0x223   : > { %v3647_v1 = vadd.f32 %v3646_v7, %v3616_v3  ;;  %v4190_v50 = vpack.c.bf16 %v4913_v11, %v4911_v43  ;;  %v3576_v30 = vadd.f32 %v4913_v11, %v3575_v14  ;;  %v3617_v51 = vmul.f32 %v4913_v11, %v4913_v11 }
 0x224   : > { %4219 = vst [vmem:[%s6351_s22 + $0x68] sm:$0xff] %v4195_v20   ;;  %v4676_v52 = vpop.f32.mrb[28].mxu1 }
 0x225   : > { %4218 = vst [vmem:[%s6351_s22 + $0x60] sm:$0xff] %v4190_v50   ;;  %v3577_v32 = vadd.f32 %v4910_v8, %v3576_v30  ;;  %v3648_v47 = vadd.f32 %v3647_v1, %v3617_v51  ;;  %v4868_v15 = vpop.f32.mrb[28].mxu0  ;;  %v2248_v2 = vpop.f32.mrb[29].mxu1 }
 0x226   : > { %v4914_v12 = vadd.f32 %v4868_v15, %v4676_v52  ;;  %v3338_v54 = vpop.f32.mrb[29].mxu0  ;;  %v4677_v46 = vpop.f32.mrb[30].mxu1 }
 0x227   : > { %v3649_v31 = vadd.f32 %v3648_v47, %v3618_v5  ;;  %v4915_v37 = vadd.f32 %v3338_v54, %v2248_v2  ;;  %v3578_v26 = vadd.f32 %v4912_v39, %v3577_v32  ;;  %v4869_v44 = vpop.f32.mrb[30].mxu0  ;;  %v2251_v35 = vpop.f32.mrb[31].mxu1 }
 0x228   : > { %v4916_v19 = vadd.f32 %v4869_v44, %v4677_v46  ;;  %v3341_v21 = vpop.f32.mrb[31].mxu0  ;;  %v3622_v45 = vmul.f32 %v4914_v12, %v4914_v12 }
 0x229   : > { %v3579_v58 = vadd.f32 %v4915_v37, %v3578_v26  ;;  %v3620_v55 = vmul.f32 %v4915_v37, %v4915_v37  ;;  %v3650_v23 = vadd.f32 %v3649_v31, %v3619_v34  ;;  %v4917_v61 = vadd.f32 %v3341_v21, %v2251_v35 }
 0x22a   : > { %v4205_v18 = vpack.c.bf16 %v4916_v19, %v4914_v12  ;;  %v3623_v41 = vmul.f32 %v4916_v19, %v4916_v19 }
 0x22b   : > { %v3651_v13 = vadd.f32 %v3650_v23, %v3620_v55  ;;  %v4200_v29 = vpack.c.bf16 %v4917_v61, %v4915_v37  ;;  %v3580_v28 = vadd.f32 %v4917_v61, %v3579_v58  ;;  %v3621_v33 = vmul.f32 %v4917_v61, %v4917_v61 }
 0x22c   : > { %4221 = vst [vmem:[%s6351_s22 + $0x78] sm:$0xff] %v4205_v18  }
 0x22d   : > { %4220 = vst [vmem:[%s6351_s22 + $0x70] sm:$0xff] %v4200_v29   ;;  %v3581_v42 = vadd.f32 %v4914_v12, %v3580_v28  ;;  %v3652_v40 = vadd.f32 %v3651_v13, %v3621_v33 }
 0x22f   : > { %v3582_v17 = vadd.f32 %v4916_v19, %v3581_v42  ;;  %v3653_v53 = vadd.f32 %v3652_v40, %v3622_v45 }
 0x231   : > { %v3583_v57 = vrot.slane %v3582_v17, 4  ;;  %v3654_v48 = vadd.f32 %v3653_v53, %v3623_v41 }
 0x233   : > { %v3584_v9 = vadd.f32 %v3583_v57, %v3582_v17  ;;  %v3655_v0 = vrot.slane %v3654_v48, 4 }
 0x235   : > { %v3585_v62 = vrot.slane %v3584_v9, 2  ;;  %v3656_v16 = vadd.f32 %v3655_v0, %v3654_v48 }
 0x237   : > { %v3586_v59 = vadd.f32 %v3585_v62, %v3584_v9  ;;  %v3657_v63 = vrot.slane %v3656_v16, 2 }
 0x239   : > { %v3587_v25 = vrot.slane %v3586_v59, 1  ;;  %v3658_v49 = vadd.f32 %v3657_v63, %v3656_v16 }
 0x23b   : > { %v3588_v8 = vadd.f32 %v3587_v25, %v3586_v59  ;;  %v3659_v56 = vrot.slane %v3658_v49, 1 }
 0x23d   : > { %v3589_v6 = vadd.f32 %v3588_v8, %v3551_v22  ;;  %v3660_v4 = vadd.f32 %v3659_v56, %v3658_v49 }
 0x23f   : > { %3590 = vst [vmem:[%s6329_s10] sm:$0x1] %v3589_v6  ;;  %v3661_v43 = vadd.f32 %v3660_v4, %v3591_v36 }
 0x241   : > { %3662 = vst [vmem:[%s6335_s13] sm:$0x1] %v3661_v43 }
 0x242 PF: > { %s15_s17 = sadd.s32 1, %s5297_s17   ;;  %s6434_s15 = smov %s5293_s16 }
 0x243   : > { %p12_p5 = scmp.ge.s32.totalorder %s15_s17, 4   ;;  %s6435_s16 = smov %s6437_s18 }
 0x245   :  { %14 = sbr.rel (!%p12_p5) target bundleno = 2 (0x2), region = 94 }

// kernel: basic_block_bn_forward.4
= control target key start
LH: loop header
LB: loop body
LE: loop exit
PB: predicated region body
PF: predicated region fallthrough
CT: control target
= control target key end

     0   :  { %s6317_s21 = smov 0   ;;  %s6319_s22 = smov 0   ;;  %s7594_s0 = inlined_call_operand.vmem [shape: bf16[2,16,16,128], index: 0, kind: input, shape index: {}]   ;;  %s7595_s1 = inlined_call_operand.vmem [shape: bf16[9,128,128], index: 1, kind: input, shape index: {}]   ;;  %s7596_s2 = inlined_call_operand.vmem [shape: f32[1,128], index: 2, kind: input, shape index: {}]   ;;  %s7597_s3 = inlined_call_operand.vmem [shape: f32[1,128], index: 3, kind: input, shape index: {}]   ;;  %s7598_s4 = inlined_call_operand.vmem [shape: bf16[2,16,16,128], index: 4, kind: output, shape index: {0}]   ;;  %s7599_s5 = inlined_call_operand.vmem [shape: f32[2,1,128], index: 5, kind: output, shape index: {1}]   ;;  %s7600_s6 = inlined_call_operand.vmem [shape: f32[2,1,128], index: 6, kind: output, shape index: {2}]  }
   0x1   :  { %s6321_s23 = smov 0  }
   0x2 LB: > { %s29_s24 = sadd.s32 1, %s6274_s22  ;;  %p4603_p0 = scmp.ge.s32.totalorder %s6278_s23, 1  ;;  %s6278_s23 = sphi %s6321_s23, %s17_s23   ;;  %s6274_s22 = sphi %s6319_s22, %s7652_s22   ;;  %s6270_s21 = sphi %s6317_s21, %s7651_s21  }
   0x3   : > { %p31_p1 = scmp.ge.s32.totalorder %s29_s24, 2  ;;  %p235_p2 = scmp.lt.s32.totalorder %s6278_s23, 3 }
   0x5   : > { %s7654_s24 = smov (%p31_p1, %s29_s24), 0  ;;  %p236_p3 = pnand %p4603_p0, %p235_p2 }
   0x7   : > { %239 = sbr.rel (%p236_p3) target bundleno = 682 (0x2aa), region = 36 }
   0xe   : > { %v6134_v0 = vld [vmem:[%s7595_s1 + $0x40] sm:$0xff]   ;;  %v6280_v2 = vmov 0   ;;  %v6136_v3 = vld [vmem:[%s7595_s1 + $0x48] sm:$0xff]   ;;  %v6138_v5 = vld [vmem:[%s7595_s1 + $0x50] sm:$0xff]   ;;  %p274_p4 = scmp.lt.s32.totalorder %s6270_s21, 1  ;;  %vm942_vm3 = vcmask 1043456  }
   0xf   : > { %v6135_v1 = vld [vmem:[%s7595_s1 + $0x100] sm:$0xff]   ;;  %484 = vst [vmem:[#allocation2] sm:$0xf] %v6280_v2  ;;  %485 = vst [vmem:[#allocation2 + $0x4] sm:$0xf] %v6280_v2  ;;  %5404 = vmatprep.subr.bf16.mxu1 %v6134_v0  ;;  %v6137_v4 = vld [vmem:[%s7595_s1 + $0x108] sm:$0xff]  }
  0x10   : > { %486 = vst [vmem:[#allocation2 + $0x8] sm:$0x1] %v6280_v2  ;;  %487 = vst [vmem:[#allocation2 + $0xc] sm:$0xf] %v6280_v2  ;;  %5596 = vmatprep.subr.bf16.mxu0 %v6135_v1  ;;  %5405 = vmatpush3.bf16.msra.mxu1 %v6134_v0  ;;  %v6139_v6 = vld [vmem:[%s7595_s1 + $0x110] sm:$0xff]   ;;  %v6140_v7 = vld [vmem:[%s7595_s1 + $0x58] sm:$0xff]  }
  0x11   : > { %488 = vst [vmem:[#allocation2 + $0x10] sm:$0xf] %v6280_v2  ;;  %489 = vst [vmem:[#allocation2 + $0x14] sm:$0x1] %v6280_v2  ;;  %5597 = vmatpush3.bf16.msra.mxu0 %v6135_v1  ;;  %5406 = vmatprep.subr.bf16.mxu1 %v6136_v3  ;;  %s7656_s21 = smov (!%p274_p4, %s6270_s21), 1  ;;  %v6141_v8 = vld [vmem:[%s7595_s1 + $0x118] sm:$0xff]  }
  0x12   : > { %490 = vst [vmem:[#allocation2 + $0x18] sm:$0xf] %v6280_v2  ;;  %491 = vst [vmem:[#allocation2 + $0x1c] sm:$0xf] %v6280_v2  ;;  %5598 = vmatprep.subr.bf16.mxu0 %v6137_v4  ;;  %v6142_v9 = vld [vmem:[%s7595_s1 + $0x60] sm:$0xff]   ;;  %s4948_s19 = sshll.u32 %s7656_s21, 7  ;;  %s7536_s8 = scalar_lea.vmem %s7599_s5, %s7656_s21 }
  0x13   : > { %492 = vst [vmem:[#allocation2 + $0x20] sm:$0x1] %v6280_v2  ;;  %493 = vst [vmem:[#allocation2 + $0x24] sm:$0xf] %v6280_v2  ;;  %v6143_v10 = vld [vmem:[%s7595_s1 + $0x120] sm:$0xff]   ;;  %v6144_v11 = vld [vmem:[%s7595_s1 + $0x68] sm:$0xff]   ;;  %s6380_s30 = scalar_lea.vmem %s7594_s0, %s4948_s19  ;;  %s7542_s11 = scalar_lea.vmem %s7600_s6, %s7656_s21 }
  0x14   : > { %494 = vst [vmem:[#allocation2 + $0x28] sm:$0xf] %v6280_v2  ;;  %495 = vst [vmem:[#allocation2 + $0x2c] sm:$0x1] %v6280_v2  ;;  %5407 = vmatpush3.bf16.msra.mxu1 %v6136_v3  ;;  %v6145_v15 = vld [vmem:[%s7595_s1 + $0x128] sm:$0xff]   ;;  %v5015_v21 = vld [vmem:[%s6380_s30] sm:$0xff]   ;;  %s7559_s14 = scalar_lea.vmem %s7598_s4, %s4948_s19 }
  0x15   : > { %496 = vst [vmem:[#allocation2 + $0x30] sm:$0xf] %v6280_v2  ;;  %497 = vst [vmem:[#allocation2 + $0x34] sm:$0xf] %v6280_v2  ;;  %5599 = vmatpush3.bf16.msra.mxu0 %v6137_v4  ;;  %5408 = vmatprep.subr.bf16.mxu1 %v6138_v5  ;;  %vm1129_vm0 = vsmask.f32 3328  ;;  %v5016_v24 = vunpack.c.l.bf16 %v5015_v21  ;;  %v5017_v25 = vunpack.c.h.bf16 %v5015_v21 }
  0x16   : > { %498 = vst [vmem:[#allocation2 + $0x38] sm:$0x1] %v6280_v2  ;;  %499 = vst [vmem:[#allocation2 + $0x3c] sm:$0xf] %v6280_v2  ;;  %5600 = vmatprep.subr.bf16.mxu0 %v6139_v6  ;;  %v1059_v12 = vld [vmem:[#allocation2] sm:$0xf] }
  0x17   : > { %500 = vst [vmem:[#allocation2 + $0x40] sm:$0xf] %v6280_v2  ;;  %501 = vst [vmem:[#allocation2 + $0x44] sm:$0x1] %v6280_v2  ;;  %v1060_v13 = vld [vmem:[#allocation2 + $0x4] sm:$0xf] }
  0x18   : > { %502 = vst [vmem:[#allocation2 + $0x48] sm:$0xf] %v6280_v2  ;;  %503 = vst [vmem:[#allocation2 + $0x4c] sm:$0xf] %v6280_v2  ;;  %5409 = vmatpush3.bf16.msra.mxu1 %v6138_v5  ;;  %v1061_v14 = vld [vmem:[#allocation2 + $0x8] sm:$0x1] }
  0x19   : > { %504 = vst [vmem:[#allocation2 + $0x50] sm:$0x1] %v6280_v2  ;;  %505 = vst [vmem:[#allocation2 + $0x54] sm:$0xf] %v6280_v2  ;;  %5601 = vmatpush3.bf16.msra.mxu0 %v6139_v6  ;;  %5410 = vmatprep.subr.bf16.mxu1 %v6140_v7  ;;  %v1133_v16 = vshrl.u32 %v1059_v12, 16  ;;  %v1136_v17 = vshll.u32 %v1059_v12, 16 }
  0x1a   : > { %506 = vst [vmem:[#allocation2 + $0x58] sm:$0xf] %v6280_v2  ;;  %507 = vst [vmem:[#allocation2 + $0x5c] sm:$0x1] %v6280_v2  ;;  %5602 = vmatprep.subr.bf16.mxu0 %v6141_v8  ;;  %vm1130_vm1 = vsmask.f32 7440 }
  0x1b   : > { %508 = vst [vmem:[#allocation2 + $0x60] sm:$0xf] %v6280_v2  ;;  %509 = vst [vmem:[#allocation2 + $0x64] sm:$0xf] %v6280_v2  ;;  %v1142_v18 = vshll.u32 %v1060_v13, 16  ;;  %v1146_v19 = vshrl.u32 %v1060_v13, 16 }
  0x1c   : > { %510 = vst [vmem:[#allocation2 + $0x68] sm:$0x1] %v6280_v2  ;;  %511 = vst [vmem:[#allocation2 + $0x6c] sm:$0xf] %v6280_v2  ;;  %5411 = vmatpush3.bf16.msra.mxu1 %v6140_v7  ;;  %v1152_v20 = vshll.u32 %v1061_v14, 16  ;;  %v1135_v22 = vrot.slane %v1133_v16, 4 }
  0x1d   : > { %512 = vst [vmem:[#allocation2 + $0x70] sm:$0xf] %v6280_v2  ;;  %513 = vst [vmem:[#allocation2 + $0x74] sm:$0x1] %v6280_v2  ;;  %5603 = vmatpush3.bf16.msra.mxu0 %v6141_v8  ;;  %5412 = vmatprep.subr.bf16.mxu1 %v6142_v9  ;;  %v1138_v23 = vrot.slane %v1136_v17, 5  ;;  %v6146_v27 = vld [vmem:[%s7595_s1 + $0x70] sm:$0xff]  }
  0x1e   : > { %514 = vst [vmem:[#allocation2 + $0x78] sm:$0xf] %v6280_v2  ;;  %515 = vst [vmem:[#allocation2 + $0x7c] sm:$0xf] %v6280_v2  ;;  %5604 = vmatprep.subr.bf16.mxu0 %v6143_v10  ;;  %v6389_v26 = vld [vmem:[%s7596_s2] ss:$0 sm:$0xff] }
  0x1f   : > { %516 = vst [vmem:[#allocation2 + $0x80] sm:$0x1] %v6280_v2  ;;  %517 = vst [vmem:[#allocation2 + $0x84] sm:$0xf] %v6280_v2  ;;  %v1144_v28 = vrot.slane %v1142_v18, 5  ;;  %v1148_v29 = vrot.slane %v1146_v19, 4  ;;  %v1139_v32 = vor.u32 %v1138_v23, %v1135_v22  ;;  %v366_v33 = vmul.f32 %v5016_v24, %v6389_v26 }
  0x20   : > { %518 = vst [vmem:[#allocation2 + $0x88] sm:$0xf] %v6280_v2  ;;  %519 = vst [vmem:[#allocation2 + $0x8c] sm:$0x1] %v6280_v2  ;;  %5413 = vmatpush3.bf16.msra.mxu1 %v6142_v9  ;;  %v6397_v30 = vld [vmem:[%s7597_s3] ss:$0 sm:$0xff]  ;;  %v367_v34 = vmul.f32 %v5017_v25, %v6389_v26 }
  0x21   : > { %520 = vst [vmem:[#allocation2 + $0x90] sm:$0xf] %v6280_v2  ;;  %521 = vst [vmem:[#allocation2 + $0x94] sm:$0xf] %v6280_v2  ;;  %5605 = vmatpush3.bf16.msra.mxu0 %v6143_v10  ;;  %5414 = vmatprep.subr.bf16.mxu1 %v6144_v11  ;;  %v6147_v31 = vld [vmem:[%s7595_s1 + $0x130] sm:$0xff]   ;;  %v1149_v36 = vor.u32 %v1148_v29, %v1144_v28  ;;  %v1154_v37 = vrot.slane %v1152_v20, 5  ;;  %v404_v39 = vadd.f32 %v6397_v30, %v366_v33 }
  0x22   : > { %522 = vst [vmem:[#allocation2 + $0x98] sm:$0x1] %v6280_v2  ;;  %523 = vst [vmem:[#allocation2 + $0x9c] sm:$0xf] %v6280_v2  ;;  %5606 = vmatprep.subr.bf16.mxu0 %v6145_v15  ;;  %v1140_v38 = vrot.slane %v1139_v32, 4  ;;  %v405_v40 = vadd.f32 %v6397_v30, %v367_v34  ;;  %v6148_v41 = vld [vmem:[%s7595_s1 + $0x78] sm:$0xff]  }
  0x23   : > { %524 = vst [vmem:[#allocation2 + $0xa0] sm:$0xf] %v6280_v2  ;;  %525 = vst [vmem:[#allocation2 + $0xa4] sm:$0x1] %v6280_v2  ;;  %v6149_v42 = vld [vmem:[%s7595_s1 + $0x138] sm:$0xff]   ;;  %v1150_v43 = vrot.slane %v1149_v36, 4 }
  0x24   : > { %526 = vst [vmem:[#allocation2 + $0xa8] sm:$0xf] %v6280_v2  ;;  %527 = vst [vmem:[#allocation2 + $0xac] sm:$0xf] %v6280_v2  ;;  %5415 = vmatpush3.bf16.msra.mxu1 %v6144_v11  ;;  %vm949_vm4 = vcmask 1040384   ;;  %v5158_v44 = vld [vmem:[%s6380_s30 + $0x8] sm:$0xff]  }
  0x25   : > { %528 = vst [vmem:[#allocation2 + $0xb0] sm:$0x1] %v6280_v2  ;;  %529 = vst [vmem:[#allocation2 + $0xb4] sm:$0xf] %v6280_v2  ;;  %5607 = vmatpush3.bf16.msra.mxu0 %v6145_v15  ;;  %5416 = vmatprep.subr.bf16.mxu1 %v6146_v27  ;;  %v436_v46 = vmax.f32 %v404_v39, 0.0  ;;  %v437_v47 = vmax.f32 %v405_v40, 0.0  ;;  %v5020_v48 = vunpack.c.l.bf16 %v5158_v44  ;;  %v5021_v50 = vunpack.c.h.bf16 %v5158_v44 }
  0x26   : > { %530 = vst [vmem:[#allocation2 + $0xb8] sm:$0xf] %v6280_v2  ;;  %531 = vst [vmem:[#allocation2 + $0xbc] sm:$0x1] %v6280_v2  ;;  %5608 = vmatprep.subr.bf16.mxu0 %v6147_v31  ;;  %vm618_vm5 = vsmask.f32 256 }
  0x27   : > { %532 = vst [vmem:[#allocation2 + $0xc0] sm:$0xf] %v6280_v2  ;;  %533 = vst [vmem:[#allocation2 + $0xc4] sm:$0xf] %v6280_v2  ;;  %vm619_vm6 = vsmask.f32 4368  ;;  %v4950_v53 = vpack.c.bf16 %v436_v46, %v436_v46  ;;  %v4951_v54 = vpack.c.bf16 %v437_v47, %v437_v47  ;;  %v368_v56 = vmul.f32 %v5020_v48, %v6389_v26 }
  0x28   : > { %534 = vst [vmem:[#allocation2 + $0xc8] sm:$0x1] %v6280_v2  ;;  %535 = vst [vmem:[#allocation2 + $0xcc] sm:$0xf] %v6280_v2  ;;  %v5159_v51 = vld [vmem:[%s6380_s30 + $0x10] sm:$0xff]   ;;  %5417 = vmatpush3.bf16.msra.mxu1 %v6146_v27  ;;  %v6427_v55 = vld [vmem:[%s7595_s1] sm:$0xff]   ;;  %v369_v57 = vmul.f32 %v5021_v50, %v6389_v26 }
  0x29   : > { %536 = vst [vmem:[#allocation2 + $0xd0] sm:$0xf] %v6280_v2  ;;  %537 = vst [vmem:[#allocation2 + $0xd4] sm:$0x1] %v6280_v2  ;;  %5609 = vmatpush3.bf16.msra.mxu0 %v6147_v31  ;;  %5418 = vmatprep.subr.bf16.mxu1 %v6148_v41  ;;  %vm943_vm7 = vsmask.f32 7938  ;;  %v5024_v58 = vunpack.c.l.bf16 %v5159_v51  ;;  %v5025_v59 = vunpack.c.h.bf16 %v5159_v51  ;;  %v406_v3 = vadd.f32 %v6397_v30, %v368_v56 }
  0x2a   : > { %vm6406_vm2 = vmor %vm1129_vm0, %vm1130_vm1  ;;  %5610 = vmatprep.subr.bf16.mxu0 %v6149_v42  ;;  %v622_v60 = vshrl.u32 %v4950_v53, 16  ;;  %v625_v61 = vshll.u32 %v4950_v53, 16  ;;  %v630_v62 = vshrl.u32 %v4951_v54, 16  ;;  %v633_v63 = vshll.u32 %v4951_v54, 16  ;;  %v6434_v0 = vld [vmem:[%s7595_s1 + $0x140] sm:$0xff]   ;;  %v5160_v1 = vld [vmem:[%s6380_s30 + $0x18] sm:$0xff]  }
  0x2b   : > { %v1145_v45 = vsel %vm6406_vm2, %v1140_v38, %v1144_v28  ;;  %v1155_v49 = vsel %vm6406_vm2, %v1150_v43, %v1154_v37  ;;  %vm6439_vm8 = vmand %vm949_vm4, %vm618_vm5  ;;  %v407_v4 = vadd.f32 %v6397_v30, %v369_v57  ;;  %v370_v5 = vmul.f32 %v5024_v58, %v6389_v26  ;;  %v945_v13 = vld [vmem:[#allocation2 + $0xc] sm:$0xf]  ;;  %v951_v14 = vld [vmem:[#allocation2 + $0x14] sm:$0x1] }
  0x2c   : > { %v4658_v52 = vcombine.low %v1145_v45, %v1155_v49  ;;  %v371_v6 = vmul.f32 %v5025_v59, %v6389_v26  ;;  %5419 = vmatpush3.bf16.msra.mxu1 %v6148_v41  ;;  %vm6449_vm9 = vmor %vm618_vm5, %vm619_vm6  ;;  %v624_v8 = vrot.slane %v622_v60, 7  ;;  %v632_v9 = vrot.slane %v630_v62, 7  ;;  %v5161_v33 = vld [vmem:[%s6380_s30 + $0x20] sm:$0xff]   ;;  %v954_v45 = vld [vmem:[#allocation2 + $0x18] sm:$0xf] }
  0x2d   : > { %v5028_v10 = vunpack.c.l.bf16 %v5160_v1  ;;  %v5029_v11 = vunpack.c.h.bf16 %v5160_v1  ;;  %5611 = vmatpush3.bf16.msra.mxu0 %v6149_v42  ;;  %vm6455_vm10 = vmand %vm942_vm3, %vm943_vm7  ;;  %5452 = vmatprep.subr.bf16.mxu1 %v6427_v55  ;;  %v438_v15 = vmax.f32 %v406_v3, 0.0  ;;  %v439_v16 = vmax.f32 %v407_v4, 0.0  ;;  %v958_v48 = vld [vmem:[#allocation2 + $0x20] sm:$0x1]  ;;  %v961_v3 = vld [vmem:[#allocation2 + $0x24] sm:$0xf] }
  0x2e   : > { %5420 = vmatprep.mubr.bf16.mxu1 %v4658_v52  ;;  %v408_v17 = vadd.f32 %v6397_v30, %v370_v5  ;;  %v409_v18 = vadd.f32 %v6397_v30, %v371_v6  ;;  %v627_v19 = vor.u32 %v625_v61, %v624_v8  ;;  %v628_v20 = vrot.slane %v624_v8, 4  ;;  %5644 = vmatprep.subr.bf16.mxu0 %v6434_v0  ;;  %v6192_v2 = vld [vmem:[%s7595_s1 + $0xa8] sm:$0xff]   ;;  %v6255_v35 = vld [vmem:[%s7595_s1 + $0x138] sm:$0xff]  }
  0x2f   : > { %v635_v21 = vor.u32 %v633_v63, %v632_v9  ;;  %v637_v22 = vrot.slane %v632_v9, 4  ;;  %v4952_v23 = vpack.c.bf16 %v438_v15, %v438_v15  ;;  %v4953_v24 = vpack.c.bf16 %v439_v16, %v439_v16 }
  0x30   : > { %v440_v25 = vmax.f32 %v408_v17, 0.0  ;;  %v441_v27 = vmax.f32 %v409_v18, 0.0  ;;  %v946_v29 = vsel %vm6455_vm10, %v627_v19, %v945_v13  ;;  %v372_v32 = vmul.f32 %v5028_v10, %v6389_v26  ;;  %v965_v18 = vld [vmem:[#allocation2 + $0x2c] sm:$0x1] }
  0x31   : > { %v636_v28 = vsel %vm6449_vm9, %v628_v20, %v635_v21  ;;  %v952_v31 = vsel %vm6439_vm8, %v637_v22, %v951_v14  ;;  %947 = vst [vmem:[#allocation2 + $0xc] sm:$0xf] %v946_v29  ;;  %v639_v34 = vshrl.u32 %v4952_v23, 16  ;;  %v642_v36 = vshll.u32 %v4952_v23, 16  ;;  %v6498_v23 = vld [vmem:[%s6380_s30 + $0x28] sm:$0xff]  }
  0x32   : > { %948 = vst [vmem:[#allocation2 + $0x10] sm:$0xf] %v636_v28  ;;  %953 = vst [vmem:[#allocation2 + $0x14] sm:$0x1] %v952_v31  ;;  %v647_v37 = vshrl.u32 %v4953_v24, 16  ;;  %v650_v38 = vshll.u32 %v4953_v24, 16  ;;  %v4954_v39 = vpack.c.bf16 %v440_v25, %v440_v25  ;;  %v4955_v40 = vpack.c.bf16 %v441_v27, %v441_v27 }
  0x33   : > { %v373_v41 = vmul.f32 %v5029_v11, %v6389_v26  ;;  %v410_v42 = vadd.f32 %v6397_v30, %v372_v32  ;;  %v641_v43 = vrot.slane %v639_v34, 7  ;;  %v5032_v46 = vunpack.c.l.bf16 %v5161_v33  ;;  %v6505_v34 = vld [vmem:[%s6380_s30 + $0x30] sm:$0xff]  }
  0x34   : > { %v649_v44 = vrot.slane %v647_v37, 7  ;;  %v5033_v47 = vunpack.c.h.bf16 %v5161_v33  ;;  %v656_v49 = vshrl.u32 %v4954_v39, 16  ;;  %v659_v50 = vshll.u32 %v4954_v39, 16 }
  0x35   : > { %v664_v51 = vshrl.u32 %v4955_v40, 16  ;;  %v667_v52 = vshll.u32 %v4955_v40, 16  ;;  %v644_v53 = vor.u32 %v642_v36, %v641_v43  ;;  %v645_v54 = vrot.slane %v641_v43, 4 }
  0x36   : > { %v652_v56 = vor.u32 %v650_v38, %v649_v44  ;;  %v654_v57 = vrot.slane %v649_v44, 4  ;;  %v658_v58 = vrot.slane %v656_v49, 7  ;;  %v411_v60 = vadd.f32 %v6397_v30, %v373_v41 }
  0x37   : > { %v666_v59 = vrot.slane %v664_v51, 7  ;;  %v442_v61 = vmax.f32 %v410_v42, 0.0  ;;  %v955_v63 = vsel %vm6455_vm10, %v644_v53, %v954_v45  ;;  %v374_v4 = vmul.f32 %v5032_v46, %v6389_v26 }
  0x38   : > { %v653_v62 = vsel %vm6449_vm9, %v645_v54, %v652_v56  ;;  %v959_v1 = vsel %vm6439_vm8, %v654_v57, %v958_v48  ;;  %v6481_v5 = vld [vmem:[#allocation2 + $0xc] sm:$0xf]  ;;  %956 = vst [vmem:[#allocation2 + $0x18] sm:$0xf] %v955_v63  ;;  %v661_v9 = vor.u32 %v659_v50, %v658_v58  ;;  %v375_v13 = vmul.f32 %v5033_v47, %v6389_v26 }
  0x39   : > { %v6483_v6 = vld [vmem:[#allocation2 + $0x10] sm:$0xf]  ;;  %v6485_v8 = vld [vmem:[#allocation2 + $0x14] sm:$0x1]  ;;  %957 = vst [vmem:[#allocation2 + $0x1c] sm:$0xf] %v653_v62  ;;  %v669_v10 = vor.u32 %v667_v52, %v666_v59  ;;  %v6487_v11 = vpack.c.bf16 %v442_v61, %v442_v61  ;;  %v6512_v41 = vadd.f32 %v6397_v30, %v374_v4  ;;  %v5036_v43 = vunpack.c.l.bf16 %v6498_v23 }
  0x3a   : > { %960 = vst [vmem:[#allocation2 + $0x20] sm:$0x1] %v959_v1  ;;  %v1157_v14 = vshrl.u32 %v6481_v5, 16  ;;  %v1160_v15 = vshll.u32 %v6481_v5, 16  ;;  %v1166_v16 = vshll.u32 %v6483_v6, 16  ;;  %v1170_v17 = vshrl.u32 %v6483_v6, 16 }
  0x3b   : > { %v1176_v19 = vshll.u32 %v6485_v8, 16  ;;  %v662_v20 = vrot.slane %v658_v58, 4  ;;  %v671_v21 = vrot.slane %v666_v59, 4  ;;  %v962_v22 = vsel %vm6455_vm10, %v661_v9, %v961_v3  ;;  %v6153_v3 = vld [vmem:[%s7595_s1 + $0x8] sm:$0xff]  }
  0x3c   : > { %v1159_v24 = vrot.slane %v1157_v14, 4  ;;  %v1162_v25 = vrot.slane %v1160_v15, 5  ;;  %v1168_v27 = vrot.slane %v1166_v16, 5  ;;  %v1172_v28 = vrot.slane %v1170_v17, 4  ;;  %963 = vst [vmem:[#allocation2 + $0x24] sm:$0xf] %v962_v22 }
  0x3d   : > { %v1178_v29 = vrot.slane %v1176_v19, 5  ;;  %v670_v31 = vsel %vm6449_vm9, %v662_v20, %v669_v10  ;;  %v966_v32 = vsel %vm6439_vm8, %v671_v21, %v965_v18  ;;  %v443_v33 = vmax.f32 %v411_v60, 0.0 }
  0x3e   : > { %v1163_v36 = vor.u32 %v1162_v25, %v1159_v24  ;;  %v1173_v37 = vor.u32 %v1172_v28, %v1168_v27  ;;  %964 = vst [vmem:[#allocation2 + $0x28] sm:$0xf] %v670_v31  ;;  %967 = vst [vmem:[#allocation2 + $0x2c] sm:$0x1] %v966_v32  ;;  %v673_v38 = vshrl.u32 %v6487_v11, 16  ;;  %v676_v39 = vshll.u32 %v6487_v11, 16 }
  0x3f   : > { %v6509_v40 = vpack.c.bf16 %v443_v33, %v443_v33  ;;  %v6515_v42 = vadd.f32 %v6397_v30, %v375_v13  ;;  %v6518_v46 = vld [vmem:[#allocation2 + $0x18] sm:$0xf]  ;;  %v5037_v48 = vunpack.c.h.bf16 %v6498_v23  ;;  %v5040_v49 = vunpack.c.l.bf16 %v6505_v34  ;;  %v6156_v31 = vld [vmem:[%s7595_s1 + $0x10] sm:$0xff]  }
  0x40   : > { %v1164_v44 = vrot.slane %v1163_v36, 4  ;;  %v1174_v45 = vrot.slane %v1173_v37, 4  ;;  %v6520_v47 = vld [vmem:[#allocation2 + $0x1c] sm:$0xf]  ;;  %v1181_v51 = vshrl.u32 %v6518_v46, 16  ;;  %v1184_v52 = vshll.u32 %v6518_v46, 16 }
  0x41   : > { %v6524_v50 = vld [vmem:[#allocation2 + $0x20] sm:$0x1]  ;;  %v1190_v53 = vshll.u32 %v6520_v47, 16  ;;  %v1194_v54 = vshrl.u32 %v6520_v47, 16  ;;  %v675_v16 = vrot.slane %v673_v38, 7  ;;  %v681_v17 = vshrl.u32 %v6509_v40, 16 }
  0x42   : > { %v1169_v56 = vsel %vm6406_vm2, %v1164_v44, %v1168_v27  ;;  %v1179_v57 = vsel %vm6406_vm2, %v1174_v45, %v1178_v29  ;;  %v1200_v58 = vshll.u32 %v6524_v50, 16  ;;  %v2149_v59 = vrot.slane %v6524_v50, 5  ;;  %v968_v29 = vld [vmem:[#allocation2 + $0x30] sm:$0xf]  ;;  %v972_v37 = vld [vmem:[#allocation2 + $0x38] sm:$0x1] }
  0x43   : > { %v4659_v60 = vcombine.low %v1169_v56, %v1179_v57  ;;  %v1183_v61 = vrot.slane %v1181_v51, 4  ;;  %v1186_v62 = vrot.slane %v1184_v52, 5  ;;  %v1192_v63 = vrot.slane %v1190_v53, 5  ;;  %v6536_v1 = vld [vmem:[#allocation2 + $0x24] sm:$0xf]  ;;  %v6152_v56 = vld [vmem:[%s7595_s1 + $0x148] sm:$0xff]  }
  0x44   : > { %v1196_v4 = vrot.slane %v1194_v54, 4  ;;  %v1202_v9 = vrot.slane %v1200_v58, 5  ;;  %v1205_v10 = vshrl.u32 %v6536_v1, 16  ;;  %v1208_v11 = vshll.u32 %v6536_v1, 16 }
  0x45   : > { %5421 = vmatmul.mubr.bf16.vlgmr.msra.gmra.mrb[0].mxu1 %v4659_v60  ;;  %5612 = vmatprep.mubr.bf16.mxu0 %v4659_v60  ;;  %v1187_v13 = vor.u32 %v1186_v62, %v1183_v61  ;;  %v6543_v14 = vld [vmem:[#allocation2 + $0x28] sm:$0xf]  ;;  %v6545_v15 = vld [vmem:[#allocation2 + $0x2c] sm:$0x1]  ;;  %v376_v18 = vmul.f32 %v5036_v43, %v6389_v26  ;;  %v678_v28 = vor.u32 %v676_v39, %v675_v16  ;;  %v679_v36 = vrot.slane %v675_v16, 4  ;;  %v6159_v61 = vld [vmem:[%s7595_s1 + $0x18] sm:$0xff]  }
  0x46   : > { %5453 = vmatpush3.bf16.msra.mxu1 %v6427_v55  ;;  %v1197_v19 = vor.u32 %v1196_v4, %v1192_v63  ;;  %v1207_v20 = vrot.slane %v1205_v10, 4  ;;  %v1210_v21 = vrot.slane %v1208_v11, 5  ;;  %v1214_v22 = vshll.u32 %v6543_v14, 16  ;;  %v6154_v16 = vld [vmem:[%s7595_s1 + $0x150] sm:$0xff]  }
  0x47   : > { %v1188_v24 = vrot.slane %v1187_v13, 4  ;;  %v1218_v25 = vshrl.u32 %v6543_v14, 16  ;;  %v1224_v27 = vshll.u32 %v6545_v15, 16  ;;  %5454 = vmatprep.subr.bf16.mxu1 %v6153_v3  ;;  %v683_v45 = vrot.slane %v681_v17, 7 }
  0x48   : > { %v1198_v32 = vrot.slane %v1197_v19, 4  ;;  %v1211_v33 = vor.u32 %v1210_v21, %v1207_v20  ;;  %v1216_v55 = vrot.slane %v1214_v22, 5  ;;  %v684_v52 = vshll.u32 %v6509_v40, 16  ;;  %v6594_v19 = vld [vmem:[%s6380_s30 + $0x38] sm:$0xff]  }
  0x49   : > { %v1193_v38 = vsel %vm6406_vm2, %v1188_v24, %v1192_v63  ;;  %v1220_v43 = vrot.slane %v1218_v25, 4  ;;  %v1226_v44 = vrot.slane %v1224_v27, 5  ;;  %v969_v53 = vsel %vm6455_vm10, %v678_v28, %v968_v29  ;;  %v975_v27 = vld [vmem:[#allocation2 + $0x3c] sm:$0xf]  ;;  %v979_v28 = vld [vmem:[#allocation2 + $0x44] sm:$0x1] }
  0x4a   : > { %v1203_v51 = vsel %vm6406_vm2, %v1198_v32, %v1202_v9  ;;  %v1212_v39 = vrot.slane %v1211_v33, 4  ;;  %5455 = vmatpush3.bf16.msra.mxu1 %v6153_v3  ;;  %v688_v58 = vrot.slane %v683_v45, 4  ;;  %970 = vst [vmem:[#allocation2 + $0x30] sm:$0xf] %v969_v53  ;;  %v444_v60 = vmax.f32 %v6512_v41, 0.0  ;;  %v6162_v33 = vld [vmem:[%s7595_s1 + $0x20] sm:$0xff]  }
  0x4b   : > { %v6563_v54 = vcombine.low %v1193_v38, %v1203_v51  ;;  %v1221_v57 = vor.u32 %v1220_v43, %v1216_v55  ;;  %5456 = vmatprep.subr.bf16.mxu1 %v6156_v31  ;;  %v686_v62 = vor.u32 %v684_v52, %v683_v45  ;;  %v445_v63 = vmax.f32 %v6515_v42, 0.0 }
  0x4c   : > { %v1217_v40 = vsel %vm6406_vm2, %v1212_v39, %v1216_v55  ;;  %v377_v3 = vmul.f32 %v5037_v48, %v6389_v26  ;;  %v973_v4 = vsel %vm6439_vm8, %v688_v58, %v972_v37  ;;  %v4958_v9 = vpack.c.bf16 %v444_v60, %v444_v60 }
  0x4d   : > { %7624 = vst [vmem:[#allocation3_spill] sm:$0xff] %v6563_v54  ;;  %5613 = vmatmul.mubr.bf16.vlgmr.msra.gmra.mrb[0].mxu0 %v6563_v54  ;;  %5424 = vmatprep.mubr.bf16.mxu1 %v6563_v54  ;;  %v1222_v41 = vrot.slane %v1221_v57, 4  ;;  %v414_v10 = vadd.f32 %v6397_v30, %v376_v18  ;;  %v687_v42 = vsel %vm6449_vm9, %v679_v36, %v686_v62  ;;  %974 = vst [vmem:[#allocation2 + $0x38] sm:$0x1] %v973_v4  ;;  %vm2127_vm11 = vcmask 1042432  }
  0x4e   : > { %5645 = vmatpush3.bf16.msra.mxu0 %v6434_v0  ;;  %v4959_v23 = vpack.c.bf16 %v445_v63, %v445_v63  ;;  %5457 = vmatpush3.bf16.msra.mxu1 %v6156_v31  ;;  %v415_v48 = vadd.f32 %v6397_v30, %v377_v3  ;;  %v5041_v11 = vunpack.c.h.bf16 %v6505_v34  ;;  %971 = vst [vmem:[#allocation2 + $0x34] sm:$0xf] %v687_v42  ;;  %v690_v0 = vshrl.u32 %v4958_v9, 16  ;;  %v982_v63 = vld [vmem:[#allocation2 + $0x48] sm:$0xf] }
  0x4f   : > { %5646 = vmatprep.subr.bf16.mxu0 %v6152_v56  ;;  %v1227_v13 = vsel %vm6406_vm2, %v1222_v41, %v1226_v44  ;;  %v693_v17 = vshll.u32 %v4958_v9, 16  ;;  %v446_v18 = vmax.f32 %v414_v10, 0.0  ;;  %5458 = vmatprep.subr.bf16.mxu1 %v6159_v61  ;;  %v6601_v31 = vmul.f32 %v5040_v49, %v6389_v26  ;;  %v6155_v44 = vld [vmem:[%s7595_s1 + $0x158] sm:$0xff]   ;;  %v6164_v3 = vld [vmem:[%s7595_s1 + $0x28] sm:$0xff]   ;;  %v986_v42 = vld [vmem:[#allocation2 + $0x50] sm:$0x1] }
  0x50   : > { %v6596_v20 = vcombine.low %v1217_v40, %v1227_v13  ;;  %v698_v21 = vshrl.u32 %v4959_v23, 16  ;;  %v701_v22 = vshll.u32 %v4959_v23, 16  ;;  %v447_v24 = vmax.f32 %v415_v48, 0.0  ;;  %v6157_v13 = vld [vmem:[%s7595_s1 + $0x160] sm:$0xff]  }
  0x51   : > { %v692_v25 = vrot.slane %v690_v0, 7  ;;  %v4960_v29 = vpack.c.bf16 %v446_v18, %v446_v18  ;;  %v379_v32 = vmul.f32 %v5041_v11, %v6389_v26  ;;  %v6608_v55 = vld [vmem:[#allocation2 + $0x30] sm:$0xf]  ;;  %v5044_v38 = vunpack.c.l.bf16 %v6594_v19 }
  0x52   : > { %7625 = vst [vmem:[#allocation4_spill] sm:$0xff] %v6596_v20  ;;  %5647 = vmatpush3.bf16.msra.mxu0 %v6152_v56  ;;  %5425 = vmatmul.mubr.bf16.gmra.mrb[4].mxu1 %v6596_v20  ;;  %v700_v36 = vrot.slane %v698_v21, 7  ;;  %v4961_v37 = vpack.c.bf16 %v447_v24, %v447_v24  ;;  %v5045_v43 = vunpack.c.h.bf16 %v6594_v19  ;;  %v1229_v34 = vshrl.u32 %v6608_v55, 16  ;;  %v6166_v24 = vld [vmem:[%s7595_s1 + $0x30] sm:$0xff]  }
  0x53   : > { %5616 = vmatprep.mubr.bf16.mxu0 %v6596_v20  ;;  %5648 = vmatprep.subr.bf16.mxu0 %v6154_v16  ;;  %v1232_v49 = vshll.u32 %v6608_v55, 16  ;;  %v695_v45 = vor.u32 %v693_v17, %v692_v25  ;;  %v696_v51 = vrot.slane %v692_v25, 4  ;;  %v707_v53 = vshrl.u32 %v4960_v29, 16 }
  0x54   : > { %v703_v39 = vor.u32 %v701_v22, %v700_v36  ;;  %v705_v52 = vrot.slane %v700_v36, 4  ;;  %v710_v56 = vshll.u32 %v4960_v29, 16  ;;  %5459 = vmatpush3.bf16.msra.mxu1 %v6159_v61  ;;  %v6618_v57 = vld [vmem:[#allocation2 + $0x38] sm:$0x1]  ;;  %v1231_v58 = vrot.slane %v1229_v34, 4  ;;  %v6638_v22 = vld [vmem:[%s6380_s30 + $0x40] sm:$0xff]  }
  0x55   : > { %v1234_v60 = vrot.slane %v1232_v49, 5  ;;  %v976_v40 = vsel %vm6455_vm10, %v695_v45, %v975_v27  ;;  %v715_v62 = vshrl.u32 %v4961_v37, 16  ;;  %5460 = vmatprep.subr.bf16.mxu1 %v6162_v33  ;;  %v6625_v41 = vld [vmem:[#allocation2 + $0x34] sm:$0xf]  ;;  %v1248_v4 = vshll.u32 %v6618_v57, 16  ;;  %v6646_v36 = vld [vmem:[%s7595_s1 + $0x168] sm:$0xff]  }
  0x56   : > { %5649 = vmatpush3.bf16.msra.mxu0 %v6154_v16  ;;  %v704_v61 = vsel %vm6449_vm9, %v696_v51, %v703_v39  ;;  %977 = vst [vmem:[#allocation2 + $0x3c] sm:$0xf] %v976_v40  ;;  %v980_v9 = vsel %vm6439_vm8, %v705_v52, %v979_v28  ;;  %v709_v10 = vrot.slane %v707_v53, 7  ;;  %v1238_v48 = vshll.u32 %v6625_v41, 16 }
  0x57   : > { %v1235_v23 = vor.u32 %v1234_v60, %v1231_v58  ;;  %v1242_v11 = vshrl.u32 %v6625_v41, 16  ;;  %5650 = vmatprep.subr.bf16.mxu0 %v6155_v44  ;;  %978 = vst [vmem:[#allocation2 + $0x40] sm:$0xf] %v704_v61  ;;  %981 = vst [vmem:[#allocation2 + $0x44] sm:$0x1] %v980_v9  ;;  %v717_v16 = vrot.slane %v715_v62, 7  ;;  %v417_v49 = vadd.f32 %v6397_v30, %v379_v32 }
  0x58   : > { %v1250_v0 = vrot.slane %v1248_v4, 5  ;;  %v712_v17 = vor.u32 %v710_v56, %v709_v10  ;;  %v713_v18 = vrot.slane %v709_v10, 4  ;;  %v718_v21 = vshll.u32 %v4961_v37, 16  ;;  %5461 = vmatpush3.bf16.msra.mxu1 %v6162_v33  ;;  %v6168_v62 = vld [vmem:[%s7595_s1 + $0x38] sm:$0xff]  }
  0x59   : > { %v1236_v25 = vrot.slane %v1235_v23, 4  ;;  %v1240_v27 = vrot.slane %v1238_v48, 5  ;;  %v1244_v28 = vrot.slane %v1242_v11, 4  ;;  %v722_v29 = vrot.slane %v717_v16, 4  ;;  %5462 = vmatprep.subr.bf16.mxu1 %v6164_v3 }
  0x5a   : > { %5651 = vmatpush3.bf16.msra.mxu0 %v6155_v44  ;;  %v720_v34 = vor.u32 %v718_v21, %v717_v16  ;;  %v983_v37 = vsel %vm6455_vm10, %v712_v17, %v982_v63  ;;  %v416_v33 = vadd.f32 %v6397_v30, %v6601_v31  ;;  %v380_v44 = vmul.f32 %v5044_v38, %v6389_v26  ;;  %v6160_v17 = vld [vmem:[%s7595_s1 + $0x170] sm:$0xff]  }
  0x5b   : > { %v1241_v45 = vsel %vm6406_vm2, %v1236_v25, %v1240_v27  ;;  %v1245_v51 = vor.u32 %v1244_v28, %v1240_v27  ;;  %5652 = vmatprep.subr.bf16.mxu0 %v6157_v13  ;;  %984 = vst [vmem:[#allocation2 + $0x48] sm:$0xf] %v983_v37  ;;  %v987_v39 = vsel %vm6439_vm8, %v722_v29, %v986_v42  ;;  %v449_v56 = vmax.f32 %v417_v49, 0.0 }
  0x5c   : > { %v721_v52 = vsel %vm6449_vm9, %v713_v18, %v720_v34  ;;  %988 = vst [vmem:[#allocation2 + $0x50] sm:$0x1] %v987_v39  ;;  %v448_v53 = vmax.f32 %v416_v33, 0.0  ;;  %v381_v31 = vmul.f32 %v5045_v43, %v6389_v26  ;;  %5463 = vmatpush3.bf16.msra.mxu1 %v6164_v3  ;;  %v6666_v60 = vadd.f32 %v6397_v30, %v380_v44 }
  0x5d   : > { %v1246_v32 = vrot.slane %v1245_v51, 4  ;;  %v6663_v58 = vld [vmem:[#allocation2 + $0x3c] sm:$0xf]  ;;  %985 = vst [vmem:[#allocation2 + $0x4c] sm:$0xf] %v721_v52  ;;  %v5048_v38 = vunpack.c.l.bf16 %v6638_v22  ;;  %v5049_v40 = vunpack.c.h.bf16 %v6638_v22  ;;  %5464 = vmatprep.subr.bf16.mxu1 %v6166_v24  ;;  %v4963_v61 = vpack.c.bf16 %v449_v56, %v449_v56 }
  0x5e   : > { %v6673_v63 = vld [vmem:[#allocation2 + $0x40] sm:$0xf]  ;;  %v6675_v19 = vld [vmem:[#allocation2 + $0x44] sm:$0x1]  ;;  %v1253_v43 = vshrl.u32 %v6663_v58, 16  ;;  %v1256_v3 = vshll.u32 %v6663_v58, 16  ;;  %5653 = vmatpush3.bf16.msra.mxu0 %v6157_v13  ;;  %v4962_v4 = vpack.c.bf16 %v448_v53, %v448_v53  ;;  %v419_v44 = vadd.f32 %v6397_v30, %v381_v31 }
  0x5f   : > { %v1251_v9 = vsel %vm6406_vm2, %v1246_v32, %v1250_v0  ;;  %v1262_v10 = vshll.u32 %v6673_v63, 16  ;;  %v1266_v42 = vshrl.u32 %v6673_v63, 16  ;;  %v1272_v23 = vshll.u32 %v6675_v19, 16  ;;  %5654 = vmatprep.subr.bf16.mxu0 %v6646_v36  ;;  %v6172_v0 = vld [vmem:[%s7595_s1 + $0x80] sm:$0xff]  }
  0x60   : > { %vm2128_vm12 = vcmask 1046532   ;;  %v6685_v48 = vcombine.low %v1241_v45, %v1251_v9  ;;  %v1255_v11 = vrot.slane %v1253_v43, 4  ;;  %v1258_v16 = vrot.slane %v1256_v3, 5  ;;  %5465 = vmatpush3.bf16.msra.mxu1 %v6166_v24  ;;  %v989_v24 = vld [vmem:[#allocation2 + $0x54] sm:$0xf]  ;;  %v6161_v3 = vld [vmem:[%s7595_s1 + $0x178] sm:$0xff]  }
  0x61   : > { %v724_v13 = vshrl.u32 %v4962_v4, 16  ;;  %v1264_v18 = vrot.slane %v1262_v10, 5  ;;  %v1268_v21 = vrot.slane %v1266_v42, 4  ;;  %v1274_v25 = vrot.slane %v1272_v23, 5  ;;  %5466 = vmatprep.subr.bf16.mxu1 %v6168_v62  ;;  %v993_v10 = vld [vmem:[#allocation2 + $0x5c] sm:$0x1]  ;;  %vm6736_vm13 = vmor %vm2127_vm11, %vm2128_vm12 }
  0x62   : > { %7626 = vst [vmem:[#allocation5_spill] sm:$0xff] %v6685_v48  ;;  %v727_v27 = vshll.u32 %v4962_v4, 16  ;;  %5617 = vmatmul.mubr.bf16.gmra.mrb[4].mxu0 %v6685_v48  ;;  %5428 = vmatprep.mubr.bf16.mxu1 %v6685_v48  ;;  %v1259_v28 = vor.u32 %v1258_v16, %v1255_v11  ;;  %v6695_v29 = vld [vmem:[#allocation2 + $0x48] sm:$0xf]  ;;  %v732_v37 = vshrl.u32 %v4963_v61, 16  ;;  %v735_v33 = vshll.u32 %v4963_v61, 16 }
  0x63   : > { %v726_v34 = vrot.slane %v724_v13, 7  ;;  %v1269_v49 = vor.u32 %v1268_v21, %v1264_v18  ;;  %v6697_v45 = vld [vmem:[#allocation2 + $0x50] sm:$0x1]  ;;  %v1277_v51 = vshrl.u32 %v6695_v29, 16  ;;  %v1280_v39 = vshll.u32 %v6695_v29, 16  ;;  %5655 = vmatpush3.bf16.msra.mxu0 %v6646_v36 }
  0x64   : > { %v1260_v52 = vrot.slane %v1259_v28, 4  ;;  %v6703_v53 = vld [vmem:[#allocation2 + $0x4c] sm:$0xf]  ;;  %v1296_v56 = vshll.u32 %v6697_v45, 16  ;;  %5656 = vmatprep.subr.bf16.mxu0 %v6160_v17  ;;  %5467 = vmatpush3.bf16.msra.mxu1 %v6168_v62  ;;  %v734_v11 = vrot.slane %v732_v37, 7 }
  0x65   : > { %v729_v32 = vor.u32 %v727_v27, %v726_v34  ;;  %v730_v43 = vrot.slane %v726_v34, 4  ;;  %v1270_v4 = vrot.slane %v1269_v49, 4  ;;  %v1279_v61 = vrot.slane %v1277_v51, 4  ;;  %5500 = vmatprep.subr.bf16.mxu1 %v6172_v0  ;;  %v6238_v7 = vld [vmem:[#allocation2 + $0x40] sm:$0xf] }
  0x66   : > { %v1282_v9 = vrot.slane %v1280_v39, 5  ;;  %v1286_v36 = vshll.u32 %v6703_v53, 16  ;;  %v1265_v31 = vsel %vm6406_vm2, %v1260_v52, %v1264_v18  ;;  %v1290_v42 = vshrl.u32 %v6703_v53, 16  ;;  %v6722_v18 = vld [vmem:[%s7595_s1 + $0x180] sm:$0xff]   ;;  %v6239_v12 = vld [vmem:[#allocation2 + $0x48] sm:$0xf] }
  0x67   : > { %v1298_v23 = vrot.slane %v1296_v56, 5  ;;  %v1275_v16 = vsel %vm6406_vm2, %v1270_v4, %v1274_v25  ;;  %v990_v62 = vsel %vm6455_vm10, %v729_v32, %v989_v24  ;;  %5657 = vmatpush3.bf16.msra.mxu0 %v6160_v17  ;;  %v737_v0 = vor.u32 %v735_v33, %v734_v11 }
  0x68   : > { %v1283_v13 = vor.u32 %v1282_v9, %v1279_v61  ;;  %v1288_v21 = vrot.slane %v1286_v36, 5  ;;  %v6717_v27 = vcombine.low %v1265_v31, %v1275_v16  ;;  %v1292_v28 = vrot.slane %v1290_v42, 4  ;;  %991 = vst [vmem:[#allocation2 + $0x54] sm:$0xf] %v990_v62  ;;  %5658 = vmatprep.subr.bf16.mxu0 %v6161_v3  ;;  %v1000_v62 = vld [vmem:[#allocation2 + $0x68] sm:$0x1] }
  0x69   : > { %v739_v34 = vrot.slane %v734_v11, 4  ;;  %v450_v25 = vmax.f32 %v6666_v60, 0.0  ;;  %v451_v49 = vmax.f32 %v419_v44, 0.0  ;;  %v382_v17 = vmul.f32 %v5048_v38, %v6389_v26  ;;  %v996_v11 = vld [vmem:[#allocation2 + $0x60] sm:$0xf] }
  0x6a   : > { %7627 = vst [vmem:[#allocation6_spill] sm:$0xff] %v6717_v27  ;;  %v1284_v37 = vrot.slane %v1283_v13, 4  ;;  %5429 = vmatmul.mubr.bf16.gmra.mrb[8].mxu1 %v6717_v27  ;;  %5620 = vmatprep.mubr.bf16.mxu0 %v6717_v27  ;;  %v1293_v33 = vor.u32 %v1292_v28, %v1288_v21  ;;  %v738_v24 = vsel %vm6449_vm9, %v730_v43, %v737_v0  ;;  %v4707_v39 = vrot.slane %v6481_v5, 9  ;;  %v1024_v27 = vld [vmem:[#allocation2 + $0x90] sm:$0xf] }
  0x6b   : > { %v994_v51 = vsel %vm6439_vm8, %v739_v34, %v993_v10  ;;  %992 = vst [vmem:[#allocation2 + $0x58] sm:$0xf] %v738_v24  ;;  %v4964_v44 = vpack.c.bf16 %v450_v25, %v450_v25  ;;  %v4965_v52 = vpack.c.bf16 %v451_v49, %v451_v49  ;;  %5659 = vmatpush3.bf16.msra.mxu0 %v6161_v3  ;;  %v2139_v4 = vrot.slane %v6483_v6, 5 }
  0x6c   : > { %v1289_v38 = vsel %vm6406_vm2, %v1284_v37, %v1288_v21  ;;  %995 = vst [vmem:[#allocation2 + $0x5c] sm:$0x1] %v994_v51  ;;  %v383_v56 = vmul.f32 %v5049_v40, %v6389_v26  ;;  %v1294_v32 = vrot.slane %v1293_v33, 4  ;;  %v420_v43 = vadd.f32 %v6397_v30, %v382_v17  ;;  %5692 = vmatprep.subr.bf16.mxu0 %v6722_v18 }
  0x6d   : > { %v2142_v61 = vrot.slane %v6485_v8, 5  ;;  %v741_v5 = vshrl.u32 %v4964_v44, 16  ;;  %v744_v9 = vshll.u32 %v4964_v44, 16  ;;  %v749_v36 = vshrl.u32 %v4965_v52, 16 }
  0x6e   : > { %v752_v10 = vshll.u32 %v4965_v52, 16  ;;  %v1299_v3 = vsel %vm6406_vm2, %v1294_v32, %v1298_v23  ;;  %v421_v31 = vadd.f32 %v6397_v30, %v383_v56  ;;  %v452_v22 = vmax.f32 %v420_v43, 0.0 }
  0x6f   : > { %v2140_v26 = vsel %vm6736_vm13, %v4707_v39, %v2139_v4  ;;  %v6755_v40 = vcombine.low %v1289_v38, %v1299_v3  ;;  %v6757_v6 = vld [vmem:[#allocation2 + $0x54] sm:$0xf]  ;;  %v743_v8 = vrot.slane %v741_v5, 7  ;;  %v751_v42 = vrot.slane %v749_v36, 7  ;;  %v5166_v5 = vld [vmem:[%s6380_s30 + $0x48] sm:$0xff]  }
  0x70   : > { %v2141_v16 = vrot.slane %v2139_v4, 4  ;;  %v1301_v13 = vshrl.u32 %v6757_v6, 16  ;;  %v1304_v21 = vshll.u32 %v6757_v6, 16  ;;  %v453_v23 = vmax.f32 %v421_v31, 0.0  ;;  %v1003_v3 = vld [vmem:[#allocation2 + $0x6c] sm:$0xf] }
  0x71   : > { %7630 = vst [vmem:[#allocation7_spill] sm:$0xff] %v6755_v40  ;;  %v4966_v28 = vpack.c.bf16 %v452_v22, %v452_v22  ;;  %5621 = vmatmul.mubr.bf16.gmra.mrb[8].mxu0 %v6755_v40  ;;  %5432 = vmatprep.mubr.bf16.mxu1 %v6755_v40  ;;  %v746_v30 = vor.u32 %v744_v9, %v743_v8  ;;  %v747_v0 = vrot.slane %v743_v8, 4  ;;  %v756_v37 = vrot.slane %v751_v42, 4 }
  0x72   : > { %v754_v34 = vor.u32 %v752_v10, %v751_v42  ;;  %v6763_v25 = vld [vmem:[#allocation2 + $0x58] sm:$0xf]  ;;  %v1303_v17 = vrot.slane %v1301_v13, 4  ;;  %v1306_v33 = vrot.slane %v1304_v21, 5  ;;  %v4967_v24 = vpack.c.bf16 %v453_v23, %v453_v23 }
  0x73   : > { %v6765_v49 = vld [vmem:[#allocation2 + $0x5c] sm:$0x1]  ;;  %v2143_v51 = vsel %vm6736_vm13, %v2141_v16, %v2142_v61  ;;  %v1310_v39 = vshll.u32 %v6763_v25, 16  ;;  %v1314_v38 = vshrl.u32 %v6763_v25, 16  ;;  %v997_v32 = vsel %vm6455_vm10, %v746_v30, %v996_v11 }
  0x74   : > { %v1320_v44 = vshll.u32 %v6765_v49, 16  ;;  %v755_v52 = vsel %vm6449_vm9, %v747_v0, %v754_v34  ;;  %v1307_v56 = vor.u32 %v1306_v33, %v1303_v17  ;;  %v1001_v43 = vsel %vm6439_vm8, %v756_v37, %v1000_v62  ;;  %998 = vst [vmem:[#allocation2 + $0x60] sm:$0xf] %v997_v32  ;;  %v1007_v34 = vld [vmem:[#allocation2 + $0x74] sm:$0x1] }
  0x75   : > { %999 = vst [vmem:[#allocation2 + $0x64] sm:$0xf] %v755_v52  ;;  %v758_v4 = vshrl.u32 %v4966_v28, 16  ;;  %v1312_v61 = vrot.slane %v1310_v39, 5  ;;  %v1316_v9 = vrot.slane %v1314_v38, 4  ;;  %v761_v10 = vshll.u32 %v4966_v28, 16 }
  0x76   : > { %v1322_v36 = vrot.slane %v1320_v44, 5  ;;  %1002 = vst [vmem:[#allocation2 + $0x68] sm:$0x1] %v1001_v43  ;;  %v1308_v31 = vrot.slane %v1307_v56, 4  ;;  %v766_v8 = vshrl.u32 %v4967_v24, 16  ;;  %v769_v42 = vshll.u32 %v4967_v24, 16 }
  0x77   : > { %v760_v22 = vrot.slane %v758_v4, 7  ;;  %v1317_v16 = vor.u32 %v1316_v9, %v1312_v61  ;;  %v6779_v11 = vcombine.low %v2140_v26, %v2143_v51  ;;  %v4708_v13 = vrot.slane %v6518_v46, 9  ;;  %v5167_v28 = vld [vmem:[%s6380_s30 + $0x50] sm:$0xff]   ;;  %v6801_v52 = vld [vmem:[%s7596_s2] ss:$0 sm:$0xff] }
  0x78   : > { %v2146_v21 = vrot.slane %v6520_v47, 5  ;;  %v1313_v62 = vsel %vm6406_vm2, %v1308_v31, %v1312_v61  ;;  %v768_v0 = vrot.slane %v766_v8, 7  ;;  %v5052_v24 = vunpack.c.l.bf16 %v5166_v5 }
  0x79   : > { %v763_v23 = vor.u32 %v761_v10, %v760_v22  ;;  %v764_v30 = vrot.slane %v760_v22, 4  ;;  %v1318_v37 = vrot.slane %v1317_v16, 4  ;;  %v5053_v47 = vunpack.c.h.bf16 %v5166_v5 }
  0x7a   : > { %v2147_v17 = vsel %vm6736_vm13, %v4708_v13, %v2146_v21  ;;  %v2148_v33 = vrot.slane %v2146_v21, 4  ;;  %v771_v26 = vor.u32 %v769_v42, %v768_v0  ;;  %v773_v51 = vrot.slane %v768_v0, 4 }
  0x7b   : > { %v1004_v46 = vsel %vm6455_vm10, %v763_v23, %v1003_v3  ;;  %v1323_v39 = vsel %vm6406_vm2, %v1318_v37, %v1322_v36  ;;  %v384_v56 = vmul.f32 %v6801_v52, %v5052_v24  ;;  %v5056_v32 = vunpack.c.l.bf16 %v5167_v28  ;;  %v6806_v4 = vld [vmem:[#allocation2 + $0x60] sm:$0xf] }
  0x7c   : > { %v6792_v38 = vld [vmem:[#allocation2 + $0x64] sm:$0xf]  ;;  %1005 = vst [vmem:[#allocation2 + $0x6c] sm:$0xf] %v1004_v46  ;;  %v2150_v44 = vsel %vm6736_vm13, %v2148_v33, %v2149_v59  ;;  %v6804_v43 = vcombine.low %v1313_v62, %v1323_v39  ;;  %v772_v59 = vsel %vm6449_vm9, %v764_v30, %v771_v26  ;;  %v1325_v9 = vshrl.u32 %v6806_v4, 16 }
  0x7d   : > { %v6808_v5 = vld [vmem:[#allocation2 + $0x68] sm:$0x1]  ;;  %v1334_v61 = vshll.u32 %v6792_v38, 16  ;;  %v1338_v50 = vshrl.u32 %v6792_v38, 16  ;;  %v1328_v36 = vshll.u32 %v6806_v4, 16  ;;  %v1008_v3 = vsel %vm6439_vm8, %v773_v51, %v1007_v34 }
  0x7e   : > { %7631 = vst [vmem:[#allocation8_spill] sm:$0xff] %v6804_v43  ;;  %v1344_v10 = vshll.u32 %v6808_v5, 16  ;;  %1006 = vst [vmem:[#allocation2 + $0x70] sm:$0xf] %v772_v59  ;;  %5433 = vmatmul.mubr.bf16.gmra.mrb[12].mxu1 %v6804_v43  ;;  %5624 = vmatprep.mubr.bf16.mxu0 %v6804_v43  ;;  %v6821_v8 = vcombine.low %v2147_v17, %v2150_v44  ;;  %v385_v42 = vmul.f32 %v6801_v52, %v5053_v47  ;;  %v6827_v62 = vld [vmem:[%s7597_s3] ss:$0 sm:$0xff] }
  0x7f   : > { %v1336_v31 = vrot.slane %v1334_v61, 5  ;;  %v1340_v22 = vrot.slane %v1338_v50, 4  ;;  %1009 = vst [vmem:[#allocation2 + $0x74] sm:$0x1] %v1008_v3  ;;  %v1327_v16 = vrot.slane %v1325_v9, 4  ;;  %v1330_v13 = vrot.slane %v1328_v36, 5 }
  0x80   : > { %v1346_v21 = vrot.slane %v1344_v10, 5  ;;  %v422_v23 = vadd.f32 %v6827_v62, %v384_v56  ;;  %v423_v0 = vadd.f32 %v6827_v62, %v385_v42  ;;  %v5057_v34 = vunpack.c.h.bf16 %v5167_v28 }
  0x81   : > { %v1341_v30 = vor.u32 %v1340_v22, %v1336_v31  ;;  %v386_v37 = vmul.f32 %v6801_v52, %v5056_v32  ;;  %v1331_v17 = vor.u32 %v1330_v13, %v1327_v16  ;;  %v4709_v24 = vrot.slane %v6536_v1, 9 }
  0x82   : > { %v454_v33 = vmax.f32 %v422_v23, 0.0  ;;  %v2153_v26 = vrot.slane %v6543_v14, 5  ;;  %v455_v47 = vmax.f32 %v423_v0, 0.0  ;;  %v387_v39 = vmul.f32 %v6801_v52, %v5057_v34 }
  0x83   : > { %v1342_v51 = vrot.slane %v1341_v30, 4  ;;  %v6834_v46 = vld [vmem:[#allocation2 + $0x6c] sm:$0xf]  ;;  %v424_v44 = vadd.f32 %v6827_v62, %v386_v37  ;;  %v1332_v56 = vrot.slane %v1331_v17, 4 }
  0x84   : > { %v1349_v61 = vshrl.u32 %v6834_v46, 16  ;;  %v1352_v28 = vshll.u32 %v6834_v46, 16  ;;  %v4968_v32 = vpack.c.bf16 %v454_v33, %v454_v33  ;;  %v4969_v59 = vpack.c.bf16 %v455_v47, %v455_v47  ;;  %v1010_v33 = vld [vmem:[#allocation2 + $0x78] sm:$0xf] }
  0x85   : > { %v1347_v50 = vsel %vm6406_vm2, %v1342_v51, %v1346_v21  ;;  %v6842_v1 = vld [vmem:[#allocation2 + $0x70] sm:$0xf]  ;;  %v425_v9 = vadd.f32 %v6827_v62, %v387_v39  ;;  %v456_v36 = vmax.f32 %v424_v44, 0.0  ;;  %v1337_v10 = vsel %vm6406_vm2, %v1332_v56, %v1336_v31  ;;  %v1014_v44 = vld [vmem:[#allocation2 + $0x80] sm:$0x1] }
  0x86   : > { %v6847_v3 = vld [vmem:[#allocation2 + $0x74] sm:$0x1]  ;;  %v1351_v22 = vrot.slane %v1349_v61, 4  ;;  %v1354_v42 = vrot.slane %v1352_v28, 5  ;;  %v1358_v16 = vshll.u32 %v6842_v1, 16  ;;  %v6850_v13 = vcombine.low %v1337_v10, %v1347_v50 }
  0x87   : > { %v1362_v23 = vshrl.u32 %v6842_v1, 16  ;;  %v1368_v21 = vshll.u32 %v6847_v3, 16  ;;  %v775_v30 = vshrl.u32 %v4968_v32, 16  ;;  %v778_v37 = vshll.u32 %v4968_v32, 16 }
  0x88   : > { %7632 = vst [vmem:[#allocation9_spill] sm:$0xff] %v6850_v13  ;;  %v1355_v0 = vor.u32 %v1354_v42, %v1351_v22  ;;  %v1360_v34 = vrot.slane %v1358_v16, 5  ;;  %v783_v17 = vshrl.u32 %v4969_v59, 16  ;;  %5625 = vmatmul.mubr.bf16.gmra.mrb[12].mxu0 %v6850_v13  ;;  %5436 = vmatprep.mubr.bf16.mxu1 %v6850_v13  ;;  %v786_v39 = vshll.u32 %v4969_v59, 16 }
  0x89   : > { %v1364_v31 = vrot.slane %v1362_v23, 4  ;;  %v1370_v51 = vrot.slane %v1368_v21, 5  ;;  %v777_v47 = vrot.slane %v775_v30, 7  ;;  %5660 = vmatprep.mubr.bf16.mxu0 %v6779_v11  ;;  %v457_v28 = vmax.f32 %v425_v9, 0.0 }
  0x8a   : > { %v1356_v56 = vrot.slane %v1355_v0, 4  ;;  %v785_v61 = vrot.slane %v783_v17, 7  ;;  %v4970_v50 = vpack.c.bf16 %v456_v36, %v456_v36  ;;  %v2154_v42 = vsel %vm6736_vm13, %v4709_v24, %v2153_v26 }
  0x8b   : > { %v1365_v10 = vor.u32 %v1364_v31, %v1360_v34  ;;  %v780_v22 = vor.u32 %v778_v37, %v777_v47  ;;  %v781_v32 = vrot.slane %v777_v47, 4  ;;  %v4971_v21 = vpack.c.bf16 %v457_v28, %v457_v28 }
  0x8c   : > { %v1361_v16 = vsel %vm6406_vm2, %v1356_v56, %v1360_v34  ;;  %v788_v23 = vor.u32 %v786_v39, %v785_v61  ;;  %v790_v59 = vrot.slane %v785_v61, 4  ;;  %v792_v9 = vshrl.u32 %v4970_v50, 16  ;;  %v1017_v34 = vld [vmem:[#allocation2 + $0x84] sm:$0xf]  ;;  %v1021_v39 = vld [vmem:[#allocation2 + $0x8c] sm:$0x1] }
  0x8d   : > { %v1366_v30 = vrot.slane %v1365_v10, 4  ;;  %v1011_v0 = vsel %vm6455_vm10, %v780_v22, %v1010_v33  ;;  %v795_v36 = vshll.u32 %v4970_v50, 16  ;;  %v800_v24 = vshrl.u32 %v4971_v21, 16  ;;  %v5168_v22 = vld [vmem:[%s6380_s30 + $0x58] sm:$0xff]  }
  0x8e   : > { %v789_v37 = vsel %vm6449_vm9, %v781_v32, %v788_v23  ;;  %1012 = vst [vmem:[#allocation2 + $0x78] sm:$0xf] %v1011_v0  ;;  %v1015_v17 = vsel %vm6439_vm8, %v790_v59, %v1014_v44  ;;  %v803_v31 = vshll.u32 %v4971_v21, 16  ;;  %v794_v33 = vrot.slane %v792_v9, 7  ;;  %v6165_v44 = vld [vmem:[%s7595_s1 + $0x188] sm:$0xff]  }
  0x8f   : > { %v1371_v47 = vsel %vm6406_vm2, %v1366_v30, %v1370_v51  ;;  %1013 = vst [vmem:[#allocation2 + $0x7c] sm:$0xf] %v789_v37  ;;  %1016 = vst [vmem:[#allocation2 + $0x80] sm:$0x1] %v1015_v17  ;;  %v2155_v56 = vrot.slane %v2153_v26, 4  ;;  %v2156_v61 = vrot.slane %v6545_v15, 5  ;;  %v5060_v0 = vunpack.c.l.bf16 %v5168_v22 }
  0x90   : > { %v6877_v28 = vcombine.low %v1361_v16, %v1371_v47  ;;  %v802_v50 = vrot.slane %v800_v24, 7  ;;  %v4710_v10 = vrot.slane %v6608_v55, 9  ;;  %v2160_v51 = vrot.slane %v6625_v41, 5  ;;  %5661 = vmatmul.mubr.bf16.vlgmr.msra.gmra.mrb[0].mxu0 %v6821_v8  ;;  %v5169_v26 = vld [vmem:[%s6380_s30 + $0x60] sm:$0xff]   ;;  %v6177_v47 = vld [vmem:[%s7595_s1 + $0x1a8] sm:$0xff]  }
  0x91   : > { %v797_v32 = vor.u32 %v795_v36, %v794_v33  ;;  %v798_v23 = vrot.slane %v794_v33, 4  ;;  %v2157_v14 = vsel %vm6736_vm13, %v2155_v56, %v2156_v61  ;;  %v2163_v15 = vrot.slane %v6618_v57, 5  ;;  %5693 = vmatpush3.bf16.msra.mxu0 %v6722_v18  ;;  %v6167_v57 = vld [vmem:[%s7595_s1 + $0x190] sm:$0xff]  }
  0x92   : > { %7633 = vst [vmem:[#allocation10_spill] sm:$0xff] %v6877_v28  ;;  %5437 = vmatmul.mubr.bf16.gmra.mrb[16].mxu1 %v6877_v28  ;;  %v805_v16 = vor.u32 %v803_v31, %v802_v50  ;;  %v807_v59 = vrot.slane %v802_v50, 4  ;;  %v6889_v55 = vcombine.low %v2154_v42, %v2157_v14  ;;  %v2161_v41 = vsel %vm6736_vm13, %v4710_v10, %v2160_v51  ;;  %v6169_v14 = vld [vmem:[%s7595_s1 + $0x198] sm:$0xff]  }
  0x93   : > { %v1018_v21 = vsel %vm6455_vm10, %v797_v32, %v1017_v34  ;;  %5694 = vmatprep.subr.bf16.mxu0 %v6165_v44  ;;  %v2162_v30 = vrot.slane %v2160_v51, 4  ;;  %v5061_v9 = vunpack.c.h.bf16 %v5168_v22  ;;  %v5064_v36 = vunpack.c.l.bf16 %v5169_v26 }
  0x94   : > { %v806_v18 = vsel %vm6449_vm9, %v798_v23, %v805_v16  ;;  %1019 = vst [vmem:[#allocation2 + $0x84] sm:$0xf] %v1018_v21  ;;  %v1022_v42 = vsel %vm6439_vm8, %v807_v59, %v1021_v39  ;;  %5664 = vmatprep.mubr.bf16.mxu0 %v6889_v55  ;;  %v5065_v37 = vunpack.c.h.bf16 %v5169_v26  ;;  %v388_v31 = vmul.f32 %v6801_v52, %v5060_v0  ;;  %v6930_v0 = vld [vmem:[%s6380_s30 + $0x68] sm:$0xff]  }
  0x95   : > { %v6903_v17 = vld [vmem:[#allocation2 + $0x78] sm:$0xf]  ;;  %1020 = vst [vmem:[#allocation2 + $0x88] sm:$0xf] %v806_v18  ;;  %1023 = vst [vmem:[#allocation2 + $0x8c] sm:$0x1] %v1022_v42  ;;  %v2164_v24 = vsel %vm6736_vm13, %v2162_v30, %v2163_v15  ;;  %v389_v34 = vmul.f32 %v6801_v52, %v5061_v9  ;;  %5695 = vmatpush3.bf16.msra.mxu0 %v6165_v44  ;;  %v390_v10 = vmul.f32 %v6801_v52, %v5064_v36 }
  0x96   : > { %v6910_v33 = vld [vmem:[#allocation2 + $0x7c] sm:$0xf]  ;;  %v6912_v39 = vld [vmem:[#allocation2 + $0x80] sm:$0x1]  ;;  %v1373_v56 = vshrl.u32 %v6903_v17, 16  ;;  %v1376_v61 = vshll.u32 %v6903_v17, 16  ;;  %v6916_v50 = vcombine.low %v2161_v41, %v2164_v24  ;;  %v426_v23 = vadd.f32 %v6827_v62, %v388_v31  ;;  %5696 = vmatprep.subr.bf16.mxu0 %v6167_v57 }
  0x97   : > { %v1382_v51 = vshll.u32 %v6910_v33, 16  ;;  %v1386_v22 = vshrl.u32 %v6910_v33, 16  ;;  %v1392_v32 = vshll.u32 %v6912_v39, 16  ;;  %v427_v44 = vadd.f32 %v6827_v62, %v389_v34 }
  0x98   : > { %v1375_v15 = vrot.slane %v1373_v56, 4  ;;  %v1378_v26 = vrot.slane %v1376_v61, 5  ;;  %v391_v16 = vmul.f32 %v6801_v52, %v5065_v37  ;;  %5665 = vmatmul.mubr.bf16.gmra.mrb[4].mxu0 %v6916_v50  ;;  %v458_v30 = vmax.f32 %v426_v23, 0.0  ;;  %v6173_v61 = vld [vmem:[%s7595_s1 + $0x1a0] sm:$0xff]  }
  0x99   : > { %v1384_v59 = vrot.slane %v1382_v51, 5  ;;  %v1388_v41 = vrot.slane %v1386_v22, 4  ;;  %v1394_v21 = vrot.slane %v1392_v32, 5  ;;  %v459_v18 = vmax.f32 %v427_v44, 0.0  ;;  %5697 = vmatpush3.bf16.msra.mxu0 %v6167_v57 }
  0x9a   : > { %v1379_v9 = vor.u32 %v1378_v26, %v1375_v15  ;;  %v428_v42 = vadd.f32 %v6827_v62, %v390_v10  ;;  %v429_v36 = vadd.f32 %v6827_v62, %v391_v16  ;;  %v4972_v34 = vpack.c.bf16 %v458_v30, %v458_v30  ;;  %5698 = vmatprep.subr.bf16.mxu0 %v6169_v14 }
  0x9b   : > { %v1389_v24 = vor.u32 %v1388_v41, %v1384_v59  ;;  %v6934_v31 = vld [vmem:[#allocation2 + $0x84] sm:$0xf]  ;;  %v2167_v37 = vrot.slane %v6673_v63, 5  ;;  %v4973_v32 = vpack.c.bf16 %v459_v18, %v459_v18 }
  0x9c   : > { %v1380_v51 = vrot.slane %v1379_v9, 4  ;;  %v6941_v22 = vld [vmem:[#allocation2 + $0x88] sm:$0xf]  ;;  %v6943_v10 = vld [vmem:[#allocation2 + $0x8c] sm:$0x1]  ;;  %v1397_v57 = vshrl.u32 %v6934_v31, 16 }
  0x9d   : > { %v1390_v15 = vrot.slane %v1389_v24, 4  ;;  %v1400_v63 = vshll.u32 %v6934_v31, 16  ;;  %v1406_v26 = vshll.u32 %v6941_v22, 16  ;;  %v1410_v44 = vshrl.u32 %v6941_v22, 16  ;;  %5699 = vmatpush3.bf16.msra.mxu0 %v6169_v14 }
  0x9e   : > { %v1385_v16 = vsel %vm6406_vm2, %v1380_v51, %v1384_v59  ;;  %v1399_v41 = vrot.slane %v1397_v57, 4  ;;  %v1416_v30 = vshll.u32 %v6943_v10, 16  ;;  %v809_v9 = vshrl.u32 %v4972_v34, 16  ;;  %5700 = vmatprep.subr.bf16.mxu0 %v6173_v61 }
  0x9f   : > { %v1395_v18 = vsel %vm6406_vm2, %v1390_v15, %v1394_v21  ;;  %v1402_v56 = vrot.slane %v1400_v63, 5  ;;  %v1408_v23 = vrot.slane %v1406_v26, 5  ;;  %v1412_v24 = vrot.slane %v1410_v44, 4 }
  0xa0   : > { %v6958_v28 = vcombine.low %v1385_v16, %v1395_v18  ;;  %v1418_v13 = vrot.slane %v1416_v30, 5  ;;  %v811_v59 = vrot.slane %v809_v9, 7  ;;  %v812_v51 = vshll.u32 %v4972_v34, 16 }
  0xa1   : > { %v1403_v57 = vor.u32 %v1402_v56, %v1399_v41  ;;  %v1413_v43 = vor.u32 %v1412_v24, %v1408_v23  ;;  %v817_v40 = vshrl.u32 %v4973_v32, 16  ;;  %v820_v14 = vshll.u32 %v4973_v32, 16  ;;  %5701 = vmatpush3.bf16.msra.mxu0 %v6173_v61  ;;  %v6181_v56 = vld [vmem:[%s7595_s1 + $0x1b0] sm:$0xff]   ;;  %v1028_v41 = vld [vmem:[#allocation2 + $0x98] sm:$0x1] }
  0xa2   : > { %7634 = vst [vmem:[#allocation11_spill] sm:$0xff] %v6958_v28  ;;  %5440 = vmatprep.mubr.bf16.mxu1 %v6958_v28  ;;  %v814_v21 = vor.u32 %v812_v51, %v811_v59  ;;  %v815_v15 = vrot.slane %v811_v59, 4  ;;  %v460_v63 = vmax.f32 %v428_v42, 0.0  ;;  %v461_v26 = vmax.f32 %v429_v36, 0.0  ;;  %5702 = vmatprep.subr.bf16.mxu0 %v6177_v47 }
  0xa3   : > { %v1404_v44 = vrot.slane %v1403_v57, 4  ;;  %v1414_v48 = vrot.slane %v1413_v43, 4  ;;  %v819_v20 = vrot.slane %v817_v40, 7  ;;  %v7635_v16 = vrot.slane %v6663_v58, 9  ;;  %v1031_v57 = vld [vmem:[#allocation2 + $0x9c] sm:$0xf] }
  0xa4   : > { %v1025_v32 = vsel %vm6455_vm10, %v814_v21, %v1024_v27  ;;  %v4974_v42 = vpack.c.bf16 %v460_v63, %v460_v63  ;;  %v4975_v36 = vpack.c.bf16 %v461_v26, %v461_v26  ;;  %v2169_v61 = vrot.slane %v2167_v37, 4  ;;  %v1035_v21 = vld [vmem:[#allocation2 + $0xa4] sm:$0x1] }
  0xa5   : > { %v2168_v34 = vsel %vm6736_vm13, %v7635_v16, %v2167_v37  ;;  %v1409_v40 = vsel %vm6406_vm2, %v1404_v44, %v1408_v23  ;;  %v1419_v58 = vsel %vm6406_vm2, %v1414_v48, %v1418_v13  ;;  %v822_v43 = vor.u32 %v820_v14, %v819_v20  ;;  %1026 = vst [vmem:[#allocation2 + $0x90] sm:$0xf] %v1025_v32  ;;  %v5171_v32 = vld [vmem:[%s6380_s30 + $0x70] sm:$0xff]  }
  0xa6   : > { %v824_v30 = vrot.slane %v819_v20, 4  ;;  %v6974_v9 = vcombine.low %v1409_v40, %v1419_v58  ;;  %v826_v18 = vshrl.u32 %v4974_v42, 16  ;;  %v829_v24 = vshll.u32 %v4974_v42, 16  ;;  %5703 = vmatpush3.bf16.msra.mxu0 %v6177_v47  ;;  %v6185_v20 = vld [vmem:[%s7595_s1 + $0x1b8] sm:$0xff]  }
  0xa7   : > { %v834_v59 = vshrl.u32 %v4975_v36, 16  ;;  %v823_v27 = vsel %vm6449_vm9, %v815_v15, %v822_v43  ;;  %v837_v51 = vshll.u32 %v4975_v36, 16  ;;  %v7637_v23 = vrot.slane %v6675_v19, 5  ;;  %5704 = vmatprep.subr.bf16.mxu0 %v6181_v56 }
  0xa8   : > { %7636 = vst [vmem:[#allocation12_spill] sm:$0xff] %v6974_v9  ;;  %v1029_v37 = vsel %vm6439_vm8, %v824_v30, %v1028_v41  ;;  %5441 = vmatmul.mubr.bf16.gmra.mrb[20].mxu1 %v6974_v9  ;;  %1027 = vst [vmem:[#allocation2 + $0x94] sm:$0xf] %v823_v27  ;;  %v828_v13 = vrot.slane %v826_v18, 7  ;;  %v4712_v19 = vrot.slane %v6695_v29, 9  ;;  %v2174_v15 = vrot.slane %v6703_v53, 5 }
  0xa9   : > { %v2171_v48 = vsel %vm6736_vm13, %v2169_v61, %v7637_v23  ;;  %1030 = vst [vmem:[#allocation2 + $0x98] sm:$0x1] %v1029_v37  ;;  %v836_v47 = vrot.slane %v834_v59, 7  ;;  %v2177_v63 = vrot.slane %v6697_v45, 5  ;;  %v5069_v26 = vunpack.c.h.bf16 %v6930_v0 }
  0xaa   : > { %v6988_v14 = vcombine.low %v2168_v34, %v2171_v48  ;;  %v7638_v44 = vunpack.c.l.bf16 %v6930_v0  ;;  %v831_v41 = vor.u32 %v829_v24, %v828_v13  ;;  %v832_v42 = vrot.slane %v828_v13, 4  ;;  %5705 = vmatpush3.bf16.msra.mxu0 %v6181_v56  ;;  %v7006_v0 = vld [vmem:[%s7595_s1 + $0x1c0] sm:$0xff]  }
  0xab   : > { %v839_v36 = vor.u32 %v837_v51, %v836_v47  ;;  %v841_v61 = vrot.slane %v836_v47, 4  ;;  %v2175_v29 = vsel %vm6736_vm13, %v4712_v19, %v2174_v15  ;;  %v2176_v53 = vrot.slane %v2174_v15, 4  ;;  %5706 = vmatprep.subr.bf16.mxu0 %v6185_v20 }
  0xac   : > { %v392_v16 = vmul.f32 %v6801_v52, %v7638_v44  ;;  %5668 = vmatprep.mubr.bf16.mxu0 %v6988_v14  ;;  %v393_v45 = vmul.f32 %v6801_v52, %v5069_v26  ;;  %v7008_v40 = vld [vmem:[#allocation2 + $0x90] sm:$0xf]  ;;  %v1032_v56 = vsel %vm6455_vm10, %v831_v41, %v1031_v57  ;;  %v5072_v30 = vunpack.c.l.bf16 %v5171_v32 }
  0xad   : > { %v840_v58 = vsel %vm6449_vm9, %v832_v42, %v839_v36  ;;  %v1036_v43 = vsel %vm6439_vm8, %v841_v61, %v1035_v21  ;;  %v1421_v18 = vshrl.u32 %v7008_v40, 16  ;;  %v1424_v24 = vshll.u32 %v7008_v40, 16  ;;  %1033 = vst [vmem:[#allocation2 + $0x9c] sm:$0xf] %v1032_v56 }
  0xae   : > { %v430_v34 = vadd.f32 %v6827_v62, %v392_v16  ;;  %1034 = vst [vmem:[#allocation2 + $0xa0] sm:$0xf] %v840_v58  ;;  %1037 = vst [vmem:[#allocation2 + $0xa4] sm:$0x1] %v1036_v43  ;;  %v2178_v59 = vsel %vm6736_vm13, %v2176_v53, %v2177_v63  ;;  %v431_v27 = vadd.f32 %v6827_v62, %v393_v45  ;;  %v5073_v23 = vunpack.c.h.bf16 %v5171_v32 }
  0xaf   : > { %v7021_v37 = vcombine.low %v2175_v29, %v2178_v59  ;;  %5707 = vmatpush3.bf16.msra.mxu0 %v6185_v20  ;;  %v7023_v48 = vld [vmem:[#allocation2 + $0x94] sm:$0xf]  ;;  %v1423_v47 = vrot.slane %v1421_v18, 4  ;;  %v1426_v57 = vrot.slane %v1424_v24, 5  ;;  %v394_v19 = vmul.f32 %v6801_v52, %v5072_v30 }
  0xb0   : > { %v462_v51 = vmax.f32 %v430_v34, 0.0  ;;  %v7025_v13 = vld [vmem:[#allocation2 + $0x98] sm:$0x1]  ;;  %5740 = vmatprep.subr.bf16.mxu0 %v7006_v0  ;;  %v1430_v21 = vshll.u32 %v7023_v48, 16  ;;  %v1434_v15 = vshrl.u32 %v7023_v48, 16  ;;  %v463_v26 = vmax.f32 %v431_v27, 0.0 }
  0xb1   : > { %7639 = vst [vmem:[#allocation13_spill] sm:$0xff] %v7021_v37  ;;  %v1440_v63 = vshll.u32 %v7025_v13, 16  ;;  %5669 = vmatmul.mubr.bf16.gmra.mrb[8].mxu0 %v7021_v37  ;;  %v1427_v20 = vor.u32 %v1426_v57, %v1423_v47  ;;  %v395_v16 = vmul.f32 %v6801_v52, %v5073_v23  ;;  %v432_v43 = vadd.f32 %v6827_v62, %v394_v19 }
  0xb2   : > { %v4976_v44 = vpack.c.bf16 %v462_v51, %v462_v51  ;;  %v1432_v32 = vrot.slane %v1430_v21, 5  ;;  %v1436_v41 = vrot.slane %v1434_v15, 4  ;;  %v4977_v61 = vpack.c.bf16 %v463_v26, %v463_v26  ;;  %v1038_v26 = vld [vmem:[#allocation2 + $0xa8] sm:$0xf] }
  0xb3   : > { %v1442_v42 = vrot.slane %v1440_v63, 5  ;;  %v1428_v36 = vrot.slane %v1427_v20, 4  ;;  %v433_v30 = vadd.f32 %v6827_v62, %v395_v16 }
  0xb4   : > { %v843_v29 = vshrl.u32 %v4976_v44, 16  ;;  %v846_v53 = vshll.u32 %v4976_v44, 16  ;;  %v1437_v45 = vor.u32 %v1436_v41, %v1432_v32  ;;  %v7034_v34 = vld [vmem:[#allocation2 + $0x9c] sm:$0xf]  ;;  %v851_v63 = vshrl.u32 %v4977_v61, 16 }
  0xb5   : > { %v7036_v58 = vld [vmem:[#allocation2 + $0xa0] sm:$0xf]  ;;  %v7038_v56 = vld [vmem:[#allocation2 + $0xa4] sm:$0x1]  ;;  %v1433_v18 = vsel %vm6406_vm2, %v1428_v36, %v1432_v32  ;;  %v1445_v24 = vshrl.u32 %v7034_v34, 16  ;;  %v1448_v59 = vshll.u32 %v7034_v34, 16 }
  0xb6   : > { %v1454_v27 = vshll.u32 %v7036_v58, 16  ;;  %v1438_v51 = vrot.slane %v1437_v45, 4  ;;  %v1458_v23 = vshrl.u32 %v7036_v58, 16  ;;  %v1464_v47 = vshll.u32 %v7038_v56, 16 }
  0xb7   : > { %v845_v57 = vrot.slane %v843_v29, 7  ;;  %v1447_v21 = vrot.slane %v1445_v24, 4  ;;  %v1450_v15 = vrot.slane %v1448_v59, 5  ;;  %v853_v9 = vrot.slane %v851_v63, 7  ;;  %v1042_v24 = vld [vmem:[#allocation2 + $0xb0] sm:$0x1] }
  0xb8   : > { %v1456_v19 = vrot.slane %v1454_v27, 5  ;;  %v1443_v20 = vsel %vm6406_vm2, %v1438_v51, %v1442_v42  ;;  %v1460_v44 = vrot.slane %v1458_v23, 4  ;;  %v1466_v16 = vrot.slane %v1464_v47, 5 }
  0xb9   : > { %v848_v32 = vor.u32 %v846_v53, %v845_v57  ;;  %v7051_v41 = vcombine.low %v1433_v18, %v1443_v20  ;;  %v1451_v36 = vor.u32 %v1450_v15, %v1447_v21  ;;  %v849_v45 = vrot.slane %v845_v57, 4 }
  0xba   : > { %v1461_v28 = vor.u32 %v1460_v44, %v1456_v19  ;;  %v854_v54 = vshll.u32 %v4977_v61, 16  ;;  %v464_v59 = vmax.f32 %v432_v43, 0.0  ;;  %v858_v37 = vrot.slane %v853_v9, 4  ;;  %v1045_v44 = vld [vmem:[#allocation2 + $0xb4] sm:$0xf] }
  0xbb   : > { %v1039_v29 = vsel %vm6455_vm10, %v848_v32, %v1038_v26  ;;  %5444 = vmatprep.mubr.bf16.mxu1 %v7051_v41  ;;  %v1452_v27 = vrot.slane %v1451_v36, 4  ;;  %v465_v42 = vmax.f32 %v433_v30, 0.0  ;;  %v4713_v53 = vrot.slane %v6757_v6, 9 }
  0xbc   : > { %1040 = vst [vmem:[#allocation2 + $0xa8] sm:$0xf] %v1039_v29  ;;  %v1462_v18 = vrot.slane %v1461_v28, 4  ;;  %v856_v51 = vor.u32 %v854_v54, %v853_v9  ;;  %v4978_v23 = vpack.c.bf16 %v464_v59, %v464_v59  ;;  %v2181_v47 = vrot.slane %v6763_v25, 5  ;;  %v1049_v59 = vld [vmem:[#allocation2 + $0xbc] sm:$0x1] }
  0xbd   : > { %v1457_v61 = vsel %vm6406_vm2, %v1452_v27, %v1456_v19  ;;  %v1043_v57 = vsel %vm6439_vm8, %v858_v37, %v1042_v24  ;;  %v4979_v43 = vpack.c.bf16 %v465_v42, %v465_v42  ;;  %v2184_v21 = vrot.slane %v6765_v49, 5 }
  0xbe   : > { %v1467_v15 = vsel %vm6406_vm2, %v1462_v18, %v1466_v16  ;;  %v857_v6 = vsel %vm6449_vm9, %v849_v45, %v856_v51  ;;  %1044 = vst [vmem:[#allocation2 + $0xb0] sm:$0x1] %v1043_v57  ;;  %v860_v54 = vshrl.u32 %v4978_v23, 16  ;;  %v863_v28 = vshll.u32 %v4978_v23, 16 }
  0xbf   : > { %v7067_v9 = vcombine.low %v1457_v61, %v1467_v15  ;;  %1041 = vst [vmem:[#allocation2 + $0xac] sm:$0xf] %v857_v6  ;;  %v868_v25 = vshrl.u32 %v4979_v43, 16  ;;  %v871_v30 = vshll.u32 %v4979_v43, 16  ;;  %v2182_v37 = vsel %vm6736_vm13, %v4713_v53, %v2181_v47 }
  0xc0   : > { %v862_v19 = vrot.slane %v860_v54, 7  ;;  %v2183_v63 = vrot.slane %v2181_v47, 4  ;;  %v4714_v49 = vrot.slane %v6806_v4, 9  ;;  %v2188_v26 = vrot.slane %v6792_v38, 5 }
  0xc1   : > { %5445 = vmatmul.mubr.bf16.gmra.mrb[24].mxu1 %v7067_v9  ;;  %v870_v20 = vrot.slane %v868_v25, 7  ;;  %v2191_v16 = vrot.slane %v6808_v5, 5  ;;  %v4715_v32 = vrot.slane %v6834_v46, 9  ;;  %v2195_v36 = vrot.slane %v6842_v1, 5 }
  0xc2   : > { %v865_v29 = vor.u32 %v863_v28, %v862_v19  ;;  %v866_v24 = vrot.slane %v862_v19, 4  ;;  %v2185_v4 = vsel %vm6736_vm13, %v2183_v63, %v2184_v21  ;;  %v2189_v38 = vsel %vm6736_vm13, %v4714_v49, %v2188_v26 }
  0xc3   : > { %v7077_v45 = vld [vmem:[#allocation2 + $0xa8] sm:$0xf]  ;;  %v873_v5 = vor.u32 %v871_v30, %v870_v20  ;;  %v875_v53 = vrot.slane %v870_v20, 4  ;;  %v7087_v1 = vcombine.low %v2182_v37, %v2185_v4  ;;  %v2190_v18 = vrot.slane %v2188_v26, 4 }
  0xc4   : > { %v1469_v27 = vshrl.u32 %v7077_v45, 16  ;;  %v1472_v42 = vshll.u32 %v7077_v45, 16  ;;  %v1046_v46 = vsel %vm6455_vm10, %v865_v29, %v1045_v44  ;;  %v2196_v51 = vsel %vm6736_vm13, %v4715_v32, %v2195_v36 }
  0xc5   : > { %v7091_v23 = vld [vmem:[#allocation2 + $0xb0] sm:$0x1]  ;;  %v874_v57 = vsel %vm6449_vm9, %v866_v24, %v873_v5  ;;  %1047 = vst [vmem:[#allocation2 + $0xb4] sm:$0xf] %v1046_v46  ;;  %v1050_v43 = vsel %vm6439_vm8, %v875_v53, %v1049_v59  ;;  %5672 = vmatprep.mubr.bf16.mxu0 %v7087_v1  ;;  %v2192_v6 = vsel %vm6736_vm13, %v2190_v18, %v2191_v16  ;;  %v2197_v54 = vrot.slane %v2195_v36, 4 }
  0xc6   : > { %v1471_v47 = vrot.slane %v1469_v27, 4  ;;  %v1474_v61 = vrot.slane %v1472_v42, 5  ;;  %v7097_v21 = vld [vmem:[#allocation2 + $0xac] sm:$0xf]  ;;  %v1488_v15 = vshll.u32 %v7091_v23, 16  ;;  %v2198_v28 = vrot.slane %v6847_v3, 5 }
  0xc7   : > { %1048 = vst [vmem:[#allocation2 + $0xb8] sm:$0xf] %v874_v57  ;;  %1051 = vst [vmem:[#allocation2 + $0xbc] sm:$0x1] %v1050_v43  ;;  %v1478_v30 = vshll.u32 %v7097_v21, 16  ;;  %v1482_v37 = vshrl.u32 %v7097_v21, 16  ;;  %v7106_v19 = vcombine.low %v2189_v38, %v2192_v6 }
  0xc8   : > { %v1475_v25 = vor.u32 %v1474_v61, %v1471_v47  ;;  %v2199_v63 = vsel %vm6736_vm13, %v2197_v54, %v2198_v28  ;;  %v4716_v49 = vrot.slane %v6903_v17, 9  ;;  %v2202_v26 = vrot.slane %v6910_v33, 5 }
  0xc9   : > { %v1480_v44 = vrot.slane %v1478_v30, 5  ;;  %v1484_v16 = vrot.slane %v1482_v37, 4  ;;  %5673 = vmatmul.mubr.bf16.gmra.mrb[12].mxu0 %v7106_v19  ;;  %v7113_v3 = vcombine.low %v2196_v51, %v2199_v63  ;;  %v1490_v32 = vrot.slane %v1488_v15, 5 }
  0xca   : > { %v1476_v20 = vrot.slane %v1475_v25, 4  ;;  %v2203_v36 = vsel %vm6736_vm13, %v4716_v49, %v2202_v26  ;;  %v2204_v29 = vrot.slane %v2202_v26, 4  ;;  %v2205_v24 = vrot.slane %v6912_v39, 5 }
  0xcb   : > { %v1485_v59 = vor.u32 %v1484_v16, %v1480_v44  ;;  %5676 = vmatprep.mubr.bf16.mxu0 %v7113_v3  ;;  %v4717_v4 = vrot.slane %v6934_v31, 9  ;;  %v2209_v38 = vrot.slane %v6941_v22, 5  ;;  %v2212_v27 = vrot.slane %v6943_v10, 5 }
  0xcc   : > { %v7122_v42 = vld [vmem:[#allocation2 + $0xb4] sm:$0xf]  ;;  %v2206_v5 = vsel %vm6736_vm13, %v2204_v29, %v2205_v24  ;;  %v4718_v53 = vrot.slane %v7008_v40, 9  ;;  %v2216_v46 = vrot.slane %v7023_v48, 5  ;;  %v2219_v39 = vrot.slane %v7025_v13, 5 }
  0xcd   : > { %v1481_v18 = vsel %vm6406_vm2, %v1476_v20, %v1480_v44  ;;  %v1486_v51 = vrot.slane %v1485_v59, 4  ;;  %v1493_v10 = vshrl.u32 %v7122_v42, 16  ;;  %v7136_v57 = vcombine.low %v2203_v36, %v2206_v5 }
  0xce   : > { %v7131_v47 = vld [vmem:[#allocation2 + $0xb8] sm:$0xf]  ;;  %v7133_v61 = vld [vmem:[#allocation2 + $0xbc] sm:$0x1]  ;;  %v1496_v43 = vshll.u32 %v7122_v42, 16  ;;  %v2210_v25 = vsel %vm6736_vm13, %v4717_v4, %v2209_v38  ;;  %v2211_v30 = vrot.slane %v2209_v38, 4  ;;  %v2217_v16 = vsel %vm6736_vm13, %v4718_v53, %v2216_v46 }
  0xcf   : > { %v1502_v15 = vshll.u32 %v7131_v47, 16  ;;  %v1506_v6 = vshrl.u32 %v7131_v47, 16  ;;  %v1512_v13 = vshll.u32 %v7133_v61, 16  ;;  %v1491_v54 = vsel %vm6406_vm2, %v1486_v51, %v1490_v32  ;;  %v7161_v53 = vld [vmem:[#allocation2] sm:$0xf] }
  0xd0   : > { %v1495_v28 = vrot.slane %v1493_v10, 4  ;;  %v7146_v37 = vcombine.low %v1481_v18, %v1491_v54  ;;  %v1498_v63 = vrot.slane %v1496_v43, 5  ;;  %v2213_v44 = vsel %vm6736_vm13, %v2211_v30, %v2212_v27 }
  0xd1   : > { %v1504_v49 = vrot.slane %v1502_v15, 5  ;;  %v1508_v26 = vrot.slane %v1506_v6, 4  ;;  %v1514_v20 = vrot.slane %v1512_v13, 5  ;;  %5677 = vmatmul.mubr.bf16.gmra.mrb[16].mxu0 %v7136_v57  ;;  %v2218_v32 = vrot.slane %v2216_v46, 4  ;;  %v7163_v46 = vld [vmem:[#allocation2 + $0x4] sm:$0xf] }
  0xd2   : > { %5448 = vmatprep.mubr.bf16.mxu1 %v7146_v37  ;;  %v1499_v36 = vor.u32 %v1498_v63, %v1495_v28  ;;  %v7154_v24 = vcombine.low %v2210_v25, %v2213_v44  ;;  %v4719_v59 = vrot.slane %v7034_v34, 9  ;;  %v2223_v38 = vrot.slane %v7036_v58, 5  ;;  %v5172_v25 = vld [vmem:[%s6380_s30 + $0x78] sm:$0xff]  }
  0xd3   : > { %v1509_v29 = vor.u32 %v1508_v26, %v1504_v49  ;;  %v2220_v4 = vsel %vm6736_vm13, %v2218_v32, %v2219_v39  ;;  %v2226_v5 = vrot.slane %v7038_v56, 5  ;;  %v4682_v51 = vcombine.low %v7161_v53, %v7163_v46 }
  0xd4   : > { %v1500_v27 = vrot.slane %v1499_v36, 4  ;;  %5680 = vmatprep.mubr.bf16.mxu0 %v7154_v24  ;;  %v2230_v10 = vrot.slane %v7097_v21, 5  ;;  %v7169_v43 = vcombine.low %v2217_v16, %v2220_v4  ;;  %v2224_v39 = vsel %vm6736_vm13, %v4719_v59, %v2223_v38 }
  0xd5   : > { %v1510_v18 = vrot.slane %v1509_v29, 4  ;;  %v2225_v56 = vrot.slane %v2223_v38, 4  ;;  %v4720_v15 = vrot.slane %v7077_v45, 9  ;;  %v2233_v28 = vrot.slane %v7091_v23, 5 }
  0xd6   : > { %v1505_v6 = vsel %vm6406_vm2, %v1500_v27, %v1504_v49  ;;  %v2232_v54 = vrot.slane %v2230_v10, 4  ;;  %v4721_v26 = vrot.slane %v7122_v42, 9  ;;  %v2237_v16 = vrot.slane %v7131_v47, 5 }
  0xd7   : > { %v1515_v13 = vsel %vm6406_vm2, %v1510_v18, %v1514_v20  ;;  %v2227_v63 = vsel %vm6736_vm13, %v2225_v56, %v2226_v5  ;;  %v2240_v49 = vrot.slane %v7133_v61, 5  ;;  %v5076_v20 = vunpack.c.l.bf16 %v5172_v25 }
  0xd8   : > { %v7180_v30 = vcombine.low %v1505_v6, %v1515_v13  ;;  %v7185_v44 = vcombine.low %v2224_v39, %v2227_v63  ;;  %v5077_v23 = vunpack.c.h.bf16 %v5172_v25  ;;  %v2231_v32 = vsel %vm6736_vm13, %v4720_v15, %v2230_v10  ;;  %v6180_v13 = vld [vmem:[%s7595_s1 + $0x90] sm:$0xff]  }
  0xd9   : > { %5681 = vmatmul.mubr.bf16.gmra.mrb[20].mxu0 %v7169_v43  ;;  %v2234_v36 = vsel %vm6736_vm13, %v2232_v54, %v2233_v28  ;;  %v2238_v29 = vsel %vm6736_vm13, %v4721_v26, %v2237_v16  ;;  %v2239_v59 = vrot.slane %v2237_v16, 4  ;;  %v396_v61 = vmul.f32 %v6801_v52, %v5076_v20  ;;  %v6233_v26 = vld [vmem:[#allocation2 + $0x24] sm:$0xf]  ;;  %v6234_v16 = vld [vmem:[#allocation2 + $0x28] sm:$0xf] }
  0xda   : > { %5449 = vmatmul.mubr.bf16.gmra.mrb[28].mxu1 %v7180_v30  ;;  %5684 = vmatprep.mubr.bf16.mxu0 %v7185_v44  ;;  %v397_v4 = vmul.f32 %v6801_v52, %v5077_v23  ;;  %v7202_v38 = vcombine.low %v6934_v31, %v6941_v22  ;;  %v7206_v5 = vcombine.low %v7008_v40, %v7023_v48  ;;  %v6228_v31 = vld [vmem:[#allocation2 + $0xc] sm:$0xf]  ;;  %v6229_v22 = vld [vmem:[#allocation2 + $0x10] sm:$0xf] }
  0xdb   : > { %5468 = vmatprep.mubr.bf16.mxu1 %v4682_v51  ;;  %v2241_v27 = vsel %vm6736_vm13, %v2239_v59, %v2240_v49  ;;  %v7212_v18 = vcombine.low %v7034_v34, %v7036_v58  ;;  %v7216_v51 = vcombine.low %v7077_v45, %v7097_v21  ;;  %v7220_v52 = vcombine.low %v7122_v42, %v7131_v47  ;;  %v6230_v34 = vld [vmem:[#allocation2 + $0x18] sm:$0xf]  ;;  %v6231_v58 = vld [vmem:[#allocation2 + $0x1c] sm:$0xf]  ;;  %v6176_v45 = vld [vmem:[%s7595_s1 + $0x88] sm:$0xff]  }
  0xdc   : > { %v7222_v10 = vcombine.low %v6228_v31, %v6229_v22  ;;  %v7224_v40 = vcombine.low %v2231_v32, %v2234_v36  ;;  %v434_v48 = vadd.f32 %v6827_v62, %v396_v61  ;;  %v435_v39 = vadd.f32 %v6827_v62, %v397_v4  ;;  %v6232_v62 = vld [vmem:[%s7595_s1 + $0x80] sm:$0xff]   ;;  %v6235_v32 = vld [vmem:[#allocation2 + $0x30] sm:$0xf]  ;;  %v6236_v36 = vld [vmem:[#allocation2 + $0x34] sm:$0xf] }
  0xdd   : > { %v7228_v56 = vcombine.low %v6230_v34, %v6231_v58  ;;  %v7233_v21 = vcombine.low %v2238_v29, %v2241_v27  ;;  %v7245_v49 = vcombine.low %v6233_v26, %v6234_v16  ;;  %v7247_v29 = vcombine.low %v6235_v32, %v6236_v36  ;;  %v1052_v59 = vld [vmem:[#allocation2 + $0xc0] sm:$0xf]  ;;  %v1056_v61 = vld [vmem:[#allocation2 + $0xc8] sm:$0x1]  ;;  %v6184_v4 = vld [vmem:[%s7595_s1 + $0x98] sm:$0xff]  }
  0xde   : > { %v466_v42 = vmax.f32 %v434_v48, 0.0  ;;  %v467_v47 = vmax.f32 %v435_v39, 0.0  ;;  %v6196_v26 = vld [vmem:[%s7595_s1 + $0xb0] sm:$0xff]  }
  0xdf   : > { %v6241_v36 = vld [vmem:[#allocation2 + $0x54] sm:$0xf] }
  0xe0   : > { %v4980_v15 = vpack.c.bf16 %v466_v42, %v466_v42  ;;  %v4981_v6 = vpack.c.bf16 %v467_v47, %v467_v47  ;;  %v6237_v42 = vld [vmem:[#allocation2 + $0x3c] sm:$0xf] }
  0xe1   : > { %5685 = vmatmul.mubr.bf16.gmra.mrb[24].mxu0 %v7224_v40  ;;  %v7263_v47 = vcombine.low %v6237_v42, %v6238_v7  ;;  %v6244_v42 = vld [vmem:[#allocation2 + $0x60] sm:$0xf] }
  0xe2   : > { %5469 = vmatmul.mubr.bf16.vlgmr.msra.gmra.mrb[0].mxu1 %v7222_v10  ;;  %5688 = vmatprep.mubr.bf16.mxu0 %v7233_v21  ;;  %v877_v54 = vshrl.u32 %v4980_v15, 16  ;;  %v880_v28 = vshll.u32 %v4980_v15, 16  ;;  %v885_v25 = vshrl.u32 %v4981_v6, 16  ;;  %v888_v63 = vshll.u32 %v4981_v6, 16  ;;  %v6240_v15 = vld [vmem:[#allocation2 + $0x4c] sm:$0xf] }
  0xe3   : > { %5501 = vmatpush3.bf16.msra.mxu1 %v6232_v62  ;;  %5472 = vmatprep.mubr.bf16.mxu1 %v7228_v56  ;;  %v7265_v6 = vcombine.low %v6239_v12, %v6240_v15 }
  0xe4   : > { %5502 = vmatprep.subr.bf16.mxu1 %v6176_v45  ;;  %v879_v20 = vrot.slane %v877_v54, 7  ;;  %v887_v23 = vrot.slane %v885_v25, 7 }
  0xe6   : > { %v882_v27 = vor.u32 %v880_v28, %v879_v20  ;;  %v883_v31 = vrot.slane %v879_v20, 4  ;;  %v890_v22 = vor.u32 %v888_v63, %v887_v23  ;;  %v892_v48 = vrot.slane %v887_v23, 4 }
  0xe7   : > { %5503 = vmatpush3.bf16.msra.mxu1 %v6176_v45  ;;  %v6188_v45 = vld [vmem:[%s7595_s1 + $0xa0] sm:$0xff]  }
  0xe8   : > { %5504 = vmatprep.subr.bf16.mxu1 %v6180_v13  ;;  %v891_v39 = vsel %vm6449_vm9, %v883_v31, %v890_v22  ;;  %v1053_v34 = vsel %vm6455_vm10, %v882_v27, %v1052_v59  ;;  %v1057_v58 = vsel %vm6439_vm8, %v892_v48, %v1056_v61  ;;  %v6242_v59 = vld [vmem:[#allocation2 + $0x58] sm:$0xf] }
  0xe9   : > { %1054 = vst [vmem:[#allocation2 + $0xc0] sm:$0xf] %v1053_v34  ;;  %1055 = vst [vmem:[#allocation2 + $0xc4] sm:$0xf] %v891_v39  ;;  %v7285_v61 = vcombine.low %v6241_v36, %v6242_v59  ;;  %v6246_v59 = vld [vmem:[#allocation2 + $0x70] sm:$0xf] }
  0xea   : > { %5473 = vmatmul.mubr.bf16.gmra.mrb[4].mxu1 %v7245_v49  ;;  %1058 = vst [vmem:[#allocation2 + $0xc8] sm:$0x1] %v1057_v58 }
  0xeb   : > { %5476 = vmatprep.mubr.bf16.mxu1 %v7247_v29  ;;  %5505 = vmatpush3.bf16.msra.mxu1 %v6180_v13 }
  0xec   : > { %5506 = vmatprep.subr.bf16.mxu1 %v6184_v4 }
  0xef   : > { %5507 = vmatpush3.bf16.msra.mxu1 %v6184_v4 }
  0xf0   : > { %5508 = vmatprep.subr.bf16.mxu1 %v6188_v45  ;;  %v7271_v62 = vld [vmem:[#allocation2 + $0xc0] sm:$0xf]  ;;  %v7273_v13 = vld [vmem:[#allocation2 + $0xc4] sm:$0xf] }
  0xf1   : > { %v1109_v54 = vld [vmem:[#allocation2 + $0xc8] sm:$0x1]  ;;  %v4812_v28 = vrot.slane %v7271_v62, 9  ;;  %v3117_v25 = vrot.slane %v7273_v13, 5  ;;  %v2829_v16 = vshrl.u32 %v7271_v62, 16  ;;  %v2832_v20 = vshll.u32 %v7271_v62, 16 }
  0xf2   : > { %5477 = vmatmul.mubr.bf16.gmra.mrb[8].mxu1 %v7263_v47  ;;  %v3120_v63 = vrot.slane %v1109_v54, 5  ;;  %v2838_v23 = vshll.u32 %v7273_v13, 16  ;;  %v2842_v32 = vshrl.u32 %v7273_v13, 16  ;;  %v2848_v31 = vshll.u32 %v1109_v54, 16  ;;  %v6200_v54 = vld [vmem:[%s7595_s1 + $0xb8] sm:$0xff]  }
  0xf3   : > { %5480 = vmatprep.mubr.bf16.mxu1 %v7265_v6  ;;  %5509 = vmatpush3.bf16.msra.mxu1 %v6188_v45  ;;  %v3118_v4 = vsel %vm6736_vm13, %v4812_v28, %v3117_v25  ;;  %v3119_v27 = vrot.slane %v3117_v25, 4  ;;  %v2831_v22 = vrot.slane %v2829_v16, 4  ;;  %v2834_v48 = vrot.slane %v2832_v20, 5  ;;  %v6243_v45 = vld [vmem:[#allocation2 + $0x64] sm:$0xf] }
  0xf4   : > { %5510 = vmatprep.subr.bf16.mxu1 %v6192_v2  ;;  %v2840_v39 = vrot.slane %v2838_v23, 5  ;;  %v2844_v34 = vrot.slane %v2842_v32, 4  ;;  %v7291_v7 = vcombine.low %v6244_v42, %v6243_v45  ;;  %v2850_v28 = vrot.slane %v2848_v31, 5  ;;  %v6202_v20 = vld [vmem:[%s7595_s1 + $0xc0] sm:$0xff]   ;;  %v6245_v32 = vld [vmem:[#allocation2 + $0x6c] sm:$0xf] }
  0xf5   : > { %v3121_v58 = vsel %vm6736_vm13, %v3119_v27, %v3120_v63  ;;  %v2835_v15 = vor.u32 %v2834_v48, %v2831_v22  ;;  %v6193_v27 = vld [vmem:[%s7595_s1 + $0x1c8] sm:$0xff]   ;;  %v6203_v31 = vld [vmem:[%s7595_s1 + $0x1e0] sm:$0xff]   ;;  %v6207_v45 = vld [vmem:[%s7595_s1 + $0x1f0] sm:$0xff]  }
  0xf6   : > { %v7293_v12 = vcombine.low %v3118_v4, %v3121_v58  ;;  %v2845_v36 = vor.u32 %v2844_v34, %v2840_v39  ;;  %v7311_v4 = vcombine.low %v6245_v32, %v6246_v59  ;;  %v6247_v22 = vld [vmem:[#allocation2 + $0x8] sm:$0x1]  ;;  %v7396_v32 = vld [vmem:[#allocation2 + $0xd0] sm:$0xf]  ;;  %v6218_v59 = vld [vmem:[%s7595_s1 + $0xf8] sm:$0xff]  }
  0xf7   : > { %5511 = vmatpush3.bf16.msra.mxu1 %v6192_v2  ;;  %v2836_v25 = vrot.slane %v2835_v15, 4  ;;  %v2135_v48 = vrot.slane %v6247_v22, 5  ;;  %v6205_v58 = vld [vmem:[%s7595_s1 + $0x1e8] sm:$0xff]   ;;  %v6210_v15 = vld [vmem:[%s7595_s1 + $0x1f8] sm:$0xff]   ;;  %v6217_v22 = vld [vmem:[%s7595_s1 + $0x210] sm:$0xff]  }
  0xf8   : > { %5512 = vmatprep.subr.bf16.mxu1 %v6196_v26  ;;  %5689 = vmatmul.mubr.bf16.gmra.mrb[28].mxu0 %v7293_v12  ;;  %v2846_v63 = vrot.slane %v2845_v36, 4  ;;  %v6213_v36 = vld [vmem:[%s7595_s1 + $0x200] sm:$0xff]  }
  0xf9   : > { %5708 = vmatprep.mubr.bf16.mxu0 %v7228_v56  ;;  %v2841_v2 = vsel %vm6406_vm2, %v2836_v25, %v2840_v39  ;;  %v4706_v39 = vrot.slane %v7161_v53, 9  ;;  %v6208_v25 = vld [vmem:[%s7595_s1 + $0xd8] sm:$0xff]  }
  0xfa   : > { %5481 = vmatmul.mubr.bf16.gmra.mrb[12].mxu1 %v7285_v61  ;;  %v2851_v16 = vsel %vm6406_vm2, %v2846_v63, %v2850_v28  ;;  %v6204_v28 = vld [vmem:[%s7595_s1 + $0xc8] sm:$0xff]   ;;  %v7385_v63 = vcombine.low %v7271_v62, %v7273_v13  ;;  %v6216_v62 = vld [vmem:[%s7595_s1 + $0xf0] sm:$0xff]  }
  0xfb   : > { %5484 = vmatprep.mubr.bf16.mxu1 %v7291_v7  ;;  %5513 = vmatpush3.bf16.msra.mxu1 %v6196_v26  ;;  %v7309_v23 = vcombine.low %v2841_v2, %v2851_v16  ;;  %v7315_v26 = vcombine.low %v6903_v17, %v6910_v33  ;;  %v6197_v17 = vld [vmem:[%s7595_s1 + $0x1d0] sm:$0xff]   ;;  %v6201_v33 = vld [vmem:[%s7595_s1 + $0x1d8] sm:$0xff]   ;;  %v6214_v2 = vld [vmem:[%s7595_s1 + $0xe8] sm:$0xff]  }
  0xfc   : > { %5514 = vmatprep.subr.bf16.mxu1 %v6200_v54  ;;  %v7640_v16 = vld [vmem:[#allocation13_spill] sm:$0xff] }
  0xff   : > { %5515 = vmatpush3.bf16.msra.mxu1 %v6200_v54  ;;  %v6206_v54 = vld [vmem:[%s7595_s1 + $0xd0] sm:$0xff]  }
 0x100   : > { %5548 = vmatprep.subr.bf16.mxu1 %v6202_v20  ;;  %5709 = vmatmul.mubr.bf16.vlgmr.msra.gmra.mrb[0].mxu0 %v7245_v49 }
 0x101   : > { %5741 = vmatpush3.bf16.msra.mxu0 %v7006_v0  ;;  %5712 = vmatprep.mubr.bf16.mxu0 %v7247_v29  ;;  %v2132_v0 = vrot.slane %v7163_v46, 5 }
 0x102   : > { %5485 = vmatmul.mubr.bf16.gmra.mrb[16].mxu1 %v7311_v4  ;;  %5742 = vmatprep.subr.bf16.mxu0 %v6193_v27 }
 0x103   : > { %5488 = vmatprep.mubr.bf16.mxu1 %v7315_v26  ;;  %v2134_v34 = vrot.slane %v2132_v0, 4  ;;  %v2133_v46 = vsel %vm6736_vm13, %v4706_v39, %v2132_v0  ;;  %v7642_v0 = vld [vmem:[#allocation4_spill] sm:$0xff]  ;;  %v7644_v39 = vld [vmem:[#allocation6_spill] sm:$0xff] }
 0x105   : > { %5743 = vmatpush3.bf16.msra.mxu0 %v6193_v27  ;;  %v2136_v53 = vsel %vm6736_vm13, %v2134_v34, %v2135_v48  ;;  %v7641_v27 = vld [vmem:[#allocation3_spill] sm:$0xff] }
 0x106   : > { %5744 = vmatprep.subr.bf16.mxu0 %v6197_v17  ;;  %v4738_v42 = vcombine.low %v2133_v46, %v2136_v53  ;;  %v6219_v48 = vld [vmem:[%s7595_s1 + $0x218] sm:$0xff]   ;;  %v6221_v46 = vld [vmem:[%s7595_s1 + $0x228] sm:$0xff]   ;;  %v7646_v53 = vld [vmem:[#allocation8_spill] sm:$0xff] }
 0x107   : > { %v7645_v34 = vld [vmem:[#allocation7_spill] sm:$0xff] }
 0x108   : > { %5713 = vmatmul.mubr.bf16.gmra.mrb[4].mxu0 %v7263_v47 }
 0x109   : > { %5716 = vmatprep.mubr.bf16.mxu0 %v7265_v6  ;;  %5745 = vmatpush3.bf16.msra.mxu0 %v6197_v17  ;;  %v6215_v17 = vld [vmem:[%s7595_s1 + $0x208] sm:$0xff]  }
 0x10a   : > { %5489 = vmatmul.mubr.bf16.gmra.mrb[20].mxu1 %v7202_v38  ;;  %5746 = vmatprep.subr.bf16.mxu0 %v6201_v33 }
 0x10b   : > { %5492 = vmatprep.mubr.bf16.mxu1 %v7206_v5 }
 0x10d   : > { %5747 = vmatpush3.bf16.msra.mxu0 %v6201_v33  ;;  %v6248_v33 = vld [vmem:[%s7595_s1 + $0x100] sm:$0xff]  }
 0x10e   : > { %5748 = vmatprep.subr.bf16.mxu0 %v6203_v31 }
 0x110   : > { %5717 = vmatmul.mubr.bf16.gmra.mrb[8].mxu0 %v7285_v61 }
 0x111   : > { %5720 = vmatprep.mubr.bf16.mxu0 %v7291_v7  ;;  %5749 = vmatpush3.bf16.msra.mxu0 %v6203_v31  ;;  %v7643_v31 = vld [vmem:[#allocation5_spill] sm:$0xff] }
 0x112   : > { %5493 = vmatmul.mubr.bf16.gmra.mrb[24].mxu1 %v7212_v18  ;;  %5750 = vmatprep.subr.bf16.mxu0 %v6205_v58 }
 0x113   : > { %5496 = vmatprep.mubr.bf16.mxu1 %v7216_v51 }
 0x115   : > { %5751 = vmatpush3.bf16.msra.mxu0 %v6205_v58  ;;  %v6220_v58 = vld [vmem:[%s7595_s1 + $0x220] sm:$0xff]  }
 0x116   : > { %5752 = vmatprep.subr.bf16.mxu0 %v6207_v45 }
 0x118   : > { %5721 = vmatmul.mubr.bf16.gmra.mrb[12].mxu0 %v7311_v4 }
 0x119   : > { %5724 = vmatprep.mubr.bf16.mxu0 %v7315_v26  ;;  %5753 = vmatpush3.bf16.msra.mxu0 %v6207_v45  ;;  %v7647_v45 = vld [vmem:[#allocation9_spill] sm:$0xff] }
 0x11a   : > { %5497 = vmatmul.mubr.bf16.gmra.mrb[28].mxu1 %v7220_v52  ;;  %5754 = vmatprep.subr.bf16.mxu0 %v6210_v15 }
 0x11b   : > { %5516 = vmatprep.mubr.bf16.mxu1 %v4738_v42  ;;  %v6222_v42 = vld [vmem:[%s7595_s1 + $0x230] sm:$0xff]  }
 0x11d   : > { %5755 = vmatpush3.bf16.msra.mxu0 %v6210_v15  ;;  %v6223_v15 = vld [vmem:[%s7595_s1 + $0x238] sm:$0xff]  }
 0x11e   : > { %5788 = vmatprep.subr.bf16.mxu0 %v6213_v36 }
 0x120   : > { %5725 = vmatmul.mubr.bf16.gmra.mrb[16].mxu0 %v7202_v38 }
 0x121   : > { %5728 = vmatprep.mubr.bf16.mxu0 %v7206_v5 }
 0x122   : > { %5517 = vmatmul.mubr.bf16.vlgmr.msra.gmra.mrb[0].mxu1 %v6779_v11  ;;  %v6212_v11 = vld [vmem:[%s7595_s1 + $0xe0] sm:$0xff]  }
 0x123   : > { %5549 = vmatpush3.bf16.msra.mxu1 %v6202_v20  ;;  %5520 = vmatprep.mubr.bf16.mxu1 %v6821_v8  ;;  %v7394_v20 = vld [vmem:[#allocation2 + $0xcc] sm:$0xf] }
 0x124   : > { %5550 = vmatprep.subr.bf16.mxu1 %v6204_v28  ;;  %v4854_v13 = vcombine.low %v7394_v20, %v7396_v32 }
 0x127   : > { %5551 = vmatpush3.bf16.msra.mxu1 %v6204_v28  ;;  %v7649_v28 = vld [vmem:[#allocation11_spill] sm:$0xff] }
 0x128   : > { %5552 = vmatprep.subr.bf16.mxu1 %v6206_v54  ;;  %5729 = vmatmul.mubr.bf16.gmra.mrb[20].mxu0 %v7212_v18 }
 0x129   : > { %5732 = vmatprep.mubr.bf16.mxu0 %v7216_v51 }
 0x12a   : > { %5521 = vmatmul.mubr.bf16.gmra.mrb[4].mxu1 %v6889_v55 }
 0x12b   : > { %5524 = vmatprep.mubr.bf16.mxu1 %v6916_v50  ;;  %5553 = vmatpush3.bf16.msra.mxu1 %v6206_v54  ;;  %v7650_v54 = vld [vmem:[#allocation12_spill] sm:$0xff] }
 0x12c   : > { %5554 = vmatprep.subr.bf16.mxu1 %v6208_v25 }
 0x12f   : > { %5555 = vmatpush3.bf16.msra.mxu1 %v6208_v25  ;;  %v3649_v25 = vshrl.u32 %v7394_v20, 16 }
 0x130   : > { %5556 = vmatprep.subr.bf16.mxu1 %v6212_v11  ;;  %5733 = vmatmul.mubr.bf16.gmra.mrb[24].mxu0 %v7220_v52 }
 0x131   : > { %5736 = vmatprep.mubr.bf16.mxu0 %v7385_v63 }
 0x132   : > { %5525 = vmatmul.mubr.bf16.gmra.mrb[8].mxu1 %v6988_v14 }
 0x133   : > { %5528 = vmatprep.mubr.bf16.mxu1 %v7640_v16  ;;  %5557 = vmatpush3.bf16.msra.mxu1 %v6212_v11  ;;  %v3652_v11 = vshll.u32 %v7394_v20, 16 }
 0x134   : > { %5558 = vmatprep.subr.bf16.mxu1 %v6214_v2 }
 0x137   : > { %5559 = vmatpush3.bf16.msra.mxu1 %v6214_v2  ;;  %v3662_v2 = vshrl.u32 %v7396_v32, 16 }
 0x138   : > { %5560 = vmatprep.subr.bf16.mxu1 %v6216_v62  ;;  %5737 = vmatmul.mubr.bf16.gmra.mrb[28].mxu0 %v4854_v13  ;;  %v3654_v13 = vrot.slane %v3652_v11, 5 }
 0x139   : > { %5756 = vmatprep.mubr.bf16.mxu0 %v7641_v27  ;;  %v3664_v27 = vrot.slane %v3662_v2, 4 }
 0x13a   : > { %5529 = vmatmul.mubr.bf16.gmra.mrb[12].mxu1 %v7087_v1 }
 0x13b   : > { %5532 = vmatprep.mubr.bf16.mxu1 %v7106_v19  ;;  %5561 = vmatpush3.bf16.msra.mxu1 %v6216_v62  ;;  %v6249_v62 = vld [vmem:[%s7595_s1 + $0x108] sm:$0xff]  }
 0x13c   : > { %5562 = vmatprep.subr.bf16.mxu1 %v6218_v59 }
 0x13f   : > { %5563 = vmatpush3.bf16.msra.mxu1 %v6218_v59 }
 0x140   : > { %5836 = vmatprep.subr.bf16.mxu1 %v6248_v33  ;;  %5757 = vmatmul.mubr.bf16.vlgmr.msra.gmra.mrb[0].mxu0 %v7642_v0 }
 0x141   : > { %5789 = vmatpush3.bf16.msra.mxu0 %v6213_v36  ;;  %5760 = vmatprep.mubr.bf16.mxu0 %v7643_v31  ;;  %v7648_v36 = vld [vmem:[#allocation10_spill] sm:$0xff] }
 0x142   : > { %5533 = vmatmul.mubr.bf16.gmra.mrb[16].mxu1 %v7113_v3  ;;  %5790 = vmatprep.subr.bf16.mxu0 %v6215_v17 }
 0x143   : > { %5536 = vmatprep.mubr.bf16.mxu1 %v7136_v57 }
 0x145   : > { %5791 = vmatpush3.bf16.msra.mxu0 %v6215_v17  ;;  %v6250_v17 = vld [vmem:[%s7595_s1 + $0x110] sm:$0xff]  }
 0x146   : > { %5792 = vmatprep.subr.bf16.mxu0 %v6217_v22 }
 0x148   : > { %5761 = vmatmul.mubr.bf16.gmra.mrb[4].mxu0 %v7644_v39 }
 0x149   : > { %5764 = vmatprep.mubr.bf16.mxu0 %v7645_v34  ;;  %5793 = vmatpush3.bf16.msra.mxu0 %v6217_v22  ;;  %v6251_v22 = vld [vmem:[%s7595_s1 + $0x118] sm:$0xff]  }
 0x14a   : > { %5537 = vmatmul.mubr.bf16.gmra.mrb[20].mxu1 %v7154_v24  ;;  %5794 = vmatprep.subr.bf16.mxu0 %v6219_v48 }
 0x14b   : > { %5540 = vmatprep.mubr.bf16.mxu1 %v7169_v43 }
 0x14d   : > { %5795 = vmatpush3.bf16.msra.mxu0 %v6219_v48 }
 0x14e   : > { %5796 = vmatprep.subr.bf16.mxu0 %v6220_v58 }
 0x150   : > { %5765 = vmatmul.mubr.bf16.gmra.mrb[8].mxu0 %v7646_v53 }
 0x151   : > { %5768 = vmatprep.mubr.bf16.mxu0 %v7647_v45  ;;  %5797 = vmatpush3.bf16.msra.mxu0 %v6220_v58 }
 0x152   : > { %5541 = vmatmul.mubr.bf16.gmra.mrb[24].mxu1 %v7185_v44  ;;  %5798 = vmatprep.subr.bf16.mxu0 %v6221_v46 }
 0x153   : > { %5544 = vmatprep.mubr.bf16.mxu1 %v7224_v40 }
 0x155   : > { %5799 = vmatpush3.bf16.msra.mxu0 %v6221_v46  ;;  %v6253_v46 = vld [vmem:[%s7595_s1 + $0x128] sm:$0xff]  }
 0x156   : > { %5800 = vmatprep.subr.bf16.mxu0 %v6222_v42 }
 0x158   : > { %5769 = vmatmul.mubr.bf16.gmra.mrb[12].mxu0 %v7648_v36 }
 0x159   : > { %5772 = vmatprep.mubr.bf16.mxu0 %v7649_v28  ;;  %5801 = vmatpush3.bf16.msra.mxu0 %v6222_v42 }
 0x15a   : > { %5545 = vmatmul.mubr.bf16.gmra.mrb[28].mxu1 %v7233_v21  ;;  %5802 = vmatprep.subr.bf16.mxu0 %v6223_v15 }
 0x15b   : > { %5564 = vmatprep.mubr.bf16.mxu1 %v7222_v10  ;;  %v3658_v10 = vshll.u32 %v7396_v32, 16 }
 0x15d   : > { %5803 = vmatpush3.bf16.msra.mxu0 %v6223_v15  ;;  %v3660_v59 = vrot.slane %v3658_v10, 5 }
 0x15f   : > { %v3665_v0 = vor.u32 %v3664_v27, %v3660_v59 }
 0x160   : > { %5773 = vmatmul.mubr.bf16.gmra.mrb[16].mxu0 %v7650_v54 }
 0x161   : > { %5776 = vmatprep.mubr.bf16.mxu0 %v7051_v41  ;;  %v3666_v39 = vrot.slane %v3665_v0, 4 }
 0x162   : > { %5565 = vmatmul.mubr.bf16.vlgmr.msra.gmra.mrb[0].mxu1 %v7228_v56  ;;  %v3651_v56 = vrot.slane %v3649_v25, 4 }
 0x163   : > { %5844 = vmatpush3.bf16.msra.mxu1 %v6248_v33  ;;  %5568 = vmatprep.mubr.bf16.mxu1 %v7245_v49  ;;  %v7463_v49 = vld [vmem:[#allocation2 + $0xd4] sm:$0x1] }
 0x164   : > { %5837 = vmatprep.subr.bf16.mxu1 %v6249_v62  ;;  %v3655_v33 = vor.u32 %v3654_v13, %v3651_v56  ;;  %v3668_v31 = vshll.u32 %v7463_v49, 16 }
 0x166   : > { %v3656_v48 = vrot.slane %v3655_v33, 4  ;;  %v3670_v34 = vrot.slane %v3668_v31, 5 }
 0x167   : > { %5845 = vmatpush3.bf16.msra.mxu1 %v6249_v62 }
 0x168   : > { %5838 = vmatprep.subr.bf16.mxu1 %v6250_v17  ;;  %5777 = vmatmul.mubr.bf16.gmra.mrb[20].mxu0 %v7067_v9  ;;  %v3671_v58 = vsel %vm6406_vm2, %v3666_v39, %v3670_v34 }
 0x169   : > { %5780 = vmatprep.mubr.bf16.mxu0 %v7146_v37 }
 0x16a   : > { %5569 = vmatmul.mubr.bf16.gmra.mrb[4].mxu1 %v7247_v29  ;;  %v6252_v29 = vld [vmem:[%s7595_s1 + $0x120] sm:$0xff]  }
 0x16b   : > { %5572 = vmatprep.mubr.bf16.mxu1 %v7263_v47  ;;  %5846 = vmatpush3.bf16.msra.mxu1 %v6250_v17  ;;  %v3661_v47 = vsel %vm6406_vm2, %v3656_v48, %v3660_v59 }
 0x16c   : > { %5839 = vmatprep.subr.bf16.mxu1 %v6251_v22  ;;  %v4879_v53 = vcombine.low %v3661_v47, %v3671_v58 }
 0x16f   : > { %5847 = vmatpush3.bf16.msra.mxu1 %v6251_v22 }
 0x170   : > { %5840 = vmatprep.subr.bf16.mxu1 %v6252_v29  ;;  %5781 = vmatmul.mubr.bf16.gmra.mrb[24].mxu0 %v7180_v30 }
 0x171   : > { %5784 = vmatprep.mubr.bf16.mxu0 %v7309_v23 }
 0x172   : > { %5573 = vmatmul.mubr.bf16.gmra.mrb[8].mxu1 %v7265_v6  ;;  %v6254_v6 = vld [vmem:[%s7595_s1 + $0x130] sm:$0xff]  }
 0x173   : > { %5576 = vmatprep.mubr.bf16.mxu1 %v7285_v61  ;;  %5848 = vmatpush3.bf16.msra.mxu1 %v6252_v29 }
 0x174   : > { %5841 = vmatprep.subr.bf16.mxu1 %v6253_v46 }
 0x177   : > { %5849 = vmatpush3.bf16.msra.mxu1 %v6253_v46 }
 0x178   : > { %5842 = vmatprep.subr.bf16.mxu1 %v6254_v6  ;;  %5785 = vmatmul.mubr.bf16.gmra.mrb[28].mxu0 %v4879_v53 }
 0x179   : > { %5804 = vmatprep.mubr.bf16.mxu0 %v6821_v8  ;;  %v3937_v8 = vrot.slane %v7396_v32, 5 }
 0x17a   : > { %5577 = vmatmul.mubr.bf16.gmra.mrb[12].mxu1 %v7291_v7 }
 0x17b   : > { %5580 = vmatprep.mubr.bf16.mxu1 %v7311_v4  ;;  %5850 = vmatpush3.bf16.msra.mxu1 %v6254_v6 }
 0x17c   : > { %5843 = vmatprep.subr.bf16.mxu1 %v6255_v35 }
 0x17f   : > { %5851 = vmatpush3.bf16.msra.mxu1 %v6255_v35 }
 0x180   : > { %5805 = vmatmul.mubr.bf16.vlgmr.msra.gmra.mrb[0].mxu0 %v6889_v55  ;;  %v4888_v55 = vrot.slane %v7394_v20, 9 }
 0x181   : > { %5808 = vmatprep.mubr.bf16.mxu0 %v6916_v50  ;;  %v3939_v50 = vrot.slane %v3937_v8, 4 }
 0x182   : > { %5581 = vmatmul.mubr.bf16.gmra.mrb[16].mxu1 %v7315_v26 }
 0x183   : > { %5584 = vmatprep.mubr.bf16.mxu1 %v7202_v38 }
 0x188   : > { %5809 = vmatmul.mubr.bf16.gmra.mrb[4].mxu0 %v6988_v14  ;;  %v3940_v14 = vrot.slane %v7463_v49, 5 }
 0x189   : > { %5812 = vmatprep.mubr.bf16.mxu0 %v7640_v16 }
 0x18a   : > { %5585 = vmatmul.mubr.bf16.gmra.mrb[20].mxu1 %v7206_v5 }
 0x18b   : > { %5588 = vmatprep.mubr.bf16.mxu1 %v7212_v18 }
 0x190   : > { %5813 = vmatmul.mubr.bf16.gmra.mrb[8].mxu0 %v7087_v1 }
 0x191   : > { %5816 = vmatprep.mubr.bf16.mxu0 %v7106_v19  ;;  %v6281_v19 = vmov 0.0  }
 0x192   : > { %5589 = vmatmul.mubr.bf16.gmra.mrb[24].mxu1 %v7216_v51  ;;  %4368 = vst [vmem:[%s7536_s8] sm:$0x1] %v6281_v19  ;;  %4369 = vst [vmem:[%s7542_s11] sm:$0x1] %v6281_v19 }
 0x193   : > { %5592 = vmatprep.mubr.bf16.mxu1 %v7220_v52 }
 0x198   : > { %5817 = vmatmul.mubr.bf16.gmra.mrb[12].mxu0 %v7113_v3 }
 0x199   : > { %5820 = vmatprep.mubr.bf16.mxu0 %v7136_v57 }
 0x19a   : > { %5593 = vmatmul.mubr.bf16.gmra.mrb[28].mxu1 %v7385_v63 }
 0x19b   : > { %5628 = vmatprep.mubr.bf16.mxu1 %v7648_v36 }
 0x1a0   : > { %5821 = vmatmul.mubr.bf16.gmra.mrb[16].mxu0 %v7154_v24 }
 0x1a1   : > { %5824 = vmatprep.mubr.bf16.mxu0 %v7169_v43 }
 0x1a2   : > { %5629 = vmatmul.mubr.bf16.vlgmr.msra.gmra.mrb[16].mxu1 %v7649_v28 }
 0x1a3   : > { %5632 = vmatprep.mubr.bf16.mxu1 %v7650_v54 }
 0x1a8   : > { %5825 = vmatmul.mubr.bf16.gmra.mrb[20].mxu0 %v7185_v44 }
 0x1a9   : > { %5828 = vmatprep.mubr.bf16.mxu0 %v7224_v40 }
 0x1aa   : > { %5633 = vmatmul.mubr.bf16.gmra.mrb[20].mxu1 %v7051_v41  ;;  %v3938_v41 = vsel %vm6736_vm13, %v4888_v55, %v3937_v8 }
 0x1ab   : > { %5636 = vmatprep.mubr.bf16.mxu1 %v7067_v9  ;;  %v3941_v9 = vsel %vm6736_vm13, %v3939_v50, %v3940_v14 }
 0x1ac   : > { %v4905_v1 = vcombine.low %v3938_v41, %v3941_v9 }
 0x1b0   : > { %5829 = vmatmul.mubr.bf16.gmra.mrb[24].mxu0 %v7233_v21 }
 0x1b1   : > { %5832 = vmatprep.mubr.bf16.mxu0 %v7293_v12 }
 0x1b2   : > { %5637 = vmatmul.mubr.bf16.gmra.mrb[24].mxu1 %v7146_v37 }
 0x1b3   : > { %5640 = vmatprep.mubr.bf16.mxu1 %v7180_v30 }
 0x1b8   : > { %5833 = vmatmul.mubr.bf16.gmra.mrb[28].mxu0 %v4905_v1 }
 0x1ba   : > { %5641 = vmatmul.mubr.bf16.gmra.mrb[28].mxu1 %v7309_v23 }
 0x235   : > { %v5566_v60 = vpop.f32.mrb[0].mxu1 }
 0x236   : > { %v2669_v3 = vpop.f32.mrb[1].mxu1 }
 0x237   : > { %v5567_v57 = vpop.f32.mrb[2].mxu1 }
 0x238   : > { %v2672_v37 = vpop.f32.mrb[3].mxu1 }
 0x23d   : > { %v5570_v24 = vpop.f32.mrb[4].mxu1 }
 0x23e   : > { %v2685_v43 = vpop.f32.mrb[5].mxu1 }
 0x23f   : > { %v5571_v30 = vpop.f32.mrb[6].mxu1 }
 0x240   : > { %v2688_v44 = vpop.f32.mrb[7].mxu1 }
 0x245   : > { %v5574_v38 = vpop.f32.mrb[8].mxu1 }
 0x246   : > { %v2701_v5 = vpop.f32.mrb[9].mxu1 }
 0x247   : > { %v5575_v18 = vpop.f32.mrb[10].mxu1 }
 0x248   : > { %v2704_v51 = vpop.f32.mrb[11].mxu1 }
 0x24d   : > { %v7546_v52 = vpop.f32.mrb[12].mxu1 }
 0x24e   : > { %v7548_v40 = vpop.f32.mrb[13].mxu1 }
 0x24f   : > { %v7550_v21 = vpop.f32.mrb[14].mxu1 }
 0x250   : > { %v7552_v61 = vpop.f32.mrb[15].mxu1 }
 0x253   : > { %v5806_v7 = vpop.f32.mrb[0].mxu0 }
 0x254   : > { %v5852_v12 = vadd.f32 %v5806_v7, %v5566_v60  ;;  %v4045_v23 = vpop.f32.mrb[1].mxu0 }
 0x255   : > { %v5853_v4 = vadd.f32 %v4045_v23, %v2669_v3  ;;  %v5807_v26 = vpop.f32.mrb[2].mxu0 }
 0x256   : > { %v5854_v63 = vadd.f32 %v5807_v26, %v5567_v57  ;;  %v4048_v16 = vpop.f32.mrb[3].mxu0  ;;  %v4413_v28 = vmul.f32 %v5852_v12, %v5852_v12 }
 0x257   : > { %v5855_v20 = vadd.f32 %v4048_v16, %v2672_v37  ;;  %v4411_v45 = vmul.f32 %v5853_v4, %v5853_v4 }
 0x258   : > { %v5086_v32 = vpack.c.bf16 %v5854_v63, %v5852_v12  ;;  %v4414_v62 = vmul.f32 %v5854_v63, %v5854_v63 }
 0x259   : > { %v5081_v42 = vpack.c.bf16 %v5855_v20, %v5853_v4  ;;  %v4371_v15 = vadd.f32 %v5855_v20, %v5853_v4  ;;  %v4412_v36 = vmul.f32 %v5855_v20, %v5855_v20 }
 0x25a   : > { %5173 = vst [vmem:[%s7559_s14 + $0x8] sm:$0xff] %v5086_v32  }
 0x25b   : > { %5082 = vst [vmem:[%s7559_s14] sm:$0xff] %v5081_v42   ;;  %v4372_v54 = vadd.f32 %v5852_v12, %v4371_v15  ;;  %v4443_v25 = vadd.f32 %v4412_v36, %v4411_v45  ;;  %v5810_v11 = vpop.f32.mrb[4].mxu0 }
 0x25c   : > { %v5856_v2 = vadd.f32 %v5810_v11, %v5570_v24  ;;  %v4061_v10 = vpop.f32.mrb[5].mxu0 }
 0x25d   : > { %v4444_v56 = vadd.f32 %v4443_v25, %v4413_v28  ;;  %v5857_v13 = vadd.f32 %v4061_v10, %v2685_v43  ;;  %v4373_v59 = vadd.f32 %v5854_v63, %v4372_v54  ;;  %v5811_v27 = vpop.f32.mrb[6].mxu0 }
 0x25e   : > { %v5858_v17 = vadd.f32 %v5811_v27, %v5571_v30  ;;  %v4064_v49 = vpop.f32.mrb[7].mxu0  ;;  %v4417_v58 = vmul.f32 %v5856_v2, %v5856_v2 }
 0x25f   : > { %v4374_v33 = vadd.f32 %v5857_v13, %v4373_v59  ;;  %v4415_v0 = vmul.f32 %v5857_v13, %v5857_v13  ;;  %v4445_v31 = vadd.f32 %v4444_v56, %v4414_v62  ;;  %v5859_v22 = vadd.f32 %v4064_v49, %v2688_v44 }
 0x260   : > { %v5096_v48 = vpack.c.bf16 %v5858_v17, %v5856_v2  ;;  %v4418_v55 = vmul.f32 %v5858_v17, %v5858_v17 }
 0x261   : > { %v4446_v39 = vadd.f32 %v4445_v31, %v4415_v0  ;;  %v5091_v34 = vpack.c.bf16 %v5859_v22, %v5857_v13  ;;  %v4375_v29 = vadd.f32 %v5859_v22, %v4374_v33  ;;  %v4416_v47 = vmul.f32 %v5859_v22, %v5859_v22 }
 0x262   : > { %5175 = vst [vmem:[%s7559_s14 + $0x18] sm:$0xff] %v5096_v48  }
 0x263   : > { %5174 = vst [vmem:[%s7559_s14 + $0x10] sm:$0xff] %v5091_v34   ;;  %v4376_v46 = vadd.f32 %v5856_v2, %v4375_v29  ;;  %v4447_v53 = vadd.f32 %v4446_v39, %v4416_v47  ;;  %v5814_v6 = vpop.f32.mrb[8].mxu0 }
 0x264   : > { %v5860_v35 = vadd.f32 %v5814_v6, %v5574_v38  ;;  %v4077_v8 = vpop.f32.mrb[9].mxu0 }
 0x265   : > { %v4448_v50 = vadd.f32 %v4447_v53, %v4417_v58  ;;  %v5861_v14 = vadd.f32 %v4077_v8, %v2701_v5  ;;  %v4377_v41 = vadd.f32 %v5858_v17, %v4376_v46  ;;  %v5815_v9 = vpop.f32.mrb[10].mxu0 }
 0x266   : > { %v5862_v1 = vadd.f32 %v5815_v9, %v5575_v18  ;;  %v4080_v19 = vpop.f32.mrb[11].mxu0  ;;  %v4421_v38 = vmul.f32 %v5860_v35, %v5860_v35 }
 0x267   : > { %v4378_v60 = vadd.f32 %v5861_v14, %v4377_v41  ;;  %v4419_v3 = vmul.f32 %v5861_v14, %v5861_v14  ;;  %v4449_v57 = vadd.f32 %v4448_v50, %v4418_v55  ;;  %v5863_v37 = vadd.f32 %v4080_v19, %v2704_v51 }
 0x268   : > { %v5106_v24 = vpack.c.bf16 %v5862_v1, %v5860_v35  ;;  %v4422_v18 = vmul.f32 %v5862_v1, %v5862_v1 }
 0x269   : > { %v4450_v43 = vadd.f32 %v4449_v57, %v4419_v3  ;;  %v5101_v30 = vpack.c.bf16 %v5863_v37, %v5861_v14  ;;  %v4379_v44 = vadd.f32 %v5863_v37, %v4378_v60  ;;  %v4420_v7 = vmul.f32 %v5863_v37, %v5863_v37 }
 0x26a   : > { %5177 = vst [vmem:[%s7559_s14 + $0x28] sm:$0xff] %v5106_v24  }
 0x26b   : > { %5176 = vst [vmem:[%s7559_s14 + $0x20] sm:$0xff] %v5101_v30   ;;  %v4380_v12 = vadd.f32 %v5860_v35, %v4379_v44  ;;  %v4451_v23 = vadd.f32 %v4450_v43, %v4420_v7  ;;  %v5818_v5 = vpop.f32.mrb[12].mxu0 }
 0x26c   : > { %v5864_v4 = vadd.f32 %v5818_v5, %v7546_v52  ;;  %v4093_v26 = vpop.f32.mrb[13].mxu0 }
 0x26d   : > { %v4452_v63 = vadd.f32 %v4451_v23, %v4421_v38  ;;  %v5865_v16 = vadd.f32 %v4093_v26, %v7548_v40  ;;  %v4381_v51 = vadd.f32 %v5862_v1, %v4380_v12  ;;  %v5819_v20 = vpop.f32.mrb[14].mxu0 }
 0x26e   : > { %v5866_v32 = vadd.f32 %v5819_v20, %v7550_v21  ;;  %v4096_v45 = vpop.f32.mrb[15].mxu0  ;;  %v4425_v10 = vmul.f32 %v5864_v4, %v5864_v4 }
 0x26f   : > { %v4382_v42 = vadd.f32 %v5865_v16, %v4381_v51  ;;  %v4423_v15 = vmul.f32 %v5865_v16, %v5865_v16  ;;  %v4453_v36 = vadd.f32 %v4452_v63, %v4422_v18  ;;  %v5867_v28 = vadd.f32 %v4096_v45, %v7552_v61 }
 0x270   : > { %v5116_v54 = vpack.c.bf16 %v5866_v32, %v5864_v4  ;;  %v4426_v17 = vmul.f32 %v5866_v32, %v5866_v32 }
 0x271   : > { %v4454_v25 = vadd.f32 %v4453_v36, %v4423_v15  ;;  %v5111_v52 = vpack.c.bf16 %v5867_v28, %v5865_v16  ;;  %v4383_v11 = vadd.f32 %v5867_v28, %v4382_v42  ;;  %v4424_v2 = vmul.f32 %v5867_v28, %v5867_v28 }
 0x272   : > { %5179 = vst [vmem:[%s7559_s14 + $0x38] sm:$0xff] %v5116_v54  }
 0x273   : > { %5178 = vst [vmem:[%s7559_s14 + $0x30] sm:$0xff] %v5111_v52   ;;  %v4384_v40 = vadd.f32 %v5864_v4, %v4383_v11  ;;  %v4455_v62 = vadd.f32 %v4454_v25, %v4424_v2  ;;  %v5822_v13 = vpop.f32.mrb[16].mxu0 }
 0x274   : > { %v4109_v27 = vpop.f32.mrb[17].mxu0 }
 0x275   : > { %v5630_v56 = vpop.f32.mrb[16].mxu1  ;;  %v4456_v49 = vadd.f32 %v4455_v62, %v4425_v10  ;;  %v4385_v0 = vadd.f32 %v5866_v32, %v4384_v40  ;;  %v5823_v31 = vpop.f32.mrb[18].mxu0 }
 0x276   : > { %v3019_v59 = vpop.f32.mrb[17].mxu1  ;;  %v5868_v21 = vadd.f32 %v5822_v13, %v5630_v56  ;;  %v4112_v39 = vpop.f32.mrb[19].mxu0 }
 0x277   : > { %v5631_v33 = vpop.f32.mrb[18].mxu1  ;;  %v5869_v61 = vadd.f32 %v4109_v27, %v3019_v59  ;;  %v4457_v47 = vadd.f32 %v4456_v49, %v4426_v17 }
 0x278   : > { %v3022_v22 = vpop.f32.mrb[19].mxu1  ;;  %v5870_v48 = vadd.f32 %v5823_v31, %v5631_v33  ;;  %v4429_v55 = vmul.f32 %v5868_v21, %v5868_v21 }
 0x279   : > { %v4386_v34 = vadd.f32 %v5869_v61, %v4385_v0  ;;  %v4427_v29 = vmul.f32 %v5869_v61, %v5869_v61  ;;  %v5871_v58 = vadd.f32 %v4112_v39, %v3022_v22 }
 0x27a   : > { %v5126_v46 = vpack.c.bf16 %v5870_v48, %v5868_v21  ;;  %v4430_v3 = vmul.f32 %v5870_v48, %v5870_v48 }
 0x27b   : > { %v4458_v53 = vadd.f32 %v4457_v47, %v4427_v29  ;;  %v5121_v6 = vpack.c.bf16 %v5871_v58, %v5869_v61  ;;  %v4387_v35 = vadd.f32 %v5871_v58, %v4386_v34  ;;  %v4428_v8 = vmul.f32 %v5871_v58, %v5871_v58  ;;  %v5826_v9 = vpop.f32.mrb[20].mxu0 }
 0x27c   : > { %5181 = vst [vmem:[%s7559_s14 + $0x48] sm:$0xff] %v5126_v46   ;;  %v4125_v60 = vpop.f32.mrb[21].mxu0 }
 0x27d   : > { %5180 = vst [vmem:[%s7559_s14 + $0x40] sm:$0xff] %v5121_v6   ;;  %v4388_v50 = vadd.f32 %v5868_v21, %v4387_v35  ;;  %v4459_v14 = vadd.f32 %v4458_v53, %v4428_v8  ;;  %v5634_v41 = vpop.f32.mrb[20].mxu1  ;;  %v5827_v30 = vpop.f32.mrb[22].mxu0 }
 0x27e   : > { %v3035_v1 = vpop.f32.mrb[21].mxu1  ;;  %v5872_v19 = vadd.f32 %v5826_v9, %v5634_v41  ;;  %v4128_v38 = vpop.f32.mrb[23].mxu0 }
 0x27f   : > { %v4460_v57 = vadd.f32 %v4459_v14, %v4429_v55  ;;  %v5635_v37 = vpop.f32.mrb[22].mxu1  ;;  %v5873_v24 = vadd.f32 %v4125_v60, %v3035_v1  ;;  %v4389_v43 = vadd.f32 %v5870_v48, %v4388_v50 }
 0x280   : > { %v3038_v44 = vpop.f32.mrb[23].mxu1  ;;  %v5874_v7 = vadd.f32 %v5827_v30, %v5635_v37  ;;  %v4433_v20 = vmul.f32 %v5872_v19, %v5872_v19 }
 0x281   : > { %v4390_v12 = vadd.f32 %v5873_v24, %v4389_v43  ;;  %v4431_v23 = vmul.f32 %v5873_v24, %v5873_v24  ;;  %v4461_v5 = vadd.f32 %v4460_v57, %v4430_v3  ;;  %v5875_v4 = vadd.f32 %v4128_v38, %v3038_v44 }
 0x282   : > { %v5136_v26 = vpack.c.bf16 %v5874_v7, %v5872_v19  ;;  %v4434_v25 = vmul.f32 %v5874_v7, %v5874_v7 }
 0x283   : > { %v4462_v18 = vadd.f32 %v4461_v5, %v4431_v23  ;;  %v5131_v63 = vpack.c.bf16 %v5875_v4, %v5873_v24  ;;  %v4391_v16 = vadd.f32 %v5875_v4, %v4390_v12  ;;  %v4432_v51 = vmul.f32 %v5875_v4, %v5875_v4  ;;  %v5830_v15 = vpop.f32.mrb[24].mxu0 }
 0x284   : > { %5183 = vst [vmem:[%s7559_s14 + $0x58] sm:$0xff] %v5136_v26   ;;  %v4141_v54 = vpop.f32.mrb[25].mxu0 }
 0x285   : > { %5182 = vst [vmem:[%s7559_s14 + $0x50] sm:$0xff] %v5131_v63   ;;  %v4392_v32 = vadd.f32 %v5872_v19, %v4391_v16  ;;  %v4463_v45 = vadd.f32 %v4462_v18, %v4432_v51  ;;  %v5638_v42 = vpop.f32.mrb[24].mxu1  ;;  %v5831_v40 = vpop.f32.mrb[26].mxu0 }
 0x286   : > { %v3051_v36 = vpop.f32.mrb[25].mxu1  ;;  %v5876_v28 = vadd.f32 %v5830_v15, %v5638_v42  ;;  %v4144_v13 = vpop.f32.mrb[27].mxu0  ;;  %v4370_v15 = vld [vmem:[%s7536_s8] sm:$0x1] }
 0x287   : > { %v4464_v52 = vadd.f32 %v4463_v45, %v4433_v20  ;;  %v5639_v11 = vpop.f32.mrb[26].mxu1  ;;  %v5877_v2 = vadd.f32 %v4141_v54, %v3051_v36  ;;  %v4393_v10 = vadd.f32 %v5874_v7, %v4392_v32  ;;  %v4410_v54 = vld [vmem:[%s7542_s11] sm:$0x1] }
 0x288   : > { %v3054_v62 = vpop.f32.mrb[27].mxu1  ;;  %v5878_v56 = vadd.f32 %v5831_v40, %v5639_v11  ;;  %v4437_v22 = vmul.f32 %v5876_v28, %v5876_v28 }
 0x289   : > { %v4394_v59 = vadd.f32 %v5877_v2, %v4393_v10  ;;  %v4435_v21 = vmul.f32 %v5877_v2, %v5877_v2  ;;  %v4465_v27 = vadd.f32 %v4464_v52, %v4434_v25  ;;  %v5879_v17 = vadd.f32 %v4144_v13, %v3054_v62 }
 0x28a   : > { %v5146_v49 = vpack.c.bf16 %v5878_v56, %v5876_v28  ;;  %v4438_v53 = vmul.f32 %v5878_v56, %v5878_v56 }
 0x28b   : > { %v4466_v33 = vadd.f32 %v4465_v27, %v4435_v21  ;;  %v5141_v61 = vpack.c.bf16 %v5879_v17, %v5877_v2  ;;  %v4395_v0 = vadd.f32 %v5879_v17, %v4394_v59  ;;  %v4436_v31 = vmul.f32 %v5879_v17, %v5879_v17  ;;  %v5834_v29 = vpop.f32.mrb[28].mxu0 }
 0x28c   : > { %5185 = vst [vmem:[%s7559_s14 + $0x68] sm:$0xff] %v5146_v49   ;;  %v4157_v46 = vpop.f32.mrb[29].mxu0 }
 0x28d   : > { %5184 = vst [vmem:[%s7559_s14 + $0x60] sm:$0xff] %v5141_v61   ;;  %v4396_v48 = vadd.f32 %v5876_v28, %v4395_v0  ;;  %v4467_v39 = vadd.f32 %v4466_v33, %v4436_v31  ;;  %v5642_v34 = vpop.f32.mrb[28].mxu1  ;;  %v5835_v50 = vpop.f32.mrb[30].mxu0 }
 0x28e   : > { %v3067_v47 = vpop.f32.mrb[29].mxu1  ;;  %v5880_v58 = vadd.f32 %v5834_v29, %v5642_v34  ;;  %v4160_v9 = vpop.f32.mrb[31].mxu0 }
 0x28f   : > { %v4468_v6 = vadd.f32 %v4467_v39, %v4437_v22  ;;  %v5643_v35 = vpop.f32.mrb[30].mxu1  ;;  %v5881_v8 = vadd.f32 %v4157_v46, %v3067_v47  ;;  %v4397_v55 = vadd.f32 %v5878_v56, %v4396_v48 }
 0x290   : > { %v3070_v14 = vpop.f32.mrb[31].mxu1  ;;  %v5882_v41 = vadd.f32 %v5835_v50, %v5643_v35  ;;  %v4441_v44 = vmul.f32 %v5880_v58, %v5880_v58 }
 0x291   : > { %v4398_v1 = vadd.f32 %v5881_v8, %v4397_v55  ;;  %v4439_v19 = vmul.f32 %v5881_v8, %v5881_v8  ;;  %v4469_v60 = vadd.f32 %v4468_v6, %v4438_v53  ;;  %v5883_v3 = vadd.f32 %v4160_v9, %v3070_v14 }
 0x292   : > { %v5156_v57 = vpack.c.bf16 %v5882_v41, %v5880_v58  ;;  %v4442_v12 = vmul.f32 %v5882_v41, %v5882_v41 }
 0x293   : > { %v4470_v37 = vadd.f32 %v4469_v60, %v4439_v19  ;;  %v5151_v24 = vpack.c.bf16 %v5883_v3, %v5881_v8  ;;  %v4399_v43 = vadd.f32 %v5883_v3, %v4398_v1  ;;  %v4440_v30 = vmul.f32 %v5883_v3, %v5883_v3 }
 0x294   : > { %5187 = vst [vmem:[%s7559_s14 + $0x78] sm:$0xff] %v5156_v57  }
 0x295   : > { %5186 = vst [vmem:[%s7559_s14 + $0x70] sm:$0xff] %v5151_v24   ;;  %v4400_v7 = vadd.f32 %v5880_v58, %v4399_v43  ;;  %v4471_v38 = vadd.f32 %v4470_v37, %v4440_v30 }
 0x297   : > { %v4401_v23 = vadd.f32 %v5882_v41, %v4400_v7  ;;  %v4472_v5 = vadd.f32 %v4471_v38, %v4441_v44 }
 0x299   : > { %v4402_v4 = vrot.slane %v4401_v23, 4  ;;  %v4473_v26 = vadd.f32 %v4472_v5, %v4442_v12 }
 0x29b   : > { %v4403_v18 = vadd.f32 %v4402_v4, %v4401_v23  ;;  %v4474_v63 = vrot.slane %v4473_v26, 4 }
 0x29d   : > { %v4404_v16 = vrot.slane %v4403_v18, 2  ;;  %v4475_v51 = vadd.f32 %v4474_v63, %v4473_v26 }
 0x29f   : > { %v4405_v20 = vadd.f32 %v4404_v16, %v4403_v18  ;;  %v4476_v32 = vrot.slane %v4475_v51, 2 }
 0x2a1   : > { %v4406_v45 = vrot.slane %v4405_v20, 1  ;;  %v4477_v42 = vadd.f32 %v4476_v32, %v4475_v51 }
 0x2a3   : > { %v4407_v36 = vadd.f32 %v4406_v45, %v4405_v20  ;;  %v4478_v28 = vrot.slane %v4477_v42, 1 }
 0x2a5   : > { %v4408_v25 = vadd.f32 %v4407_v36, %v4370_v15  ;;  %v4479_v52 = vadd.f32 %v4478_v28, %v4477_v42 }
 0x2a7   : > { %4409 = vst [vmem:[%s7536_s8] sm:$0x1] %v4408_v25  ;;  %v4480_v11 = vadd.f32 %v4479_v52, %v4410_v54 }
 0x2a9   : > { %4481 = vst [vmem:[%s7542_s11] sm:$0x1] %v4480_v11 }
 0x2aa PF: > { %s17_s23 = sadd.s32 1, %s6278_s23   ;;  %s7651_s21 = smov %s6274_s22 }
 0x2ab   : > { %p14_p5 = scmp.ge.s32.totalorder %s17_s23, 4   ;;  %s7652_s22 = smov %s7654_s24 }
 0x2ad   :  { %16 = sbr.rel (!%p14_p5) target bundleno = 2 (0x2), region = 103 }

</bundles_post_ra>
